<compile_context>
chip_gen: v7x
topology: tpu7x:2x2x1
jax: 0.10.0
libtpu: 0.0.40
codegen_flags: <defaults>
</compile_context>

<pallas_src>
import numpy as np
import jax
import jax.numpy as jnp
from jax.experimental import pallas as pl
from jax.experimental.pallas import tpu as pltpu

EPS = 1e-5          # nn.InstanceNorm2d default eps
NEG_SLOPE = 0.01    # nn.LeakyReLU default negative_slope
PADL = 8            # halo width in the conv scratch (sublane-aligned for f32)


# --------------------------- Pallas kernel -----------------------------------

def _make_block_kernel(H, W, Cin, Cout):
    """Fused conv_block(downsample=True) kernel for one sample (one grid step)."""
    HW = H * W
    Ch = Cout // 2
    Hq, Wq = H // 2, W // 2
    Cm = max(Cin, Cout)
    Wp = W + 2 * PADL            # padded scratch width

    def kernel(x_ref, w1_ref, g1_ref, b1_ref, w2_ref, g2_ref, b2_ref,
               yh_ref, yp_ref, pad_ref, y_scr):
        # Zero only the halo regions the 3x3 taps actually read (rows 0 and
        # H+1 plus the aligned 8-column bands either side of the image).  The
        # interior is fully rewritten each stage, so no full-scratch clear.
        zrow = jnp.zeros((1, Wp, Cm), jnp.float32)
        zcol = jnp.zeros((H + 2, PADL, Cm), jnp.float32)
        pad_ref[pl.ds(0, 1), :, :] = zrow
        pad_ref[pl.ds(H + 1, 1), :, :] = zrow
        pad_ref[:, pl.ds(0, PADL), :] = zcol
        pad_ref[:, pl.ds(PADL + W, PADL), :] = zcol

        def conv_in_lrelu(src, ci, w_ref, g_ref, b_ref):
            """3x3 conv as ONE K=9*ci MXU matmul on an in-VMEM im2col operand,
            then InstanceNorm (single-pass stats, folded affine) + LeakyReLU."""
            # Stage the input into the zero-haloed scratch (aligned store:
            # row offset 1 is on the untiled dim, column offset PADL=8).
            pad_ref[pl.ds(1, H), pl.ds(PADL, W), pl.ds(0, ci)] = (
                src.astype(jnp.float32).reshape(H, W, ci))
            # im2col: 9 shifted-window loads (pure addressing, no masks or
            # zero-fill concats), folded into the contraction dimension.
            taps = [pad_ref[pl.ds(kh, H), pl.ds(PADL - 1 + kw, W), pl.ds(0, ci)]
                    for kh in range(3) for kw in range(3)]
            op = jnp.concatenate(taps, axis=-1).reshape(HW, 9 * ci)
            acc = jnp.dot(op.astype(jnp.bfloat16), w_ref[...],
                          preferred_element_type=jnp.float32)     # (HW, Cout) f32
            # InstanceNorm2d (biased variance): single pass sum / sumsq, affine
            # folded into per-channel scale & bias, LeakyReLU as one maximum.
            inv_n = 1.0 / HW
            mean = jnp.sum(acc, axis=0, keepdims=True) * inv_n
            ex2 = jnp.sum(acc * acc, axis=0, keepdims=True) * inv_n
            var = jnp.maximum(ex2 - mean * mean, 0.0)
            scale = g_ref[...] * jax.lax.rsqrt(var + EPS)
            bias = b_ref[...] - mean * scale
            out = acc * scale + bias
            return jnp.maximum(out, NEG_SLOPE * out)

        # Stage 1 and stage 2; the intermediate activation never leaves VMEM.
        h = conv_in_lrelu(x_ref[0], Cin, w1_ref, g1_ref, b1_ref)
        y = conv_in_lrelu(h, Cout, w2_ref, g2_ref, b2_ref)

        # Encoder.forward only consumes the first Cout//2 full-res channels.
        yh_ref[0] = y[:, :Ch]

        # 2x2 average pool via stride-2 VMEM loads; reuse y_scr for the row sum
        # (no separate v_scr scratch / extra full-width f32 pass).
        y_scr[...] = y.reshape(H, W, Cout)
        y_scr[pl.ds(0, Hq), :, :] = (y_scr[pl.ds(0, Hq, stride=2), :, :] +
                                     y_scr[pl.ds(1, Hq, stride=2), :, :])
        yp = (y_scr[pl.ds(0, Hq), pl.ds(0, Wq, stride=2), :] +
              y_scr[pl.ds(0, Hq), pl.ds(1, Wq, stride=2), :]) * 0.25
        yp_ref[0] = yp.astype(jnp.bfloat16)

    return kernel


def _vmem_limit_bytes(H, W, Cin, Cout):
    """Explicit scoped-VMEM budget from the per-step buffer sizes (+ margin)."""
    rup = lambda a, b: -(-a // b) * b
    lane = lambda c: rup(c, 128)
    sub = lambda s: rup(s, 8)
    HW, Ch, Hq, Wq = H * W, Cout // 2, H // 2, W // 2
    Cm = max(Cin, Cout)
    est = 0
    est += 2 * sub(HW) * lane(Cin) * 4                           # x block (double buffered)
    est += 2 * (sub(9 * Cin) + sub(9 * Cout)) * lane(Cout) * 2   # folded bf16 weights
    est += 2 * 4 * 8 * lane(Cout) * 4                            # gamma / beta
    est += 2 * sub(HW) * lane(Ch) * 4                            # y_half out
    est += 2 * Hq * sub(Wq) * lane(Cout) * 2                     # y_pool out (bf16)
    est += (H + 2) * sub(W + 2 * PADL) * lane(Cm) * 4            # halo conv scratch
    est += H * sub(W) * lane(Cout) * 4                           # pool scratch
    est += sub(HW) * lane(9 * Cm) * 4 + 4 * sub(HW) * lane(Cout) * 4   # live temps
    # Never below the framework default; keep headroom under v7x's 64 MiB.
    return int(min(100 * 2 ** 20, max(32 * 2 ** 20, 3 * est)))


# ------------------------------ host glue ------------------------------------

def conv_block_down(x_flat, H, W, w1, g1, b1, w2, g2, b2):
    """One conv_block(downsample=True) on channels-last activations.

    x_flat: (N, H*W, Cin) f32 or bf16 (channels-last, flattened spatial).
    Returns:
      y_half: (N, H*W, Cout//2) f32      -- first half of the full-res channels
      y_pool: (N, H//2, W//2, Cout) bf16 -- 2x2-average-pooled activation
    """
    N, HW, Cin = x_flat.shape
    Cout = w1.shape[0]
    Ch = Cout // 2
    Hq, Wq = H // 2, W // 2
    Cm = max(Cin, Cout)
    assert HW == H * W and H % 2 == 0 and W % 8 == 0

    # Fold the 9 taps into the contraction dim: (9*Ci, Cout) bf16 weights,
    # row order (kh, kw, cin) matching the in-kernel tap concatenation.
    w1m = jnp.transpose(w1, (2, 3, 1, 0)).reshape(9 * Cin, Cout).astype(jnp.bfloat16)
    w2m = jnp.transpose(w2, (2, 3, 1, 0)).reshape(9 * Cout, Cout).astype(jnp.bfloat16)
    g1m = g1.reshape(1, Cout).astype(jnp.float32)
    b1m = b1.reshape(1, Cout).astype(jnp.float32)
    g2m = g2.reshape(1, Cout).astype(jnp.float32)
    b2m = b2.reshape(1, Cout).astype(jnp.float32)

    kernel = _make_block_kernel(H, W, Cin, Cout)
    const2 = lambda n: (0, 0)

    y_half, y_pool = pl.pallas_call(
        kernel,
        out_shape=(jax.ShapeDtypeStruct((N, HW, Ch), jnp.float32),
                   jax.ShapeDtypeStruct((N, Hq, Wq, Cout), jnp.bfloat16)),
        grid=(N,),
        in_specs=[
            pl.BlockSpec((1, HW, Cin), lambda n: (n, 0, 0)),    # activations (streamed)
            pl.BlockSpec((9 * Cin, Cout), const2),              # grid-invariant weights
            pl.BlockSpec((1, Cout), const2),
            pl.BlockSpec((1, Cout), const2),
            pl.BlockSpec((9 * Cout, Cout), const2),
            pl.BlockSpec((1, Cout), const2),
            pl.BlockSpec((1, Cout), const2),
        ],
        out_specs=(pl.BlockSpec((1, HW, Ch), lambda n: (n, 0, 0)),
                   pl.BlockSpec((1, Hq, Wq, Cout), lambda n: (n, 0, 0, 0))),
        scratch_shapes=[pltpu.VMEM((H + 2, W + 2 * PADL, Cm), jnp.float32),
                        pltpu.VMEM((H, W, Cout), jnp.float32)],
        compiler_params=pltpu.CompilerParams(
            dimension_semantics=("parallel",),
            vmem_limit_bytes=_vmem_limit_bytes(H, W, Cin, Cout)),
    )(x_flat, w1m, g1m, b1m, w2m, g2m, b2m)
    return y_half, y_pool


# ------------------------------ Encoder ---------------------------------------

def init_encoder_params(key, in_c, mid_c, layers):
    """Deterministic parameter init (shapes follow the PyTorch module)."""
    params = []
    for _ in range(layers):
        key, k1, k2, k3, k4, k5, k6 = jax.random.split(key, 7)
        params.append(dict(
            w1=jax.random.normal(k1, (mid_c, in_c, 3, 3), jnp.float32) * np.sqrt(2.0 / (9 * in_c)),
            g1=1.0 + 0.1 * jax.random.normal(k2, (mid_c,), jnp.float32),
            b1=0.1 * jax.random.normal(k3, (mid_c,), jnp.float32),
            w2=jax.random.normal(k4, (mid_c, mid_c, 3, 3), jnp.float32) * np.sqrt(2.0 / (9 * mid_c)),
            g2=1.0 + 0.1 * jax.random.normal(k5, (mid_c,), jnp.float32),
            b2=0.1 * jax.random.normal(k6, (mid_c,), jnp.float32),
        ))
        in_c, mid_c = mid_c, mid_c * 2
    return params


def encoder_forward(x_nchw, params):
    """Matches Encoder.forward: list of [x1[:, :C//2], avg_pool2d(x1, 2)] per layer."""
    N, C, H, W = x_nchw.shape
    # Single NCHW -> channels-last conversion at the encoder input boundary.
    x = jnp.transpose(x_nchw, (0, 2, 3, 1)).reshape(N, H * W, C)
    res = []
    for p in params:
        y_half, y_pool = conv_block_down(x, H, W, p["w1"], p["g1"], p["b1"],
                                         p["w2"], p["g2"], p["b2"])
        Cout = y_pool.shape[3]
        x1 = jnp.transpose(y_half.reshape(N, H, W, Cout // 2), (0, 3, 1, 2))
        x2 = jnp.transpose(y_pool.astype(jnp.float32), (0, 3, 1, 2))
        res.append([x1, x2])
        H, W = H // 2, W // 2
        x = y_pool.reshape(N, H * W, Cout)   # bf16 channels-last feeds the next layer
    return res


# ------------------------- pure-JAX reference ---------------------------------

def _ref_stage(x, w, gamma, beta):
    y = jax.lax.conv_general_dilated(x, w, (1, 1), ((1, 1), (1, 1)),
                                     dimension_numbers=("NCHW", "OIHW", "NCHW"))
    mean = y.mean(axis=(2, 3), keepdims=True)
    var = ((y - mean) ** 2).mean(axis=(2, 3), keepdims=True)
    y = (y - mean) / jnp.sqrt(var + EPS)
    y = y * gamma.reshape(1, -1, 1, 1) + beta.reshape(1, -1, 1, 1)
    return jnp.where(y >= 0, y, NEG_SLOPE * y)


def _ref_encoder(x, params):
    res = []
    for p in params:
        h = _ref_stage(x, p["w1"], p["g1"], p["b1"])
        x1 = _ref_stage(h, p["w2"], p["g2"], p["b2"])
        N, C, H, W = x1.shape
        x2 = x1.reshape(N, C, H // 2, 2, W // 2, 2).mean(axis=(3, 5))
        res.append([x1[:, : C // 2, :, :], x2])
        x = x2
    return res


if __name__ == "__main__":
    key = jax.random.PRNGKey(0)
    kx, kp = jax.random.split(key)

    in_c, mid_c, layers = 4, 8, 2
    x = jax.random.normal(kx, (2, in_c, 16, 16), jnp.float32)   # NCHW, like PyTorch
    params = init_encoder_params(kp, in_c, mid_c, layers)

    res = encoder_forward(x, params)
    res = jax.block_until_ready(res)

    # Correctness check vs plain-JAX f32 reference; tolerance covers the bf16
    # MXU operands and bf16 inter-layer activations (accum / stats stay f32).
    ref = _ref_encoder(x, params)
    for (a1, a2), (r1, r2) in zip(res, ref):
        np.testing.assert_allclose(np.asarray(a1), np.asarray(r1), rtol=5e-2, atol=5e-2)
        np.testing.assert_allclose(np.asarray(a2), np.asarray(r2), rtol=5e-2, atol=5e-2)

    print("KERNEL_OK")
</pallas_src>

<mosaic_0001>
module attributes {stable_mosaic.version = 11 : i64} {
  func.func @kernel(%arg0: i32, %arg1: memref<1x256x4xf32, #tpu.memory_space<vmem>>, %arg2: memref<36x8xbf16, #tpu.memory_space<vmem>>, %arg3: memref<1x8xf32, #tpu.memory_space<vmem>>, %arg4: memref<1x8xf32, #tpu.memory_space<vmem>>, %arg5: memref<72x8xbf16, #tpu.memory_space<vmem>>, %arg6: memref<1x8xf32, #tpu.memory_space<vmem>>, %arg7: memref<1x8xf32, #tpu.memory_space<vmem>>, %arg8: memref<1x256x4xf32, #tpu.memory_space<vmem>>, %arg9: memref<1x8x8x8xbf16, #tpu.memory_space<vmem>>, %arg10: memref<18x32x8xf32, #tpu.memory_space<vmem>>, %arg11: memref<16x16x8xf32, #tpu.memory_space<vmem>>) attributes {dimension_semantics = [#tpu.dimension_semantics<parallel>], iteration_bounds = array<i64: 2>, scalar_prefetch = 0 : i64, scratch_operands = 2 : i64, tpu.core_type = #tpu.core_type<tc>, window_params = [{transform_indices = @transform_0, window_bounds = array<i64: 1, 256, 4>}, {pipeline_mode = #tpu.pipeline_mode<synchronous>, transform_indices = @transform_1, window_bounds = array<i64: 36, 8>}, {pipeline_mode = #tpu.pipeline_mode<synchronous>, transform_indices = @transform_2, window_bounds = array<i64: 1, 8>}, {pipeline_mode = #tpu.pipeline_mode<synchronous>, transform_indices = @transform_3, window_bounds = array<i64: 1, 8>}, {pipeline_mode = #tpu.pipeline_mode<synchronous>, transform_indices = @transform_4, window_bounds = array<i64: 72, 8>}, {pipeline_mode = #tpu.pipeline_mode<synchronous>, transform_indices = @transform_5, window_bounds = array<i64: 1, 8>}, {pipeline_mode = #tpu.pipeline_mode<synchronous>, transform_indices = @transform_6, window_bounds = array<i64: 1, 8>}, {transform_indices = @transform_7, window_bounds = array<i64: 1, 256, 4>}, {transform_indices = @transform_8, window_bounds = array<i64: 1, 8, 8, 8>}]} {
    %cst = arith.constant 0.000000e+00 : f32
    %0 = vector.broadcast %cst : f32 to vector<1x32x8xf32>
    %cst_0 = arith.constant 0.000000e+00 : f32
    %1 = vector.broadcast %cst_0 : f32 to vector<18x8x8xf32>
    %c0 = arith.constant 0 : index
    %c0_1 = arith.constant 0 : index
    %c0_2 = arith.constant 0 : index
    %2 = vector.load %arg10[%c0, %c0_1, %c0_2] : memref<18x32x8xf32, #tpu.memory_space<vmem>>, vector<1x32x8xf32>
    tpu.vector_store %arg10[%c0, %c0_1, %c0_2], %0 {strides = array<i32>} : memref<18x32x8xf32, #tpu.memory_space<vmem>>, vector<1x32x8xf32>,
    %c17 = arith.constant 17 : index
    %c0_3 = arith.constant 0 : index
    %c0_4 = arith.constant 0 : index
    %3 = vector.load %arg10[%c17, %c0_3, %c0_4] : memref<18x32x8xf32, #tpu.memory_space<vmem>>, vector<1x32x8xf32>
    tpu.vector_store %arg10[%c17, %c0_3, %c0_4], %0 {strides = array<i32>} : memref<18x32x8xf32, #tpu.memory_space<vmem>>, vector<1x32x8xf32>,
    %c0_5 = arith.constant 0 : index
    %c0_6 = arith.constant 0 : index
    %c0_7 = arith.constant 0 : index
    %4 = vector.load %arg10[%c0_5, %c0_6, %c0_7] : memref<18x32x8xf32, #tpu.memory_space<vmem>>, vector<18x8x8xf32>
    tpu.vector_store %arg10[%c0_5, %c0_6, %c0_7], %1 {strides = array<i32>} : memref<18x32x8xf32, #tpu.memory_space<vmem>>, vector<18x8x8xf32>,
    %c0_8 = arith.constant 0 : index
    %c24 = arith.constant 24 : index
    %c0_9 = arith.constant 0 : index
    %5 = vector.load %arg10[%c0_8, %c24, %c0_9] : memref<18x32x8xf32, #tpu.memory_space<vmem>>, vector<18x8x8xf32>
    tpu.vector_store %arg10[%c0_8, %c24, %c0_9], %1 {strides = array<i32>} : memref<18x32x8xf32, #tpu.memory_space<vmem>>, vector<18x8x8xf32>,
    %c0_10 = arith.constant 0 : index
    %c0_11 = arith.constant 0 : index
    %c0_12 = arith.constant 0 : index
    %6 = vector.load %arg1[%c0_10, %c0_11, %c0_12] : memref<1x256x4xf32, #tpu.memory_space<vmem>>, vector<1x256x4xf32>
    %7 = vector.shape_cast %6 : vector<1x256x4xf32> to vector<256x4xf32>
    %8 = vector.shape_cast %7 : vector<256x4xf32> to vector<16x16x4xf32>
    %c1 = arith.constant 1 : index
    %c8 = arith.constant 8 : index
    %c0_13 = arith.constant 0 : index
    %9 = vector.load %arg10[%c1, %c8, %c0_13] : memref<18x32x8xf32, #tpu.memory_space<vmem>>, vector<16x16x4xf32>
    tpu.vector_store %arg10[%c1, %c8, %c0_13], %8 {strides = array<i32>} : memref<18x32x8xf32, #tpu.memory_space<vmem>>, vector<16x16x4xf32>,
    %c0_14 = arith.constant 0 : index
    %c7 = arith.constant 7 : index
    %c0_15 = arith.constant 0 : index
    %10 = vector.load %arg10[%c0_14, %c7, %c0_15] : memref<18x32x8xf32, #tpu.memory_space<vmem>>, vector<16x16x4xf32>
    %c0_16 = arith.constant 0 : index
    %c8_17 = arith.constant 8 : index
    %c0_18 = arith.constant 0 : index
    %11 = vector.load %arg10[%c0_16, %c8_17, %c0_18] : memref<18x32x8xf32, #tpu.memory_space<vmem>>, vector<16x16x4xf32>
    %c0_19 = arith.constant 0 : index
    %c9 = arith.constant 9 : index
    %c0_20 = arith.constant 0 : index
    %12 = vector.load %arg10[%c0_19, %c9, %c0_20] : memref<18x32x8xf32, #tpu.memory_space<vmem>>, vector<16x16x4xf32>
    %c1_21 = arith.constant 1 : index
    %c7_22 = arith.constant 7 : index
    %c0_23 = arith.constant 0 : index
    %13 = vector.load %arg10[%c1_21, %c7_22, %c0_23] : memref<18x32x8xf32, #tpu.memory_space<vmem>>, vector<16x16x4xf32>
    %c1_24 = arith.constant 1 : index
    %c8_25 = arith.constant 8 : index
    %c0_26 = arith.constant 0 : index
    %14 = vector.load %arg10[%c1_24, %c8_25, %c0_26] : memref<18x32x8xf32, #tpu.memory_space<vmem>>, vector<16x16x4xf32>
    %c1_27 = arith.constant 1 : index
    %c9_28 = arith.constant 9 : index
    %c0_29 = arith.constant 0 : index
    %15 = vector.load %arg10[%c1_27, %c9_28, %c0_29] : memref<18x32x8xf32, #tpu.memory_space<vmem>>, vector<16x16x4xf32>
    %c2 = arith.constant 2 : index
    %c7_30 = arith.constant 7 : index
    %c0_31 = arith.constant 0 : index
    %16 = vector.load %arg10[%c2, %c7_30, %c0_31] : memref<18x32x8xf32, #tpu.memory_space<vmem>>, vector<16x16x4xf32>
    %c2_32 = arith.constant 2 : index
    %c8_33 = arith.constant 8 : index
    %c0_34 = arith.constant 0 : index
    %17 = vector.load %arg10[%c2_32, %c8_33, %c0_34] : memref<18x32x8xf32, #tpu.memory_space<vmem>>, vector<16x16x4xf32>
    %c2_35 = arith.constant 2 : index
    %c9_36 = arith.constant 9 : index
    %c0_37 = arith.constant 0 : index
    %18 = vector.load %arg10[%c2_35, %c9_36, %c0_37] : memref<18x32x8xf32, #tpu.memory_space<vmem>>, vector<16x16x4xf32>
    %19 = tpu.concatenate %10, %11, %12, %13, %14, %15, %16, %17, %18 in 2 : vector<16x16x4xf32>, vector<16x16x4xf32>, vector<16x16x4xf32>, vector<16x16x4xf32>, vector<16x16x4xf32>, vector<16x16x4xf32>, vector<16x16x4xf32>, vector<16x16x4xf32>, vector<16x16x4xf32> -> vector<16x16x36xf32>
    %20 = vector.shape_cast %19 : vector<16x16x36xf32> to vector<256x36xf32>
    %21 = arith.truncf %20 : vector<256x36xf32> to vector<256x36xbf16>
    %c0_38 = arith.constant 0 : index
    %c0_39 = arith.constant 0 : index
    %22 = vector.load %arg2[%c0_38, %c0_39] : memref<36x8xbf16, #tpu.memory_space<vmem>>, vector<36x8xbf16>
    %cst_40 = arith.constant dense<0.000000e+00> : vector<256x8xf32>
    %23 = tpu.matmul %21, %22, %cst_40 {dimension_numbers = #tpu.dot_dimension_numbers<[1], [0], [0], [1], [0, 0, 1, 1], [], []>} : vector<256x36xbf16>, vector<36x8xbf16>, vector<256x8xf32> -> vector<256x8xf32>
    %cst_41 = arith.constant dense<0.000000e+00> : vector<8xf32>
    %24 = vector.multi_reduction <add>, %23, %cst_41 [0] : vector<256x8xf32> to vector<8xf32>
    %25 = vector.shape_cast %24 : vector<8xf32> to vector<1x8xf32>
    %cst_42 = arith.constant 3.906250e-03 : f32
    %26 = vector.broadcast %cst_42 : f32 to vector<1x8xf32>
    %27 = arith.mulf %25, %26 : vector<1x8xf32>
    %28 = arith.mulf %23, %23 : vector<256x8xf32>
    %cst_43 = arith.constant dense<0.000000e+00> : vector<8xf32>
    %29 = vector.multi_reduction <add>, %28, %cst_43 [0] : vector<256x8xf32> to vector<8xf32>
    %30 = vector.shape_cast %29 : vector<8xf32> to vector<1x8xf32>
    %cst_44 = arith.constant 3.906250e-03 : f32
    %31 = vector.broadcast %cst_44 : f32 to vector<1x8xf32>
    %32 = arith.mulf %30, %31 : vector<1x8xf32>
    %33 = arith.mulf %27, %27 : vector<1x8xf32>
    %34 = arith.subf %32, %33 : vector<1x8xf32>
    %cst_45 = arith.constant 0.000000e+00 : f32
    %35 = vector.broadcast %cst_45 : f32 to vector<1x8xf32>
    %36 = arith.maximumf %34, %35 : vector<1x8xf32>
    %c0_46 = arith.constant 0 : index
    %c0_47 = arith.constant 0 : index
    %37 = vector.load %arg3[%c0_46, %c0_47] : memref<1x8xf32, #tpu.memory_space<vmem>>, vector<1x8xf32>
    %cst_48 = arith.constant 9.99999974E-6 : f32
    %38 = vector.broadcast %cst_48 : f32 to vector<1x8xf32>
    %39 = arith.addf %36, %38 : vector<1x8xf32>
    %40 = math.rsqrt %39 : vector<1x8xf32>
    %41 = arith.mulf %37, %40 : vector<1x8xf32>
    %c0_49 = arith.constant 0 : index
    %c0_50 = arith.constant 0 : index
    %42 = vector.load %arg4[%c0_49, %c0_50] : memref<1x8xf32, #tpu.memory_space<vmem>>, vector<1x8xf32>
    %43 = arith.mulf %27, %41 : vector<1x8xf32>
    %44 = arith.subf %42, %43 : vector<1x8xf32>
    %45 = vector.broadcast %41 : vector<1x8xf32> to vector<256x8xf32>
    %46 = arith.mulf %23, %45 : vector<256x8xf32>
    %47 = vector.broadcast %44 : vector<1x8xf32> to vector<256x8xf32>
    %48 = arith.addf %46, %47 : vector<256x8xf32>
    %cst_51 = arith.constant 0.00999999977 : f32
    %49 = vector.broadcast %cst_51 : f32 to vector<256x8xf32>
    %50 = arith.mulf %49, %48 : vector<256x8xf32>
    %51 = arith.maximumf %48, %50 : vector<256x8xf32>
    %52 = vector.shape_cast %51 : vector<256x8xf32> to vector<16x16x8xf32>
    %c1_52 = arith.constant 1 : index
    %c8_53 = arith.constant 8 : index
    %c0_54 = arith.constant 0 : index
    %53 = vector.load %arg10[%c1_52, %c8_53, %c0_54] : memref<18x32x8xf32, #tpu.memory_space<vmem>>, vector<16x16x8xf32>
    tpu.vector_store %arg10[%c1_52, %c8_53, %c0_54], %52 {strides = array<i32>} : memref<18x32x8xf32, #tpu.memory_space<vmem>>, vector<16x16x8xf32>,
    %c0_55 = arith.constant 0 : index
    %c7_56 = arith.constant 7 : index
    %c0_57 = arith.constant 0 : index
    %54 = vector.load %arg10[%c0_55, %c7_56, %c0_57] : memref<18x32x8xf32, #tpu.memory_space<vmem>>, vector<16x16x8xf32>
    %c0_58 = arith.constant 0 : index
    %c8_59 = arith.constant 8 : index
    %c0_60 = arith.constant 0 : index
    %55 = vector.load %arg10[%c0_58, %c8_59, %c0_60] : memref<18x32x8xf32, #tpu.memory_space<vmem>>, vector<16x16x8xf32>
    %c0_61 = arith.constant 0 : index
    %c9_62 = arith.constant 9 : index
    %c0_63 = arith.constant 0 : index
    %56 = vector.load %arg10[%c0_61, %c9_62, %c0_63] : memref<18x32x8xf32, #tpu.memory_space<vmem>>, vector<16x16x8xf32>
    %c1_64 = arith.constant 1 : index
    %c7_65 = arith.constant 7 : index
    %c0_66 = arith.constant 0 : index
    %57 = vector.load %arg10[%c1_64, %c7_65, %c0_66] : memref<18x32x8xf32, #tpu.memory_space<vmem>>, vector<16x16x8xf32>
    %c1_67 = arith.constant 1 : index
    %c8_68 = arith.constant 8 : index
    %c0_69 = arith.constant 0 : index
    %58 = vector.load %arg10[%c1_67, %c8_68, %c0_69] : memref<18x32x8xf32, #tpu.memory_space<vmem>>, vector<16x16x8xf32>
    %c1_70 = arith.constant 1 : index
    %c9_71 = arith.constant 9 : index
    %c0_72 = arith.constant 0 : index
    %59 = vector.load %arg10[%c1_70, %c9_71, %c0_72] : memref<18x32x8xf32, #tpu.memory_space<vmem>>, vector<16x16x8xf32>
    %c2_73 = arith.constant 2 : index
    %c7_74 = arith.constant 7 : index
    %c0_75 = arith.constant 0 : index
    %60 = vector.load %arg10[%c2_73, %c7_74, %c0_75] : memref<18x32x8xf32, #tpu.memory_space<vmem>>, vector<16x16x8xf32>
    %c2_76 = arith.constant 2 : index
    %c8_77 = arith.constant 8 : index
    %c0_78 = arith.constant 0 : index
    %61 = vector.load %arg10[%c2_76, %c8_77, %c0_78] : memref<18x32x8xf32, #tpu.memory_space<vmem>>, vector<16x16x8xf32>
    %c2_79 = arith.constant 2 : index
    %c9_80 = arith.constant 9 : index
    %c0_81 = arith.constant 0 : index
    %62 = vector.load %arg10[%c2_79, %c9_80, %c0_81] : memref<18x32x8xf32, #tpu.memory_space<vmem>>, vector<16x16x8xf32>
    %63 = tpu.concatenate %54, %55, %56, %57, %58, %59, %60, %61, %62 in 2 : vector<16x16x8xf32>, vector<16x16x8xf32>, vector<16x16x8xf32>, vector<16x16x8xf32>, vector<16x16x8xf32>, vector<16x16x8xf32>, vector<16x16x8xf32>, vector<16x16x8xf32>, vector<16x16x8xf32> -> vector<16x16x72xf32>
    %64 = vector.shape_cast %63 : vector<16x16x72xf32> to vector<256x72xf32>
    %65 = arith.truncf %64 : vector<256x72xf32> to vector<256x72xbf16>
    %c0_82 = arith.constant 0 : index
    %c0_83 = arith.constant 0 : index
    %66 = vector.load %arg5[%c0_82, %c0_83] : memref<72x8xbf16, #tpu.memory_space<vmem>>, vector<72x8xbf16>
    %cst_84 = arith.constant dense<0.000000e+00> : vector<256x8xf32>
    %67 = tpu.matmul %65, %66, %cst_84 {dimension_numbers = #tpu.dot_dimension_numbers<[1], [0], [0], [1], [0, 0, 1, 1], [], []>} : vector<256x72xbf16>, vector<72x8xbf16>, vector<256x8xf32> -> vector<256x8xf32>
    %cst_85 = arith.constant dense<0.000000e+00> : vector<8xf32>
    %68 = vector.multi_reduction <add>, %67, %cst_85 [0] : vector<256x8xf32> to vector<8xf32>
    %69 = vector.shape_cast %68 : vector<8xf32> to vector<1x8xf32>
    %cst_86 = arith.constant 3.906250e-03 : f32
    %70 = vector.broadcast %cst_86 : f32 to vector<1x8xf32>
    %71 = arith.mulf %69, %70 : vector<1x8xf32>
    %72 = arith.mulf %67, %67 : vector<256x8xf32>
    %cst_87 = arith.constant dense<0.000000e+00> : vector<8xf32>
    %73 = vector.multi_reduction <add>, %72, %cst_87 [0] : vector<256x8xf32> to vector<8xf32>
    %74 = vector.shape_cast %73 : vector<8xf32> to vector<1x8xf32>
    %cst_88 = arith.constant 3.906250e-03 : f32
    %75 = vector.broadcast %cst_88 : f32 to vector<1x8xf32>
    %76 = arith.mulf %74, %75 : vector<1x8xf32>
    %77 = arith.mulf %71, %71 : vector<1x8xf32>
    %78 = arith.subf %76, %77 : vector<1x8xf32>
    %cst_89 = arith.constant 0.000000e+00 : f32
    %79 = vector.broadcast %cst_89 : f32 to vector<1x8xf32>
    %80 = arith.maximumf %78, %79 : vector<1x8xf32>
    %c0_90 = arith.constant 0 : index
    %c0_91 = arith.constant 0 : index
    %81 = vector.load %arg6[%c0_90, %c0_91] : memref<1x8xf32, #tpu.memory_space<vmem>>, vector<1x8xf32>
    %cst_92 = arith.constant 9.99999974E-6 : f32
    %82 = vector.broadcast %cst_92 : f32 to vector<1x8xf32>
    %83 = arith.addf %80, %82 : vector<1x8xf32>
    %84 = math.rsqrt %83 : vector<1x8xf32>
    %85 = arith.mulf %81, %84 : vector<1x8xf32>
    %c0_93 = arith.constant 0 : index
    %c0_94 = arith.constant 0 : index
    %86 = vector.load %arg7[%c0_93, %c0_94] : memref<1x8xf32, #tpu.memory_space<vmem>>, vector<1x8xf32>
    %87 = arith.mulf %71, %85 : vector<1x8xf32>
    %88 = arith.subf %86, %87 : vector<1x8xf32>
    %89 = vector.broadcast %85 : vector<1x8xf32> to vector<256x8xf32>
    %90 = arith.mulf %67, %89 : vector<256x8xf32>
    %91 = vector.broadcast %88 : vector<1x8xf32> to vector<256x8xf32>
    %92 = arith.addf %90, %91 : vector<256x8xf32>
    %cst_95 = arith.constant 0.00999999977 : f32
    %93 = vector.broadcast %cst_95 : f32 to vector<256x8xf32>
    %94 = arith.mulf %93, %92 : vector<256x8xf32>
    %95 = arith.maximumf %92, %94 : vector<256x8xf32>
    %96 = vector.extract_strided_slice %95 {offsets = [0, 0], sizes = [256, 4], strides = [1, 1]} : vector<256x8xf32> to vector<256x4xf32>
    %c0_96 = arith.constant 0 : index
    %c0_97 = arith.constant 0 : index
    %c0_98 = arith.constant 0 : index
    %97 = vector.load %arg8[%c0_96, %c0_97, %c0_98] : memref<1x256x4xf32, #tpu.memory_space<vmem>>, vector<1x256x4xf32>
    %98 = vector.shape_cast %97 : vector<1x256x4xf32> to vector<256x4xf32>
    %99 = vector.shape_cast %96 : vector<256x4xf32> to vector<1x256x4xf32>
    tpu.vector_store %arg8[%c0_96, %c0_97, %c0_98], %99 {strides = array<i32>} : memref<1x256x4xf32, #tpu.memory_space<vmem>>, vector<1x256x4xf32>,
    %100 = vector.shape_cast %95 : vector<256x8xf32> to vector<16x16x8xf32>
    %c0_99 = arith.constant 0 : index
    %c0_100 = arith.constant 0 : index
    %c0_101 = arith.constant 0 : index
    %101 = vector.load %arg11[%c0_99, %c0_100, %c0_101] : memref<16x16x8xf32, #tpu.memory_space<vmem>>, vector<16x16x8xf32>
    tpu.vector_store %arg11[%c0_99, %c0_100, %c0_101], %100 {strides = array<i32>} : memref<16x16x8xf32, #tpu.memory_space<vmem>>, vector<16x16x8xf32>,
    %c0_102 = arith.constant 0 : index
    %c0_103 = arith.constant 0 : index
    %c0_104 = arith.constant 0 : index
    %102 = tpu.strided_load %arg11[%c0_102, %c0_103, %c0_104] {strides = array<i32: 2, 1, 1>} : memref<16x16x8xf32, #tpu.memory_space<vmem>>, vector<8x16x8xf32>
    %c1_105 = arith.constant 1 : index
    %c0_106 = arith.constant 0 : index
    %c0_107 = arith.constant 0 : index
    %103 = tpu.strided_load %arg11[%c1_105, %c0_106, %c0_107] {strides = array<i32: 2, 1, 1>} : memref<16x16x8xf32, #tpu.memory_space<vmem>>, vector<8x16x8xf32>
    %104 = arith.addf %102, %103 : vector<8x16x8xf32>
    %c0_108 = arith.constant 0 : index
    %c0_109 = arith.constant 0 : index
    %c0_110 = arith.constant 0 : index
    %105 = vector.load %arg11[%c0_108, %c0_109, %c0_110] : memref<16x16x8xf32, #tpu.memory_space<vmem>>, vector<8x16x8xf32>
    tpu.vector_store %arg11[%c0_108, %c0_109, %c0_110], %104 {strides = array<i32>} : memref<16x16x8xf32, #tpu.memory_space<vmem>>, vector<8x16x8xf32>,
    %c0_111 = arith.constant 0 : index
    %c0_112 = arith.constant 0 : index
    %c0_113 = arith.constant 0 : index
    %106 = tpu.strided_load %arg11[%c0_111, %c0_112, %c0_113] {strides = array<i32: 1, 2, 1>} : memref<16x16x8xf32, #tpu.memory_space<vmem>>, vector<8x8x8xf32>
    %c0_114 = arith.constant 0 : index
    %c1_115 = arith.constant 1 : index
    %c0_116 = arith.constant 0 : index
    %107 = tpu.strided_load %arg11[%c0_114, %c1_115, %c0_116] {strides = array<i32: 1, 2, 1>} : memref<16x16x8xf32, #tpu.memory_space<vmem>>, vector<8x8x8xf32>
    %108 = arith.addf %106, %107 : vector<8x8x8xf32>
    %cst_117 = arith.constant 2.500000e-01 : f32
    %109 = vector.broadcast %cst_117 : f32 to vector<8x8x8xf32>
    %110 = arith.mulf %108, %109 : vector<8x8x8xf32>
    %111 = arith.truncf %110 : vector<8x8x8xf32> to vector<8x8x8xbf16>
    %c0_118 = arith.constant 0 : index
    %c0_119 = arith.constant 0 : index
    %c0_120 = arith.constant 0 : index
    %c0_121 = arith.constant 0 : index
    %112 = vector.load %arg9[%c0_118, %c0_119, %c0_120, %c0_121] : memref<1x8x8x8xbf16, #tpu.memory_space<vmem>>, vector<1x8x8x8xbf16>
    %113 = vector.shape_cast %112 : vector<1x8x8x8xbf16> to vector<8x8x8xbf16>
    %114 = vector.shape_cast %111 : vector<8x8x8xbf16> to vector<1x8x8x8xbf16>
    tpu.vector_store %arg9[%c0_118, %c0_119, %c0_120, %c0_121], %114 {strides = array<i32>} : memref<1x8x8x8xbf16, #tpu.memory_space<vmem>>, vector<1x8x8x8xbf16>,
    return
  }
  func.func @transform_0(%arg0: i32) -> (i32, i32, i32) {
    %c0_i32 = arith.constant 0 : i32
    %c0_i32_0 = arith.constant 0 : i32
    %c0_i32_1 = arith.constant 0 : i32
    return %arg0, %c0_i32, %c0_i32_0 : i32, i32, i32
  }
  func.func @transform_1(%arg0: i32) -> (i32, i32) {
    %c0_i32 = arith.constant 0 : i32
    %c0_i32_0 = arith.constant 0 : i32
    %c0_i32_1 = arith.constant 0 : i32
    return %c0_i32, %c0_i32_0 : i32, i32
  }
  func.func @transform_2(%arg0: i32) -> (i32, i32) {
    %c0_i32 = arith.constant 0 : i32
    %c0_i32_0 = arith.constant 0 : i32
    %c0_i32_1 = arith.constant 0 : i32
    return %c0_i32, %c0_i32_0 : i32, i32
  }
  func.func @transform_3(%arg0: i32) -> (i32, i32) {
    %c0_i32 = arith.constant 0 : i32
    %c0_i32_0 = arith.constant 0 : i32
    %c0_i32_1 = arith.constant 0 : i32
    return %c0_i32, %c0_i32_0 : i32, i32
  }
  func.func @transform_4(%arg0: i32) -> (i32, i32) {
    %c0_i32 = arith.constant 0 : i32
    %c0_i32_0 = arith.constant 0 : i32
    %c0_i32_1 = arith.constant 0 : i32
    return %c0_i32, %c0_i32_0 : i32, i32
  }
  func.func @transform_5(%arg0: i32) -> (i32, i32) {
    %c0_i32 = arith.constant 0 : i32
    %c0_i32_0 = arith.constant 0 : i32
    %c0_i32_1 = arith.constant 0 : i32
    return %c0_i32, %c0_i32_0 : i32, i32
  }
  func.func @transform_6(%arg0: i32) -> (i32, i32) {
    %c0_i32 = arith.constant 0 : i32
    %c0_i32_0 = arith.constant 0 : i32
    %c0_i32_1 = arith.constant 0 : i32
    return %c0_i32, %c0_i32_0 : i32, i32
  }
  func.func @transform_7(%arg0: i32) -> (i32, i32, i32) {
    %c0_i32 = arith.constant 0 : i32
    %c0_i32_0 = arith.constant 0 : i32
    %c0_i32_1 = arith.constant 0 : i32
    return %arg0, %c0_i32, %c0_i32_0 : i32, i32, i32
  }
  func.func @transform_8(%arg0: i32) -> (i32, i32, i32, i32) {
    %c0_i32 = arith.constant 0 : i32
    %c0_i32_0 = arith.constant 0 : i32
    %c0_i32_1 = arith.constant 0 : i32
    %c0_i32_2 = arith.constant 0 : i32
    return %arg0, %c0_i32, %c0_i32_0, %c0_i32_1 : i32, i32, i32, i32
  }
}

</mosaic_0001>

<bundles_post_ra>
// kernel: tpu_custom_call.1
= control target key start
LH: loop header
LB: loop body
LE: loop exit
PB: predicated region body
PF: predicated region fallthrough
CT: control target
= control target key end

     0   :  { %14 = vsyncpa [#allocation5], 0  ;;  %s9527_s0 = inlined_call_operand.vmem [shape: f32[2,256,4], index: 0, kind: input, shape index: {}]   ;;  %s9528_s1 = inlined_call_operand.vmem [shape: bf16[36,8], index: 1, kind: input, shape index: {}]   ;;  %s9529_s2 = inlined_call_operand.vmem [shape: f32[1,8], index: 2, kind: input, shape index: {}]   ;;  %s9530_s3 = inlined_call_operand.vmem [shape: f32[1,8], index: 3, kind: input, shape index: {}]   ;;  %s9531_s4 = inlined_call_operand.vmem [shape: bf16[72,8], index: 4, kind: input, shape index: {}]   ;;  %s9532_s5 = inlined_call_operand.vmem [shape: f32[1,8], index: 5, kind: input, shape index: {}]   ;;  %s9533_s6 = inlined_call_operand.vmem [shape: f32[1,8], index: 6, kind: input, shape index: {}]   ;;  %s9534_s7 = inlined_call_operand.vmem [shape: f32[2,256,4], index: 7, kind: output, shape index: {0}]   ;;  %s9535_s8 = inlined_call_operand.hbm [shape: bf16[2,8,8,8], index: 8, kind: output, shape index: {1}]  }
   0x1   :  { %16 = vsyncpa [#allocation5 + $0x1], 0  ;;  %s6747_s27 = smov 0   ;;  %s6749_s28 = smov 0  }
   0x2   :  { %s6751_s29 = smov 0   ;;  %s6753_s30 = smov 0  }
   0x3 LB: > { %s6768_s9 = sadd.s32 4294967295, %s6686_s30   ;;  %s5071_s10 = sadd.s32 4294967294, %s6686_s30   ;;  %s6686_s30 = sphi %s6753_s30, %s9649_s30   ;;  %s6682_s29 = sphi %s6751_s29, %s9648_s29   ;;  %s6678_s28 = sphi %s6749_s28, %s9647_s28   ;;  %s6674_s27 = sphi %s6747_s27, %s9646_s27  }
   0x4   : > { %s6772_s11 = sadd.s32 1, %s6686_s30   ;;  %s207_s12 = sadd.s32 1, %s6682_s29 }
   0x5   : > { %s204_s13 = ssub.s32 %s6686_s30, %s6772_s11  ;;  %p217_p0 = scmp.ne.s32.totalorder %s6682_s29, %s6678_s28 }
   0x6   : > { %p205_p1 = scmp.eq.s32.totalorder %s204_s13, 0  ;;  %p218_p2 = scmp.eq.s32.totalorder %s6768_s9, 1 }
   0x7   : > { %p223_p3 = scmp.ne.s32.totalorder %s6678_s28, %s6674_s27  ;;  %p224_p4 = scmp.eq.s32.totalorder %s5071_s10, 1 }
   0x8   : > { %s6783_s14 = scalar_select %p205_p1, %s6682_s29, %s207_s12  }
   0x9   : > { %p6785_p5 = por %p218_p2, %p217_p0  ;;  %p6789_p6 = por %p224_p4, %p223_p3 }
   0xa   : > { %p5074_p7 = scmp.ge.s32.totalorder %s6686_s30, 1  ;;  %p268_p8 = scmp.lt.s32.totalorder %s6686_s30, 3 }
   0xc   : > { %p269_p9 = pnand %p5074_p7, %p268_p8 }
   0xe   : > { %272 = sbr.rel (%p269_p9) target bundleno = 1444 (0x5a4), region = 48 }
  0x15   : > { %vm318_vm0 = vcmask 64512   ;;  %p307_p10 = scmp.lt.s32.totalorder %s6768_s9, 1  ;;  %v6688_v0 = vmov 0.0   ;;  %vm397_vm1 = vcmask 31744   ;;  %s6689_s22 = smov 4   ;;  %vm2090_vm2 = vcmask 1041408  }
  0x16   : > { %320 = vst.msk [vmem:[#allocation2 + $0x8] sm:$0xff] %vm318_vm0, %v6688_v0  ;;  %321 = vst.msk [vmem:[#allocation2 + $0x10] sm:$0xff] %vm318_vm0, %v6688_v0  ;;  %s6690_s23 = smov 8   ;;  %s6691_s24 = smov 12   ;;  %vm1807_vm3 = vcmask 97280   ;;  %vm1840_vm4 = vcmask 130048  }
  0x17   : > { %319 = vst.msk [vmem:[#allocation2] sm:$0xff] %vm318_vm0, %v6688_v0  ;;  %322 = vst.msk [vmem:[#allocation2 + $0x18] sm:$0xff] %vm318_vm0, %v6688_v0  ;;  %s6839_s17 = scalar_select %p307_p10, %s6768_s9, 1  ;;  %vm1873_vm5 = vcmask 162816   ;;  %vm1906_vm6 = vcmask 195584   ;;  %vm1939_vm7 = vcmask 228352  }
  0x18   : > { %324 = vst.msk [vmem:[#allocation2 + $0x220] sm:$0xff] %vm318_vm0, %v6688_v0  ;;  %325 = vst.msk [vmem:[#allocation2 + $0x228] sm:$0xff] %vm318_vm0, %v6688_v0  ;;  %s6692_s25 = smov 16   ;;  %s6693_s19 = smov 20   ;;  %vm1972_vm8 = vcmask 261120   ;;  %vm2041_vm9 = vcmask 293888  }
  0x19   : > { %326 = vst.msk [vmem:[#allocation2 + $0x230] sm:$0xff] %vm318_vm0, %v6688_v0  ;;  %327 = vst.msk [vmem:[#allocation2 + $0x238] sm:$0xff] %vm318_vm0, %v6688_v0  ;;  %s5125_s18 = sshll.u32 %s6839_s17, 8  ;;  %s6695_s26 = smov 28   ;;  %vm4282_vm10 = vcmask 1043456   ;;  %vm4049_vm11 = vcmask 326656  }
  0x1a   : > { %329 = vst.msk [vmem:[#allocation2 + $0x20] sm:$0xff] %vm318_vm0, %v6688_v0  ;;  %330 = vst.msk [vmem:[#allocation2 + $0x40] sm:$0xff] %vm318_vm0, %v6688_v0  ;;  %s6851_s21 = scalar_lea.vmem %s9527_s0, %s5125_s18  ;;  %s6696_s10 = smov 32   ;;  %vm4082_vm12 = vcmask 392192   ;;  %vm4115_vm13 = vcmask 457728   ;;  %vm4148_vm14 = vcmask 523264  }
  0x1b   : > { %331 = vst.msk [vmem:[#allocation2 + $0x60] sm:$0xff] %vm318_vm0, %v6688_v0  ;;  %332 = vst.msk [vmem:[#allocation2 + $0x80] sm:$0xff] %vm318_vm0, %v6688_v0  ;;  %v366_v1 = vld [vmem:[%s6851_s21 + $0x10] sm:$0xff]  ;;  %v367_v2 = vld [vmem:[%s6851_s21 + $0x18] sm:$0xff]  ;;  %s6697_s13 = smov 40   ;;  %s6699_s12 = smov 56  }
  0x1c   : > { %333 = vst.msk [vmem:[#allocation2 + $0xa0] sm:$0xff] %vm318_vm0, %v6688_v0  ;;  %334 = vst.msk [vmem:[#allocation2 + $0xc0] sm:$0xff] %vm318_vm0, %v6688_v0  ;;  %v364_v3 = vld [vmem:[%s6851_s21] sm:$0xff]  ;;  %v365_v4 = vld [vmem:[%s6851_s21 + $0x8] sm:$0xff]  ;;  %vm4233_vm15 = vcmask 588800   ;;  %s304_s17 = sand.u32 1, %s6678_s28  }
  0x1d   : > { %335 = vst.msk [vmem:[#allocation2 + $0xe0] sm:$0xff] %vm318_vm0, %v6688_v0  ;;  %336 = vst.msk [vmem:[#allocation2 + $0x100] sm:$0xff] %vm318_vm0, %v6688_v0  ;;  %v368_v5 = vld [vmem:[%s6851_s21 + $0x20] sm:$0xff]  ;;  %v369_v6 = vld [vmem:[%s6851_s21 + $0x28] sm:$0xff]  ;;  %s5127_s20 = sshll.u32 %s6768_s9, 9  ;;  %s9483_s9 = scalar_lea.sflag [#allocation5], %s304_s17 }
  0x1e   : > { %337 = vst.msk [vmem:[#allocation2 + $0x120] sm:$0xff] %vm318_vm0, %v6688_v0  ;;  %338 = vst.msk [vmem:[#allocation2 + $0x140] sm:$0xff] %vm318_vm0, %v6688_v0  ;;  %v462_v7 = vld [vmem:[#allocation2 + $0x8] sm:$0xff]  ;;  %v463_v8 = vld [vmem:[#allocation2 + $0x10] sm:$0xff] }
  0x1f   : > { %339 = vst.msk [vmem:[#allocation2 + $0x160] sm:$0xff] %vm318_vm0, %v6688_v0  ;;  %340 = vst.msk [vmem:[#allocation2 + $0x180] sm:$0xff] %vm318_vm0, %v6688_v0  ;;  %v370_v9 = vld [vmem:[%s6851_s21 + $0x30] sm:$0xff]  ;;  %v5302_v10 = vpack.i.bf16 %v463_v8, %v462_v7  ;;  %v371_v11 = vld [vmem:[%s6851_s21 + $0x38] sm:$0xff] }
  0x20   : > { %341 = vst.msk [vmem:[#allocation2 + $0x1a0] sm:$0xff] %vm318_vm0, %v6688_v0  ;;  %342 = vst.msk [vmem:[#allocation2 + $0x1c0] sm:$0xff] %vm318_vm0, %v6688_v0  ;;  %v372_v12 = vld [vmem:[%s6851_s21 + $0x40] sm:$0xff]  ;;  %v373_v13 = vld [vmem:[%s6851_s21 + $0x48] sm:$0xff] }
  0x21   : > { %343 = vst.msk [vmem:[#allocation2 + $0x1e0] sm:$0xff] %vm318_vm0, %v6688_v0  ;;  %344 = vst.msk [vmem:[#allocation2 + $0x200] sm:$0xff] %vm318_vm0, %v6688_v0  ;;  %v374_v14 = vld [vmem:[%s6851_s21 + $0x50] sm:$0xff]  ;;  %v375_v15 = vld [vmem:[%s6851_s21 + $0x58] sm:$0xff]  ;;  %5303 = vrot.lane.b32.xlu0 %v5302_v10, %s6689_s22 }
  0x22   : > { %347 = vst.msk [vmem:[#allocation2 + $0x38] sm:$0xff] %vm318_vm0, %v6688_v0  ;;  %348 = vst.msk [vmem:[#allocation2 + $0x58] sm:$0xff] %vm318_vm0, %v6688_v0  ;;  %v376_v16 = vld [vmem:[%s6851_s21 + $0x60] sm:$0xff]  ;;  %v377_v17 = vld [vmem:[%s6851_s21 + $0x68] sm:$0xff] }
  0x23   : > { %349 = vst.msk [vmem:[#allocation2 + $0x78] sm:$0xff] %vm318_vm0, %v6688_v0  ;;  %350 = vst.msk [vmem:[#allocation2 + $0x98] sm:$0xff] %vm318_vm0, %v6688_v0  ;;  %v378_v18 = vld [vmem:[%s6851_s21 + $0x70] sm:$0xff]  ;;  %v379_v19 = vld [vmem:[%s6851_s21 + $0x78] sm:$0xff] }
  0x24   : > { %351 = vst.msk [vmem:[#allocation2 + $0xb8] sm:$0xff] %vm318_vm0, %v6688_v0  ;;  %352 = vst.msk [vmem:[#allocation2 + $0xd8] sm:$0xff] %vm318_vm0, %v6688_v0  ;;  %v380_v20 = vld [vmem:[%s6851_s21 + $0x80] sm:$0xff]  ;;  %v381_v21 = vld [vmem:[%s6851_s21 + $0x88] sm:$0xff] }
  0x25   : > { %353 = vst.msk [vmem:[#allocation2 + $0xf8] sm:$0xff] %vm318_vm0, %v6688_v0  ;;  %354 = vst.msk [vmem:[#allocation2 + $0x118] sm:$0xff] %vm318_vm0, %v6688_v0  ;;  %v382_v22 = vld [vmem:[%s6851_s21 + $0x90] sm:$0xff]  ;;  %v383_v23 = vld [vmem:[%s6851_s21 + $0x98] sm:$0xff] }
  0x26   : > { %355 = vst.msk [vmem:[#allocation2 + $0x138] sm:$0xff] %vm318_vm0, %v6688_v0  ;;  %356 = vst.msk [vmem:[#allocation2 + $0x158] sm:$0xff] %vm318_vm0, %v6688_v0  ;;  %v384_v24 = vld [vmem:[%s6851_s21 + $0xa0] sm:$0xff]  ;;  %v385_v25 = vld [vmem:[%s6851_s21 + $0xa8] sm:$0xff] }
  0x27   : > { %357 = vst.msk [vmem:[#allocation2 + $0x178] sm:$0xff] %vm318_vm0, %v6688_v0  ;;  %358 = vst.msk [vmem:[#allocation2 + $0x198] sm:$0xff] %vm318_vm0, %v6688_v0  ;;  %v386_v35 = vld [vmem:[%s6851_s21 + $0xb0] sm:$0xff]  ;;  %v387_v36 = vld [vmem:[%s6851_s21 + $0xb8] sm:$0xff] }
  0x28   : > { %359 = vst.msk [vmem:[#allocation2 + $0x1b8] sm:$0xff] %vm318_vm0, %v6688_v0  ;;  %360 = vst.msk [vmem:[#allocation2 + $0x1d8] sm:$0xff] %vm318_vm0, %v6688_v0  ;;  %v388_v50 = vld [vmem:[%s6851_s21 + $0xc0] sm:$0xff]  ;;  %v389_v51 = vld [vmem:[%s6851_s21 + $0xc8] sm:$0xff] }
  0x29   : > { %361 = vst.msk [vmem:[#allocation2 + $0x1f8] sm:$0xff] %vm318_vm0, %v6688_v0  ;;  %362 = vst.msk [vmem:[#allocation2 + $0x218] sm:$0xff] %vm318_vm0, %v6688_v0  ;;  %v390_v52 = vld [vmem:[%s6851_s21 + $0xd0] sm:$0xff]  ;;  %v391_v53 = vld [vmem:[%s6851_s21 + $0xd8] sm:$0xff] }
  0x2a   : > { %328 = vst.msk [vmem:[#allocation2] sm:$0xff] %vm318_vm0, %v6688_v0  ;;  %345 = vst.msk [vmem:[#allocation2 + $0x220] sm:$0xff] %vm318_vm0, %v6688_v0  ;;  %v392_v54 = vld [vmem:[%s6851_s21 + $0xe0] sm:$0xff]  ;;  %v393_v55 = vld [vmem:[%s6851_s21 + $0xe8] sm:$0xff] }
  0x2b   : > { %346 = vst.msk [vmem:[#allocation2 + $0x18] sm:$0xff] %vm318_vm0, %v6688_v0  ;;  %363 = vst.msk [vmem:[#allocation2 + $0x238] sm:$0xff] %vm318_vm0, %v6688_v0 }
  0x2c   : > { %400 = vst.msk [vmem:[#allocation2 + $0x48] sm:$0xff] %vm397_vm1, %v366_v1  ;;  %401 = vst.msk [vmem:[#allocation2 + $0x50] sm:$0xff] %vm397_vm1, %v367_v2 }
  0x2d   : > { %398 = vst.msk [vmem:[#allocation2 + $0x28] sm:$0xff] %vm397_vm1, %v364_v3  ;;  %399 = vst.msk [vmem:[#allocation2 + $0x30] sm:$0xff] %vm397_vm1, %v365_v4 }
  0x2e   : > { %402 = vst.msk [vmem:[#allocation2 + $0x68] sm:$0xff] %vm397_vm1, %v368_v5  ;;  %403 = vst.msk [vmem:[#allocation2 + $0x70] sm:$0xff] %vm397_vm1, %v369_v6 }
  0x2f   : > { %404 = vst.msk [vmem:[#allocation2 + $0x88] sm:$0xff] %vm397_vm1, %v370_v9  ;;  %405 = vst.msk [vmem:[#allocation2 + $0x90] sm:$0xff] %vm397_vm1, %v371_v11 }
  0x30   : > { %406 = vst.msk [vmem:[#allocation2 + $0xa8] sm:$0xff] %vm397_vm1, %v372_v12  ;;  %407 = vst.msk [vmem:[#allocation2 + $0xb0] sm:$0xff] %vm397_vm1, %v373_v13 }
  0x31   : > { %408 = vst.msk [vmem:[#allocation2 + $0xc8] sm:$0xff] %vm397_vm1, %v374_v14  ;;  %409 = vst.msk [vmem:[#allocation2 + $0xd0] sm:$0xff] %vm397_vm1, %v375_v15  ;;  %v494_v14 = vld [vmem:[#allocation2 + $0x9] sm:$0xff] }
  0x32   : > { %410 = vst.msk [vmem:[#allocation2 + $0xe8] sm:$0xff] %vm397_vm1, %v376_v16  ;;  %411 = vst.msk [vmem:[#allocation2 + $0xf0] sm:$0xff] %vm397_vm1, %v377_v17  ;;  %v495_v15 = vld [vmem:[#allocation2 + $0x11] sm:$0xff] }
  0x33   : > { %412 = vst.msk [vmem:[#allocation2 + $0x108] sm:$0xff] %vm397_vm1, %v378_v18  ;;  %413 = vst.msk [vmem:[#allocation2 + $0x110] sm:$0xff] %vm397_vm1, %v379_v19  ;;  %v466_v26 = vld [vmem:[#allocation2 + $0x48] sm:$0xff]  ;;  %v467_v27 = vld [vmem:[#allocation2 + $0x50] sm:$0xff]  ;;  %v5382_v17 = vpack.i.bf16 %v495_v15, %v494_v14 }
  0x34   : > { %414 = vst.msk [vmem:[#allocation2 + $0x128] sm:$0xff] %vm397_vm1, %v380_v20  ;;  %415 = vst.msk [vmem:[#allocation2 + $0x130] sm:$0xff] %vm397_vm1, %v381_v21  ;;  %v464_v28 = vld [vmem:[#allocation2 + $0x28] sm:$0xff]  ;;  %v6898_v29 = vpack.i.bf16 %v467_v27, %v466_v26  ;;  %v465_v30 = vld [vmem:[#allocation2 + $0x30] sm:$0xff] }
  0x35   : > { %416 = vst.msk [vmem:[#allocation2 + $0x148] sm:$0xff] %vm397_vm1, %v382_v22  ;;  %417 = vst.msk [vmem:[#allocation2 + $0x150] sm:$0xff] %vm397_vm1, %v383_v23  ;;  %v468_v31 = vld [vmem:[#allocation2 + $0x68] sm:$0xff]  ;;  %v469_v32 = vld [vmem:[#allocation2 + $0x70] sm:$0xff]  ;;  %v6900_v33 = vpack.i.bf16 %v465_v30, %v464_v28 }
  0x36   : > { %418 = vst.msk [vmem:[#allocation2 + $0x168] sm:$0xff] %vm397_vm1, %v384_v24  ;;  %419 = vst.msk [vmem:[#allocation2 + $0x170] sm:$0xff] %vm397_vm1, %v385_v25  ;;  %v470_v34 = vld [vmem:[#allocation2 + $0x88] sm:$0xff]  ;;  %5313 = vrot.lane.b32.xlu1 %v6898_v29, %s6689_s22  ;;  %v6906_v37 = vpack.i.bf16 %v469_v32, %v468_v31  ;;  %v471_v38 = vld [vmem:[#allocation2 + $0x90] sm:$0xff] }
  0x37   : > { %420 = vst.msk [vmem:[#allocation2 + $0x188] sm:$0xff] %vm397_vm1, %v386_v35  ;;  %421 = vst.msk [vmem:[#allocation2 + $0x190] sm:$0xff] %vm397_vm1, %v387_v36  ;;  %5308 = vrot.lane.b32.xlu0 %v6900_v33, %s6689_s22  ;;  %v6912_v39 = vpack.i.bf16 %v471_v38, %v470_v34  ;;  %v472_v40 = vld [vmem:[#allocation2 + $0xa8] sm:$0xff]  ;;  %v473_v41 = vld [vmem:[#allocation2 + $0xb0] sm:$0xff] }
  0x38   : > { %v474_v42 = vld [vmem:[#allocation2 + $0xc8] sm:$0xff]  ;;  %v475_v43 = vld [vmem:[#allocation2 + $0xd0] sm:$0xff]  ;;  %v6916_v45 = vpack.i.bf16 %v473_v41, %v472_v40  ;;  %422 = vst.msk [vmem:[#allocation2 + $0x1a8] sm:$0xff] %vm397_vm1, %v388_v50  ;;  %423 = vst.msk [vmem:[#allocation2 + $0x1b0] sm:$0xff] %vm397_vm1, %v389_v51 }
  0x39   : > { %v476_v44 = vld [vmem:[#allocation2 + $0xe8] sm:$0xff]  ;;  %v477_v46 = vld [vmem:[#allocation2 + $0xf0] sm:$0xff]  ;;  %v6920_v49 = vpack.i.bf16 %v475_v43, %v474_v42  ;;  %424 = vst.msk [vmem:[#allocation2 + $0x1c8] sm:$0xff] %vm397_vm1, %v390_v52  ;;  %425 = vst.msk [vmem:[#allocation2 + $0x1d0] sm:$0xff] %vm397_vm1, %v391_v53 }
  0x3a   : > { %5318 = vrot.lane.b32.xlu1 %v6906_v37, %s6689_s22  ;;  %v478_v47 = vld [vmem:[#allocation2 + $0x108] sm:$0xff]  ;;  %v479_v48 = vld [vmem:[#allocation2 + $0x110] sm:$0xff]  ;;  %426 = vst.msk [vmem:[#allocation2 + $0x1e8] sm:$0xff] %vm397_vm1, %v392_v54  ;;  %427 = vst.msk [vmem:[#allocation2 + $0x1f0] sm:$0xff] %vm397_vm1, %v393_v55  ;;  %v6936_v56 = vpack.i.bf16 %v477_v46, %v476_v44 }
  0x3b   : > { %5323 = vrot.lane.b32.xlu0 %v6912_v39, %s6689_s22  ;;  %v6940_v57 = vpack.i.bf16 %v479_v48, %v478_v47  ;;  %v480_v58 = vld [vmem:[#allocation2 + $0x128] sm:$0xff]  ;;  %v481_v59 = vld [vmem:[#allocation2 + $0x130] sm:$0xff]  ;;  %v395_v30 = vld [vmem:[%s6851_s21 + $0xf8] sm:$0xff] }
  0x3c   : > { %v482_v60 = vld [vmem:[#allocation2 + $0x148] sm:$0xff]  ;;  %v483_v61 = vld [vmem:[#allocation2 + $0x150] sm:$0xff]  ;;  %v5347_v62 = vpack.i.bf16 %v481_v59, %v480_v58  ;;  %429 = vst.msk [vmem:[#allocation2 + $0x210] sm:$0xff] %vm397_vm1, %v395_v30 }
  0x3d   : > { %v5352_v63 = vpack.i.bf16 %v483_v61, %v482_v60  ;;  %v484_v0 = vld [vmem:[#allocation2 + $0x168] sm:$0xff]  ;;  %v485_v1 = vld [vmem:[#allocation2 + $0x170] sm:$0xff] }
  0x3e   : > { %5328 = vrot.lane.b32.xlu1 %v6916_v45, %s6689_s22  ;;  %v486_v2 = vld [vmem:[#allocation2 + $0x188] sm:$0xff]  ;;  %v487_v3 = vld [vmem:[#allocation2 + $0x190] sm:$0xff]  ;;  %v5357_v4 = vpack.i.bf16 %v485_v1, %v484_v0 }
  0x3f   : > { %5333 = vrot.lane.b32.xlu0 %v6920_v49, %s6689_s22  ;;  %v5362_v5 = vpack.i.bf16 %v487_v3, %v486_v2  ;;  %v488_v6 = vld [vmem:[#allocation2 + $0x1a8] sm:$0xff]  ;;  %v489_v7 = vld [vmem:[#allocation2 + $0x1b0] sm:$0xff] }
  0x40   : > { %v490_v8 = vld [vmem:[#allocation2 + $0x1c8] sm:$0xff]  ;;  %v491_v9 = vld [vmem:[#allocation2 + $0x1d0] sm:$0xff]  ;;  %v5367_v10 = vpack.i.bf16 %v489_v7, %v488_v6 }
  0x41   : > { %v5372_v11 = vpack.i.bf16 %v491_v9, %v490_v8  ;;  %v492_v12 = vld [vmem:[#allocation2 + $0x1e8] sm:$0xff]  ;;  %v493_v13 = vld [vmem:[#allocation2 + $0x1f0] sm:$0xff] }
  0x42   : > { %5338 = vrot.lane.b32.xlu1 %v6936_v56, %s6689_s22  ;;  %v5377_v16 = vpack.i.bf16 %v493_v13, %v492_v12  ;;  %v496_v18 = vld [vmem:[#allocation2 + $0x29] sm:$0xff]  ;;  %v497_v19 = vld [vmem:[#allocation2 + $0x31] sm:$0xff] }
  0x43   : > { %5343 = vrot.lane.b32.xlu0 %v6940_v57, %s6689_s22  ;;  %v498_v20 = vld [vmem:[#allocation2 + $0x49] sm:$0xff]  ;;  %v499_v21 = vld [vmem:[#allocation2 + $0x51] sm:$0xff]  ;;  %v6953_v22 = vpack.i.bf16 %v497_v19, %v496_v18 }
  0x44   : > { %v6956_v23 = vpack.i.bf16 %v499_v21, %v498_v20  ;;  %v500_v24 = vld [vmem:[#allocation2 + $0x69] sm:$0xff]  ;;  %v501_v25 = vld [vmem:[#allocation2 + $0x71] sm:$0xff] }
  0x45   : > { %v502_v26 = vld [vmem:[#allocation2 + $0x89] sm:$0xff]  ;;  %v503_v27 = vld [vmem:[#allocation2 + $0x91] sm:$0xff]  ;;  %v6964_v31 = vpack.i.bf16 %v501_v25, %v500_v24 }
  0x46   : > { %5348 = vrot.lane.b32.xlu1 %v5347_v62, %s6689_s22  ;;  %v394_v28 = vld [vmem:[%s6851_s21 + $0xf0] sm:$0xff]  ;;  %v6968_v32 = vpack.i.bf16 %v503_v27, %v502_v26  ;;  %v7000_v8 = vld [vmem:[#allocation2 + $0x27] sm:$0xff]  ;;  %s6700_s21 = smov 64  }
  0x47   : > { %5353 = vrot.lane.b32.xlu0 %v5352_v63, %s6689_s22  ;;  %428 = vst.msk [vmem:[#allocation2 + $0x208] sm:$0xff] %vm397_vm1, %v394_v28  ;;  %v504_v34 = vld [vmem:[#allocation2 + $0xa9] sm:$0xff]  ;;  %v505_v35 = vld [vmem:[#allocation2 + $0xb1] sm:$0xff] }
  0x48   : > { %v506_v36 = vld [vmem:[#allocation2 + $0xc9] sm:$0xff]  ;;  %v507_v38 = vld [vmem:[#allocation2 + $0xd1] sm:$0xff]  ;;  %v6972_v40 = vpack.i.bf16 %v505_v35, %v504_v34 }
  0x49   : > { %v6976_v41 = vpack.i.bf16 %v507_v38, %v506_v36  ;;  %v508_v42 = vld [vmem:[#allocation2 + $0xe9] sm:$0xff]  ;;  %v509_v43 = vld [vmem:[#allocation2 + $0xf1] sm:$0xff] }
  0x4a   : > { %5358 = vrot.lane.b32.xlu1 %v5357_v4, %s6689_s22  ;;  %v510_v44 = vld [vmem:[#allocation2 + $0x109] sm:$0xff]  ;;  %v511_v46 = vld [vmem:[#allocation2 + $0x111] sm:$0xff]  ;;  %v6980_v47 = vpack.i.bf16 %v509_v43, %v508_v42 }
  0x4b   : > { %5363 = vrot.lane.b32.xlu0 %v5362_v5, %s6689_s22  ;;  %v6984_v48 = vpack.i.bf16 %v511_v46, %v510_v44  ;;  %v512_v50 = vld [vmem:[#allocation2 + $0x129] sm:$0xff]  ;;  %v513_v51 = vld [vmem:[#allocation2 + $0x131] sm:$0xff] }
  0x4c   : > { %v514_v52 = vld [vmem:[#allocation2 + $0x149] sm:$0xff]  ;;  %v515_v53 = vld [vmem:[#allocation2 + $0x151] sm:$0xff]  ;;  %v6988_v54 = vpack.i.bf16 %v513_v51, %v512_v50 }
  0x4d   : > { %v6992_v55 = vpack.i.bf16 %v515_v53, %v514_v52  ;;  %v516_v58 = vld [vmem:[#allocation2 + $0x169] sm:$0xff]  ;;  %v517_v59 = vld [vmem:[#allocation2 + $0x171] sm:$0xff] }
  0x4e   : > { %5368 = vrot.lane.b32.xlu1 %v5367_v10, %s6689_s22  ;;  %v518_v60 = vld [vmem:[#allocation2 + $0x189] sm:$0xff]  ;;  %v519_v61 = vld [vmem:[#allocation2 + $0x191] sm:$0xff]  ;;  %v5437_v62 = vpack.i.bf16 %v517_v59, %v516_v58 }
  0x4f   : > { %5373 = vrot.lane.b32.xlu0 %v5372_v11, %s6689_s22  ;;  %v5442_v63 = vpack.i.bf16 %v519_v61, %v518_v60  ;;  %v520_v0 = vld [vmem:[#allocation2 + $0x1a9] sm:$0xff]  ;;  %v521_v1 = vld [vmem:[#allocation2 + $0x1b1] sm:$0xff] }
  0x50   : > { %v522_v2 = vld [vmem:[#allocation2 + $0x1c9] sm:$0xff]  ;;  %v523_v3 = vld [vmem:[#allocation2 + $0x1d1] sm:$0xff]  ;;  %v5447_v4 = vpack.i.bf16 %v521_v1, %v520_v0 }
  0x51   : > { %v5452_v5 = vpack.i.bf16 %v523_v3, %v522_v2  ;;  %v524_v6 = vld [vmem:[#allocation2 + $0x1e9] sm:$0xff]  ;;  %v525_v7 = vld [vmem:[#allocation2 + $0x1f1] sm:$0xff] }
  0x52   : > { %5378 = vrot.lane.b32.xlu1 %v5377_v16, %s6689_s22  ;;  %v7002_v9 = vld [vmem:[#allocation2 + $0x2f] sm:$0xff]  ;;  %v5457_v10 = vpack.i.bf16 %v525_v7, %v524_v6  ;;  %v7008_v12 = vld [vmem:[#allocation2 + $0x47] sm:$0xff] }
  0x53   : > { %5383 = vrot.lane.b32.xlu0 %v5382_v17, %s6690_s23  ;;  %v5462_v11 = vpack.i.bf16 %v7002_v9, %v7000_v8  ;;  %v7010_v13 = vld [vmem:[#allocation2 + $0x4f] sm:$0xff]  ;;  %v7012_v14 = vld [vmem:[#allocation2 + $0x67] sm:$0xff] }
  0x54   : > { %v7014_v15 = vld [vmem:[#allocation2 + $0x6f] sm:$0xff]  ;;  %v7019_v16 = vpack.i.bf16 %v7010_v13, %v7008_v12  ;;  %v7026_v18 = vld [vmem:[#allocation2 + $0x87] sm:$0xff] }
  0x55   : > { %v7024_v17 = vpack.i.bf16 %v7014_v15, %v7012_v14  ;;  %v7028_v19 = vld [vmem:[#allocation2 + $0x8f] sm:$0xff]  ;;  %v7030_v20 = vld [vmem:[#allocation2 + $0xa7] sm:$0xff] }
  0x56   : > { %5388 = vrot.lane.b32.xlu1 %v6953_v22, %s6690_s23  ;;  %v7032_v21 = vld [vmem:[#allocation2 + $0xaf] sm:$0xff]  ;;  %v7038_v24 = vpack.i.bf16 %v7028_v19, %v7026_v18  ;;  %v536_v26 = vld [vmem:[#allocation2 + $0xc7] sm:$0xff] }
  0x57   : > { %5393 = vrot.lane.b32.xlu0 %v6956_v23, %s6690_s23  ;;  %v7044_v25 = vpack.i.bf16 %v7032_v21, %v7030_v20  ;;  %v7046_v27 = vld [vmem:[#allocation2 + $0xcf] sm:$0xff]  ;;  %v538_v28 = vld [vmem:[#allocation2 + $0xe7] sm:$0xff] }
  0x58   : > { %9573 = vst [vmem:[#allocation7_spill] sm:$0xff] %v7046_v27  ;;  %v7048_v30 = vld [vmem:[#allocation2 + $0xef] sm:$0xff]  ;;  %v7053_v34 = vpack.i.bf16 %v7046_v27, %v536_v26  ;;  %v540_v36 = vld [vmem:[#allocation2 + $0x107] sm:$0xff] }
  0x59   : > { %9574 = vst [vmem:[#allocation8_spill] sm:$0xff] %v7048_v30  ;;  %v7058_v35 = vpack.i.bf16 %v7048_v30, %v538_v28  ;;  %v541_v38 = vld [vmem:[#allocation2 + $0x10f] sm:$0xff]  ;;  %v542_v42 = vld [vmem:[#allocation2 + $0x127] sm:$0xff] }
  0x5a   : > { %5398 = vrot.lane.b32.xlu1 %v6964_v31, %s6690_s23  ;;  %v543_v43 = vld [vmem:[#allocation2 + $0x12f] sm:$0xff]  ;;  %v7062_v44 = vpack.i.bf16 %v541_v38, %v540_v36  ;;  %v544_v50 = vld [vmem:[#allocation2 + $0x147] sm:$0xff] }
  0x5b   : > { %5403 = vrot.lane.b32.xlu0 %v6968_v32, %s6690_s23  ;;  %v7066_v46 = vpack.i.bf16 %v543_v43, %v542_v42  ;;  %v545_v51 = vld [vmem:[#allocation2 + $0x14f] sm:$0xff]  ;;  %v546_v52 = vld [vmem:[#allocation2 + $0x167] sm:$0xff] }
  0x5c   : > { %v547_v53 = vld [vmem:[#allocation2 + $0x16f] sm:$0xff]  ;;  %v7070_v58 = vpack.i.bf16 %v545_v51, %v544_v50  ;;  %v548_v60 = vld [vmem:[#allocation2 + $0x187] sm:$0xff] }
  0x5d   : > { %v7074_v59 = vpack.i.bf16 %v547_v53, %v546_v52  ;;  %v549_v61 = vld [vmem:[#allocation2 + $0x18f] sm:$0xff]  ;;  %v552_v2 = vld [vmem:[#allocation2 + $0x1c7] sm:$0xff] }
  0x5e   : > { %5408 = vrot.lane.b32.xlu1 %v6972_v40, %s6690_s23  ;;  %v7078_v0 = vpack.i.bf16 %v549_v61, %v548_v60  ;;  %v553_v3 = vld [vmem:[#allocation2 + $0x1cf] sm:$0xff]  ;;  %v6582_v28 = vld [vmem:[%s9528_s1] sm:$0xff]  }
  0x5f   : > { %5413 = vrot.lane.b32.xlu0 %v6976_v41, %s6690_s23  ;;  %v5527_v6 = vpack.i.bf16 %v553_v3, %v552_v2  ;;  %5168 = vmatprep.subr.bf16.mxu0 %v6582_v28  ;;  %v6583_v36 = vld [vmem:[%s9528_s1 + $0x8] sm:$0xff]  }
  0x60   : > { %5169 = vmatpush3.bf16.msra.mxu0 %v6582_v28 }
  0x61   : > { %5170 = vmatprep.subr.bf16.mxu0 %v6583_v36 }
  0x62   : > { %5418 = vrot.lane.b32.xlu1 %v6980_v47, %s6690_s23 }
  0x63   : > { %5423 = vrot.lane.b32.xlu0 %v6984_v48, %s6690_s23 }
  0x64   : > { %5171 = vmatpush3.bf16.msra.mxu0 %v6583_v36  ;;  %v703_v36 = vld [vmem:[#allocation2 + $0x149] sm:$0xff] }
  0x66   : > { %5428 = vrot.lane.b32.xlu1 %v6988_v54, %s6690_s23 }
  0x67   : > { %5433 = vrot.lane.b32.xlu0 %v6992_v55, %s6690_s23 }
  0x6a   : > { %5438 = vrot.lane.b32.xlu1 %v5437_v62, %s6690_s23  ;;  %v550_v62 = vld [vmem:[#allocation2 + $0x1a7] sm:$0xff] }
  0x6b   : > { %5443 = vrot.lane.b32.xlu0 %v5442_v63, %s6690_s23  ;;  %v551_v63 = vld [vmem:[#allocation2 + $0x1af] sm:$0xff] }
  0x6c   : > { %v5522_v1 = vpack.i.bf16 %v551_v63, %v550_v62  ;;  %v670_v62 = vld [vmem:[#allocation2 + $0x130] sm:$0xff] }
  0x6e   : > { %5448 = vrot.lane.b32.xlu1 %v5447_v4, %s6690_s23  ;;  %v554_v4 = vld [vmem:[#allocation2 + $0x1e7] sm:$0xff] }
  0x6f   : > { %5453 = vrot.lane.b32.xlu0 %v5452_v5, %s6690_s23  ;;  %v555_v5 = vld [vmem:[#allocation2 + $0x1ef] sm:$0xff] }
  0x70   : > { %v5532_v7 = vpack.i.bf16 %v555_v5, %v554_v4  ;;  %v577_v4 = vld [vmem:[#allocation2 + $0x150] sm:$0xff] }
  0x72   : > { %5458 = vrot.lane.b32.xlu1 %v5457_v10, %s6690_s23  ;;  %v556_v10 = vld [vmem:[#allocation2 + $0x207] sm:$0xff] }
  0x73   : > { %5463 = vrot.lane.b32.xlu0 %v5462_v11, %s6691_s24  ;;  %v557_v11 = vld [vmem:[#allocation2 + $0x20f] sm:$0xff] }
  0x74   : > { %v5537_v26 = vpack.i.bf16 %v557_v11, %v556_v10  ;;  %v673_v11 = vld [vmem:[#allocation2 + $0x168] sm:$0xff] }
  0x76   : > { %5468 = vrot.lane.b32.xlu1 %v7019_v16, %s6691_s24 }
  0x77   : > { %5473 = vrot.lane.b32.xlu0 %v7024_v17, %s6691_s24 }
  0x7a   : > { %5478 = vrot.lane.b32.xlu1 %v7038_v24, %s6691_s24 }
  0x7b   : > { %5483 = vrot.lane.b32.xlu0 %v7044_v25, %s6691_s24 }
  0x7e   : > { %5488 = vrot.lane.b32.xlu1 %v7053_v34, %s6691_s24 }
  0x7f   : > { %5493 = vrot.lane.b32.xlu0 %v7058_v35, %s6691_s24 }
  0x82   : > { %5498 = vrot.lane.b32.xlu1 %v7062_v44, %s6691_s24 }
  0x83   : > { %5503 = vrot.lane.b32.xlu0 %v7066_v46, %s6691_s24 }
  0x86   : > { %5508 = vrot.lane.b32.xlu1 %v7070_v58, %s6691_s24 }
  0x87   : > { %5513 = vrot.lane.b32.xlu0 %v7074_v59, %s6691_s24 }
  0x8a   : > { %5518 = vrot.lane.b32.xlu1 %v7078_v0, %s6691_s24 }
  0x8b   : > { %5523 = vrot.lane.b32.xlu0 %v5522_v1, %s6691_s24 }
  0x8e   : > { %5528 = vrot.lane.b32.xlu1 %v5527_v6, %s6691_s24 }
  0x8f   : > { %5533 = vrot.lane.b32.xlu0 %v5532_v7, %s6691_s24 }
  0x92   : > { %5538 = vrot.lane.b32.xlu1 %v5537_v26, %s6691_s24  ;;  %s6694_s24 = smov 24   ;;  %v674_v26 = vld [vmem:[#allocation2 + $0x170] sm:$0xff] }
  0x93   : > { %5543 = vrot.lane.b32.xlu0 %v6900_v33, %s6692_s25  ;;  %v6584_v33 = vld [vmem:[%s9528_s1 + $0x10] ss:$0 sps:$4 sm:$0x33]  }
  0x94   : > { %5248 = vmatprep.subr.msk.bf16.mxu0 %vm2090_vm2, %v6584_v33  ;;  %v2092_v38 = vsel %vm2090_vm2, %v6584_v33, 0  ;;  %v704_v33 = vld [vmem:[#allocation2 + $0x151] sm:$0xff] }
  0x95   : > { %5173 = vmatpush3.bf16.msra.mxu0 %v2092_v38 }
  0x96   : > { %5548 = vrot.lane.b32.xlu1 %v6898_v29, %s6692_s25 }
  0x97   : > { %5553 = vrot.lane.b32.xlu0 %v6906_v37, %s6692_s25 }
  0x9a   : > { %5558 = vrot.lane.b32.xlu1 %v6912_v39, %s6692_s25 }
  0x9b   : > { %5563 = vrot.lane.b32.xlu0 %v6953_v22, %s6693_s19  ;;  %v7115_v22 = vpop.permute.xlu0 %5303 }
  0x9e   : > { %5568 = vrot.lane.b32.xlu1 %v6956_v23, %s6693_s19 }
  0x9f   : > { %5573 = vrot.lane.b32.xlu0 %v7019_v16, %s6694_s24 }
  0xa2   : > { %5578 = vrot.lane.b32.xlu1 %v7024_v17, %s6694_s24 }
  0xa3   : > { %5583 = vrot.lane.b32.xlu0 %v6898_v29, %s6695_s26 }
  0xa6   : > { %5588 = vrot.lane.b32.xlu1 %v6906_v37, %s6695_s26 }
  0xa7   : > { %5593 = vrot.lane.b32.xlu0 %v6956_v23, %s6696_s10 }
  0xa8   : > { %v7121_v16 = vpop.permute.xlu1 %5313 }
  0xa9   : > { %v7123_v42 = vpop.permute.xlu0 %5308 }
  0xaa   : > { %5598 = vrot.lane.b32.xlu1 %v6964_v31, %s6696_s10  ;;  %v5310_v30 = vunpack.i.l.bf16 %v7123_v42 }
  0xab   : > { %5603 = vrot.lane.b32.xlu0 %v6964_v31, %s6693_s19 }
  0xac   : > { %v7129_v29 = vpop.permute.xlu1 %5318 }
  0xad   : > { %v7131_v17 = vpop.permute.xlu0 %5323 }
  0xae   : > { %5608 = vrot.lane.b32.xlu1 %v6968_v32, %s6693_s19 }
  0xaf   : > { %5613 = vrot.lane.b32.xlu0 %v7038_v24, %s6694_s24 }
  0xb0   : > { %v7137_v37 = vpop.permute.xlu1 %5328 }
  0xb1   : > { %v7139_v23 = vpop.permute.xlu0 %5333 }
  0xb2   : > { %5618 = vrot.lane.b32.xlu1 %v7044_v25, %s6694_s24 }
  0xb3   : > { %5623 = vrot.lane.b32.xlu0 %v6912_v39, %s6695_s26 }
  0xb4   : > { %v7145_v31 = vpop.permute.xlu1 %5338 }
  0xb5   : > { %9575 = vst [vmem:[#allocation9_spill] sm:$0xff] %v7145_v31  ;;  %v7147_v43 = vpop.permute.xlu0 %5343 }
  0xb6   : > { %9576 = vst [vmem:[#allocation10_spill] sm:$0xff] %v7147_v43  ;;  %5628 = vrot.lane.b32.xlu1 %v6916_v45, %s6695_s26 }
  0xb7   : > { %5633 = vrot.lane.b32.xlu0 %v6968_v32, %s6696_s10 }
  0xb8   : > { %v7153_v24 = vpop.permute.xlu1 %5348 }
  0xb9   : > { %9577 = vst [vmem:[#allocation11_spill] sm:$0xff] %v7153_v24  ;;  %v7155_v50 = vpop.permute.xlu0 %5353 }
  0xba   : > { %9578 = vst [vmem:[#allocation12_spill] sm:$0xff] %v7155_v50  ;;  %5638 = vrot.lane.b32.xlu1 %v6972_v40, %s6696_s10  ;;  %v714_v50 = vld [vmem:[#allocation2 + $0x1f1] sm:$0xff] }
  0xbb   : > { %5643 = vrot.lane.b32.xlu0 %v6916_v45, %s6692_s25 }
  0xbc   : > { %v7161_v39 = vpop.permute.xlu1 %5358 }
  0xbd   : > { %9579 = vst [vmem:[#allocation13_spill] sm:$0xff] %v7161_v39  ;;  %v7163_v25 = vpop.permute.xlu0 %5363  ;;  %v713_v39 = vld [vmem:[#allocation2 + $0x1e9] sm:$0xff] }
  0xbe   : > { %9580 = vst [vmem:[#allocation14_spill] sm:$0xff] %v7163_v25  ;;  %5648 = vrot.lane.b32.xlu1 %v6920_v49, %s6692_s25 }
  0xbf   : > { %5653 = vrot.lane.b32.xlu0 %v6972_v40, %s6693_s19 }
  0xc0   : > { %v7169_v32 = vpop.permute.xlu1 %5368 }
  0xc1   : > { %9581 = vst [vmem:[#allocation15_spill] sm:$0xff] %v7169_v32  ;;  %v7171_v51 = vpop.permute.xlu0 %5373 }
  0xc2   : > { %9582 = vst [vmem:[#allocation16_spill] sm:$0xff] %v7171_v51  ;;  %5658 = vrot.lane.b32.xlu1 %v6976_v41, %s6693_s19 }
  0xc3   : > { %5663 = vrot.lane.b32.xlu0 %v7053_v34, %s6694_s24 }
  0xc4   : > { %v7177_v45 = vpop.permute.xlu1 %5378 }
  0xc5   : > { %9583 = vst [vmem:[#allocation17_spill] sm:$0xff] %v7177_v45  ;;  %v7179_v52 = vpop.permute.xlu0 %5383 }
  0xc6   : > { %5668 = vrot.lane.b32.xlu1 %v7058_v35, %s6694_s24 }
  0xc7   : > { %5673 = vrot.lane.b32.xlu0 %v6920_v49, %s6695_s26 }
  0xc8   : > { %v7185_v40 = vpop.permute.xlu1 %5388 }
  0xc9   : > { %v7187_v53 = vpop.permute.xlu0 %5393 }
  0xca   : > { %5678 = vrot.lane.b32.xlu1 %v6936_v56, %s6695_s26 }
  0xcb   : > { %5683 = vrot.lane.b32.xlu0 %v6976_v41, %s6696_s10 }
  0xcc   : > { %v7193_v34 = vpop.permute.xlu1 %5398 }
  0xcd   : > { %v7195_v60 = vpop.permute.xlu0 %5403 }
  0xce   : > { %5688 = vrot.lane.b32.xlu1 %v6980_v47, %s6696_s10 }
  0xcf   : > { %5693 = vrot.lane.b32.xlu0 %v6936_v56, %s6692_s25  ;;  %v669_v56 = vld [vmem:[#allocation2 + $0x128] sm:$0xff] }
  0xd0   : > { %v7201_v49 = vpop.permute.xlu1 %5408 }
  0xd1   : > { %v7203_v35 = vpop.permute.xlu0 %5413 }
  0xd2   : > { %9584 = vst [vmem:[#allocation18_spill] sm:$0xff] %v7203_v35  ;;  %5698 = vrot.lane.b32.xlu1 %v6940_v57, %s6692_s25 }
  0xd3   : > { %5703 = vrot.lane.b32.xlu0 %v6980_v47, %s6693_s19  ;;  %v5727_v47 = vpack.i.bf16 %v670_v62, %v669_v56  ;;  %v5782_v56 = vpack.i.bf16 %v704_v33, %v703_v36  ;;  %v705_v62 = vld [vmem:[#allocation2 + $0x169] sm:$0xff] }
  0xd4   : > { %v7209_v41 = vpop.permute.xlu1 %5418 }
  0xd5   : > { %9585 = vst [vmem:[#allocation19_spill] sm:$0xff] %v7209_v41  ;;  %v7211_v61 = vpop.permute.xlu0 %5423 }
  0xd6   : > { %9586 = vst [vmem:[#allocation20_spill] sm:$0xff] %v7211_v61  ;;  %5708 = vrot.lane.b32.xlu1 %v6984_v48, %s6693_s19  ;;  %v621_v61 = vld [vmem:[#allocation2 + $0x211] sm:$0xff] }
  0xd7   : > { %5713 = vrot.lane.b32.xlu0 %v7062_v44, %s6694_s24  ;;  %v576_v44 = vld [vmem:[#allocation2 + $0x148] sm:$0xff] }
  0xd8   : > { %v7217_v63 = vpop.permute.xlu1 %5428 }
  0xd9   : > { %9587 = vst [vmem:[#allocation21_spill] sm:$0xff] %v7217_v63  ;;  %v7219_v1 = vpop.permute.xlu0 %5433  ;;  %v620_v63 = vld [vmem:[#allocation2 + $0x209] sm:$0xff] }
  0xda   : > { %9588 = vst [vmem:[#allocation22_spill] sm:$0xff] %v7219_v1  ;;  %5718 = vrot.lane.b32.xlu1 %v7066_v46, %s6694_s24  ;;  %v5747_v46 = vpack.i.bf16 %v577_v4, %v576_v44  ;;  %v580_v4 = vld [vmem:[#allocation2 + $0x188] sm:$0xff] }
  0xdb   : > { %5723 = vrot.lane.b32.xlu0 %v6940_v57, %s6695_s26 }
  0xdc   : > { %v7225_v2 = vpop.permute.xlu1 %5438 }
  0xdd   : > { %9589 = vst [vmem:[#allocation23_spill] sm:$0xff] %v7225_v2  ;;  %v7227_v3 = vpop.permute.xlu0 %5443  ;;  %v5305_v2 = vunpack.i.l.bf16 %v7115_v22 }
  0xde   : > { %9590 = vst [vmem:[#allocation24_spill] sm:$0xff] %v7227_v3  ;;  %5728 = vrot.lane.b32.xlu1 %v5727_v47, %s6695_s26 }
  0xdf   : > { %5733 = vrot.lane.b32.xlu0 %v6984_v48, %s6696_s10 }
  0xe0   : > { %v7232_v5 = vpop.permute.xlu1 %5448 }
  0xe1   : > { %9591 = vst [vmem:[#allocation25_spill] sm:$0xff] %v7232_v5  ;;  %v7234_v6 = vpop.permute.xlu0 %5453 }
  0xe2   : > { %9592 = vst [vmem:[#allocation26_spill] sm:$0xff] %v7234_v6  ;;  %5738 = vrot.lane.b32.xlu1 %v6988_v54, %s6696_s10 }
  0xe3   : > { %5743 = vrot.lane.b32.xlu0 %v5727_v47, %s6692_s25 }
  0xe4   : > { %v7239_v57 = vpop.permute.xlu1 %5458 }
  0xe5   : > { %9593 = vst [vmem:[#allocation27_spill] sm:$0xff] %v7239_v57  ;;  %v7241_v7 = vpop.permute.xlu0 %5463  ;;  %v581_v57 = vld [vmem:[#allocation2 + $0x190] sm:$0xff] }
  0xe6   : > { %5748 = vrot.lane.b32.xlu1 %v5747_v46, %s6692_s25 }
  0xe7   : > { %5753 = vrot.lane.b32.xlu0 %v6988_v54, %s6693_s19  ;;  %v5777_v54 = vpack.i.bf16 %v674_v26, %v673_v11  ;;  %v612_v11 = vld [vmem:[#allocation2 + $0x189] sm:$0xff]  ;;  %v613_v26 = vld [vmem:[#allocation2 + $0x191] sm:$0xff] }
  0xe8   : > { %v7246_v48 = vpop.permute.xlu1 %5468 }
  0xe9   : > { %v7248_v10 = vpop.permute.xlu0 %5473 }
  0xea   : > { %5758 = vrot.lane.b32.xlu1 %v6992_v55, %s6693_s19  ;;  %v706_v55 = vld [vmem:[#allocation2 + $0x171] sm:$0xff] }
  0xeb   : > { %5763 = vrot.lane.b32.xlu0 %v7070_v58, %s6694_s24  ;;  %v5787_v44 = vpack.i.bf16 %v706_v55, %v705_v62  ;;  %v645_v62 = vld [vmem:[#allocation2 + $0x1a7] sm:$0xff]  ;;  %v646_v55 = vld [vmem:[#allocation2 + $0x1af] sm:$0xff] }
  0xec   : > { %v7254_v28 = vpop.permute.xlu1 %5478 }
  0xed   : > { %v7256_v38 = vpop.permute.xlu0 %5483 }
  0xee   : > { %5768 = vrot.lane.b32.xlu1 %v7074_v59, %s6694_s24 }
  0xef   : > { %5773 = vrot.lane.b32.xlu0 %v5747_v46, %s6695_s26  ;;  %v5797_v46 = vpack.i.bf16 %v581_v57, %v580_v4  ;;  %v5817_v57 = vpack.i.bf16 %v646_v55, %v645_v62  ;;  %v678_v4 = vld [vmem:[#allocation2 + $0x1b0] sm:$0xff]  ;;  %v584_v62 = vld [vmem:[#allocation2 + $0x1c8] sm:$0xff] }
  0xf0   : > { %v7261_v47 = vpop.permute.xlu1 %5488  ;;  %v585_v55 = vld [vmem:[#allocation2 + $0x1d0] sm:$0xff] }
  0xf1   : > { %v7263_v58 = vpop.permute.xlu0 %5493  ;;  %v7313_v1 = vpack.i.bf16 %v585_v55, %v584_v62  ;;  %v7324_v55 = vld [vmem:[#allocation2 + $0x207] sm:$0xff] }
  0xf2   : > { %9594 = vst [vmem:[#allocation28_spill] sm:$0xff] %v7263_v58  ;;  %5778 = vrot.lane.b32.xlu1 %v5777_v54, %s6695_s26 }
  0xf3   : > { %5783 = vrot.lane.b32.xlu0 %v5782_v56, %s6696_s10  ;;  %v5807_v56 = vpack.i.bf16 %v613_v26, %v612_v11  ;;  %v709_v11 = vld [vmem:[#allocation2 + $0x1a9] sm:$0xff]  ;;  %v710_v26 = vld [vmem:[#allocation2 + $0x1b1] sm:$0xff] }
  0xf4   : > { %v7267_v6 = vpop.permute.xlu1 %5498 }
  0xf5   : > { %9595 = vst [vmem:[#allocation29_spill] sm:$0xff] %v7267_v6  ;;  %v7269_v59 = vpop.permute.xlu0 %5503  ;;  %v7326_v6 = vld [vmem:[#allocation2 + $0x20f] sm:$0xff] }
  0xf6   : > { %9596 = vst [vmem:[#allocation30_spill] sm:$0xff] %v7269_v59  ;;  %5788 = vrot.lane.b32.xlu1 %v5787_v44, %s6696_s10  ;;  %v589_v59 = vld [vmem:[#allocation2 + $0x210] sm:$0xff] }
  0xf7   : > { %5793 = vrot.lane.b32.xlu0 %v5777_v54, %s6692_s25  ;;  %v677_v54 = vld [vmem:[#allocation2 + $0x1a8] sm:$0xff] }
  0xf8   : > { %v7273_v36 = vpop.permute.xlu1 %5508 }
  0xf9   : > { %9597 = vst [vmem:[#allocation31_spill] sm:$0xff] %v7273_v36  ;;  %v7275_v33 = vpop.permute.xlu0 %5513  ;;  %v588_v36 = vld [vmem:[#allocation2 + $0x208] sm:$0xff] }
  0xfa   : > { %9598 = vst [vmem:[#allocation32_spill] sm:$0xff] %v7275_v33  ;;  %5798 = vrot.lane.b32.xlu1 %v5797_v46, %s6692_s25  ;;  %v7308_v33 = vld [vmem:[#allocation2 + $0x1ef] sm:$0xff] }
  0xfb   : > { %5803 = vrot.lane.b32.xlu0 %v5787_v44, %s6693_s19  ;;  %v5827_v44 = vpack.i.bf16 %v678_v4, %v677_v54  ;;  %v7304_v54 = vld [vmem:[#allocation2 + $0x1e7] sm:$0xff] }
  0xfc   : > { %v7279_v45 = vpop.permute.xlu1 %5518  ;;  %v430_v4 = vld [vmem:[#allocation2 + $0x7] sm:$0xff]  ;;  %v5867_v62 = vpack.i.bf16 %v7308_v33, %v7304_v54  ;;  %v7338_v33 = vpack.i.bf16 %v589_v59, %v588_v36  ;;  %v5465_v59 = vunpack.i.l.bf16 %v7241_v7 }
  0xfd   : > { %9599 = vst [vmem:[#allocation33_spill] sm:$0xff] %v7279_v45  ;;  %v7281_v51 = vpop.permute.xlu0 %5523  ;;  %v7342_v54 = vld [vmem:[#allocation2 + $0x227] sm:$0xff] }
  0xfe   : > { %9600 = vst [vmem:[#allocation34_spill] sm:$0xff] %v7281_v51  ;;  %5808 = vrot.lane.b32.xlu1 %v5807_v56, %s6693_s19 }
  0xff   : > { %5813 = vrot.lane.b32.xlu0 %v7078_v0, %s6694_s24  ;;  %v5837_v0 = vpack.i.bf16 %v710_v26, %v709_v11  ;;  %v681_v11 = vld [vmem:[#allocation2 + $0x1e8] sm:$0xff]  ;;  %v682_v26 = vld [vmem:[#allocation2 + $0x1f0] sm:$0xff] }
 0x100   : > { %v7286_v5 = vpop.permute.xlu1 %5528  ;;  %v7330_v58 = vpack.i.bf16 %v682_v26, %v681_v11  ;;  %v5386_v11 = vunpack.i.h.bf16 %v7179_v52 }
 0x101   : > { %9601 = vst [vmem:[#allocation35_spill] sm:$0xff] %v7286_v5  ;;  %v7288_v3 = vpop.permute.xlu0 %5533  ;;  %v616_v5 = vld [vmem:[#allocation2 + $0x1c9] sm:$0xff] }
 0x102   : > { %9602 = vst [vmem:[#allocation36_spill] sm:$0xff] %v7288_v3  ;;  %5818 = vrot.lane.b32.xlu1 %v5817_v57, %s6694_s24  ;;  %v617_v3 = vld [vmem:[#allocation2 + $0x1d1] sm:$0xff]  ;;  %v7300_v57 = vld [vmem:[#allocation2 + $0x1c7] sm:$0xff] }
 0x103   : > { %5823 = vrot.lane.b32.xlu0 %v5797_v46, %s6695_s26  ;;  %v7302_v46 = vld [vmem:[#allocation2 + $0x1cf] sm:$0xff]  ;;  %v7318_v43 = vpack.i.bf16 %v617_v3, %v616_v5  ;;  %v7332_v3 = vpack.i.bf16 %v714_v50, %v713_v39  ;;  %v1743_v5 = vsel %vm397_vm1, %v430_v4, %v5305_v2  ;;  %v5385_v50 = vunpack.i.l.bf16 %v7179_v52 }
 0x104   : > { %v7292_v51 = vpop.permute.xlu1 %5538  ;;  %v5390_v39 = vunpack.i.l.bf16 %v7185_v40  ;;  %v1745_v52 = vsel %vm397_vm1, %v7000_v8, %v5310_v30 }
 0x105   : > { %9603 = vst [vmem:[#allocation37_spill] sm:$0xff] %v7292_v51  ;;  %v7294_v32 = vpop.permute.xlu0 %5543  ;;  %v431_v51 = vld [vmem:[#allocation2 + $0xf] sm:$0xff]  ;;  %v1775_v30 = vsel %vm318_vm0, %v1743_v5, %v5385_v50 }
 0x106   : > { %5828 = vrot.lane.b32.xlu1 %v5827_v44, %s6695_s26  ;;  %v5546_v2 = vunpack.i.h.bf16 %v7294_v32 }
 0x107   : > { %5833 = vrot.lane.b32.xlu0 %v5807_v56, %s6696_s10  ;;  %v5306_v56 = vunpack.i.h.bf16 %v7115_v22  ;;  %v5862_v22 = vpack.i.bf16 %v7302_v46, %v7300_v57  ;;  %v7340_v46 = vpack.i.bf16 %v621_v61, %v620_v63  ;;  %v5391_v63 = vunpack.i.h.bf16 %v7185_v40 }
 0x108   : > { %v7298_v25 = vpop.permute.xlu1 %5548  ;;  %v5470_v40 = vunpack.i.l.bf16 %v7246_v48  ;;  %v5545_v61 = vunpack.i.l.bf16 %v7294_v32 }
 0x109   : > { %v7306_v45 = vpop.permute.xlu0 %5553  ;;  %v1744_v57 = vsel %vm397_vm1, %v431_v51, %v5306_v56  ;;  %v5471_v51 = vunpack.i.h.bf16 %v7246_v48  ;;  %v1808_v48 = vsel %vm1807_vm3, %v1775_v30, %v5465_v59  ;;  %v5550_v8 = vunpack.i.l.bf16 %v7298_v25 }
 0x10a   : > { %5838 = vrot.lane.b32.xlu1 %v5837_v0, %s6696_s10 }
 0x10b   : > { %5843 = vrot.lane.b32.xlu0 %v5827_v44, %s6692_s25  ;;  %v5311_v44 = vunpack.i.h.bf16 %v7123_v42  ;;  %v7344_v42 = vld [vmem:[#allocation2 + $0x22f] sm:$0xff] }
 0x10c   : > { %v7316_v24 = vpop.permute.xlu1 %5558 }
 0x10d   : > { %v5564_v27 = vpop.permute.xlu0 %5563  ;;  %v1746_v4 = vsel %vm397_vm1, %v7002_v9, %v5311_v44  ;;  %v1776_v9 = vsel %vm318_vm0, %v1744_v57, %v5386_v11 }
 0x10e   : > { %5848 = vrot.lane.b32.xlu1 %v7313_v1, %s6692_s25  ;;  %v1778_v44 = vsel %vm318_vm0, %v1746_v4, %v5391_v63  ;;  %v5566_v56 = vunpack.i.h.bf16 %v5564_v27  ;;  %v5565_v41 = vunpack.i.l.bf16 %v5564_v27  ;;  %v5551_v27 = vunpack.i.h.bf16 %v7298_v25 }
 0x10f   : > { %5853 = vrot.lane.b32.xlu0 %v5837_v0, %s6693_s19  ;;  %v5466_v0 = vunpack.i.h.bf16 %v7241_v7  ;;  %v1777_v7 = vsel %vm318_vm0, %v1745_v52, %v5390_v39  ;;  %v1811_v50 = vsel %vm1807_vm3, %v1778_v44, %v5471_v51 }
 0x110   : > { %v5569_v36 = vpop.permute.xlu1 %5568  ;;  %v1810_v5 = vsel %vm1807_vm3, %v1777_v7, %v5470_v40 }
 0x111   : > { %v5574_v26 = vpop.permute.xlu0 %5573  ;;  %v1809_v35 = vsel %vm1807_vm3, %v1776_v9, %v5466_v0  ;;  %v5570_v63 = vunpack.i.l.bf16 %v5569_v36 }
 0x112   : > { %5858 = vrot.lane.b32.xlu1 %v7318_v43, %s6693_s19  ;;  %v5576_v31 = vunpack.i.h.bf16 %v5574_v26  ;;  %v5575_v57 = vunpack.i.l.bf16 %v5574_v26  ;;  %v1842_v39 = vsel %vm1840_vm4, %v1809_v35, %v5546_v2  ;;  %v5571_v26 = vunpack.i.h.bf16 %v5569_v36 }
 0x113   : > { %5863 = vrot.lane.b32.xlu0 %v5862_v22, %s6694_s24  ;;  %v1841_v22 = vsel %vm1840_vm4, %v1808_v48, %v5545_v61  ;;  %v1875_v0 = vsel %vm1873_vm5, %v1842_v39, %v5566_v56  ;;  %v1843_v61 = vsel %vm1840_vm4, %v1810_v5, %v5550_v8 }
 0x114   : > { %v5579_v32 = vpop.permute.xlu1 %5578  ;;  %v1874_v4 = vsel %vm1873_vm5, %v1841_v22, %v5565_v41  ;;  %v1908_v25 = vsel %vm1906_vm6, %v1875_v0, %v5576_v31  ;;  %v1844_v41 = vsel %vm1840_vm4, %v1811_v50, %v5551_v27  ;;  %v5396_v27 = vunpack.i.h.bf16 %v7187_v53 }
 0x115   : > { %v5584_v11 = vpop.permute.xlu0 %5583  ;;  %v5580_v51 = vunpack.i.l.bf16 %v5579_v32  ;;  %v5581_v35 = vunpack.i.h.bf16 %v5579_v32  ;;  %v1877_v31 = vsel %vm1873_vm5, %v1844_v41, %v5571_v26  ;;  %v5395_v0 = vunpack.i.l.bf16 %v7187_v53 }
 0x116   : > { %5868 = vrot.lane.b32.xlu1 %v5867_v62, %s6694_s24  ;;  %v5586_v59 = vunpack.i.h.bf16 %v5584_v11  ;;  %v5585_v52 = vunpack.i.l.bf16 %v5584_v11  ;;  %v1907_v62 = vsel %vm1906_vm6, %v1874_v4, %v5575_v57  ;;  %v7412_v4 = vld [vmem:[#allocation2 + $0x230] sm:$0xff]  ;;  %v5401_v26 = vunpack.i.h.bf16 %v7193_v34 }
 0x117   : > { %5873 = vrot.lane.b32.xlu0 %v7313_v1, %s6695_s26  ;;  %v1876_v1 = vsel %vm1873_vm5, %v1843_v61, %v5570_v63  ;;  %v1910_v11 = vsel %vm1906_vm6, %v1877_v31, %v5581_v35  ;;  %v9604_v61 = vunpack.i.l.bf16 %v7121_v16  ;;  %v5475_v53 = vunpack.i.l.bf16 %v7248_v10 }
 0x118   : > { %v5589_v40 = vpop.permute.xlu1 %5588  ;;  %v1940_v36 = vsel %vm1939_vm7, %v1907_v62, %v5585_v52  ;;  %v1941_v56 = vsel %vm1939_vm7, %v1908_v25, %v5586_v59  ;;  %v1909_v8 = vsel %vm1906_vm6, %v1876_v1, %v5580_v51  ;;  %v7410_v52 = vld [vmem:[#allocation2 + $0x228] sm:$0xff]  ;;  %v5480_v1 = vunpack.i.l.bf16 %v7254_v28 }
 0x119   : > { %v5594_v2 = vpop.permute.xlu0 %5593  ;;  %v5591_v9 = vunpack.i.h.bf16 %v5589_v40  ;;  %v5590_v30 = vunpack.i.l.bf16 %v5589_v40  ;;  %v1747_v35 = vsel %vm397_vm1, %v7008_v12, %v9604_v61  ;;  %v5927_v12 = vpack.i.bf16 %v7412_v4, %v7410_v52 }
 0x11a   : > { %v5596_v7 = vunpack.i.h.bf16 %v5594_v2  ;;  %v5595_v44 = vunpack.i.l.bf16 %v5594_v2  ;;  %5878 = vrot.lane.b32.xlu1 %v7330_v58, %s6695_s26  ;;  %v5400_v2 = vunpack.i.l.bf16 %v7193_v34  ;;  %v5481_v34 = vunpack.i.h.bf16 %v7254_v28 }
 0x11b   : > { %5883 = vrot.lane.b32.xlu0 %v7318_v43, %s6696_s10  ;;  %v5320_v43 = vunpack.i.l.bf16 %v7129_v29  ;;  %v1942_v63 = vsel %vm1939_vm7, %v1909_v8, %v5590_v30  ;;  %v1943_v59 = vsel %vm1939_vm7, %v1910_v11, %v5591_v9  ;;  %v9605_v9 = vunpack.i.h.bf16 %v7121_v16 }
 0x11c   : > { %v5599_v48 = vpop.permute.xlu1 %5598  ;;  %v1973_v32 = vsel %vm1972_vm8, %v1940_v36, %v5595_v44  ;;  %v1974_v57 = vsel %vm1972_vm8, %v1941_v56, %v5596_v7  ;;  %v5476_v44 = vunpack.i.h.bf16 %v7248_v10  ;;  %v5556_v16 = vunpack.i.h.bf16 %v7306_v45 }
 0x11d   : > { %v5601_v5 = vunpack.i.h.bf16 %v5599_v48  ;;  %v5600_v50 = vunpack.i.l.bf16 %v5599_v48  ;;  %v5604_v22 = vpop.permute.xlu0 %5603  ;;  %v2005_v39 = vpack.c.bf16 %v1974_v57, %v1973_v32  ;;  %v1748_v30 = vsel %vm397_vm1, %v7010_v13, %v9605_v9 }
 0x11e   : > { %5888 = vrot.lane.b32.xlu1 %v7332_v3, %s6696_s10  ;;  %v5555_v36 = vunpack.i.l.bf16 %v7306_v45  ;;  %v1749_v13 = vsel %vm397_vm1, %v7012_v14, %v5320_v43  ;;  %v5606_v56 = vunpack.i.h.bf16 %v5604_v22  ;;  %v5605_v31 = vunpack.i.l.bf16 %v5604_v22 }
 0x11f   : > { %v1975_v51 = vsel %vm1972_vm8, %v1942_v63, %v5600_v50  ;;  %v1976_v40 = vsel %vm1972_vm8, %v1943_v59, %v5601_v5  ;;  %5893 = vrot.lane.b32.xlu0 %v7330_v58, %s6692_s25  ;;  %5174 = vmatprep.mubr.msk.bf16.mxu0 %vm2041_vm9, %v2005_v39  ;;  %v9606_v58 = vunpack.i.h.bf16 %v7129_v29  ;;  %v1779_v29 = vsel %vm318_vm0, %v1747_v35, %v5395_v0 }
 0x120   : > { %v5609_v62 = vpop.permute.xlu1 %5608  ;;  %v2006_v25 = vpack.c.bf16 %v1976_v40, %v1975_v51  ;;  %v1781_v28 = vsel %vm318_vm0, %v1749_v13, %v5400_v2  ;;  %v1812_v45 = vsel %vm1807_vm3, %v1779_v29, %v5475_v53  ;;  %v5560_v14 = vunpack.i.l.bf16 %v7316_v24 }
 0x121   : > { %v1750_v7 = vsel %vm397_vm1, %v7014_v15, %v9606_v58  ;;  %v5614_v41 = vpop.permute.xlu0 %5613  ;;  %v1780_v15 = vsel %vm318_vm0, %v1748_v30, %v5396_v27  ;;  %v1814_v5 = vsel %vm1807_vm3, %v1781_v28, %v5480_v1  ;;  %v5561_v22 = vunpack.i.h.bf16 %v7316_v24  ;;  %v718_v1 = vld [vmem:[#allocation2 + $0x231] sm:$0xff] }
 0x122   : > { %5898 = vrot.lane.b32.xlu1 %v7338_v33, %s6692_s25  ;;  %5175 = vmatmul.mubr.msk.bf16.vlgmr.msra.gmra.mrb[0].mxu0 %vm2041_vm9, %v2006_v25  ;;  %v1782_v10 = vsel %vm318_vm0, %v1750_v7, %v5401_v26  ;;  %v1813_v48 = vsel %vm1807_vm3, %v1780_v15, %v5476_v44  ;;  %v5616_v32 = vunpack.i.h.bf16 %v5614_v41  ;;  %v5615_v57 = vunpack.i.l.bf16 %v5614_v41 }
 0x123   : > { %5903 = vrot.lane.b32.xlu0 %v7332_v3, %s6693_s19  ;;  %v1815_v50 = vsel %vm1807_vm3, %v1782_v10, %v5481_v34  ;;  %v1845_v3 = vsel %vm1840_vm4, %v1812_v45, %v5555_v36  ;;  %v1846_v39 = vsel %vm1840_vm4, %v1813_v48, %v5556_v16  ;;  %v5610_v43 = vunpack.i.l.bf16 %v5609_v62  ;;  %v717_v34 = vld [vmem:[#allocation2 + $0x229] sm:$0xff] }
 0x124   : > { %v5619_v8 = vpop.permute.xlu1 %5618  ;;  %v9607_v59 = vpack.i.bf16 %v7326_v6, %v7324_v55  ;;  %v1878_v0 = vsel %vm1873_vm5, %v1845_v3, %v5605_v31  ;;  %v1879_v26 = vsel %vm1873_vm5, %v1846_v39, %v5606_v56  ;;  %v5611_v51 = vunpack.i.h.bf16 %v5609_v62 }
 0x125   : > { %v5624_v11 = vpop.permute.xlu0 %5623  ;;  %v5620_v40 = vunpack.i.l.bf16 %v5619_v8  ;;  %v1847_v35 = vsel %vm1840_vm4, %v1814_v5, %v5560_v14  ;;  %v1911_v2 = vsel %vm1906_vm6, %v1878_v0, %v5615_v57  ;;  %v1912_v24 = vsel %vm1906_vm6, %v1879_v26, %v5616_v32 }
 0x126   : > { %5908 = vrot.lane.b32.xlu1 %v7340_v46, %s6693_s19  ;;  %v5626_v27 = vunpack.i.h.bf16 %v5624_v11  ;;  %v5625_v63 = vunpack.i.l.bf16 %v5624_v11  ;;  %v5621_v53 = vunpack.i.h.bf16 %v5619_v8  ;;  %v9608_v55 = vpack.i.bf16 %v7344_v42, %v7342_v54 }
 0x127   : > { %5913 = vrot.lane.b32.xlu0 %v9607_v59, %s6694_s24  ;;  %v1848_v62 = vsel %vm1840_vm4, %v1815_v50, %v5561_v22  ;;  %v1880_v7 = vsel %vm1873_vm5, %v1847_v35, %v5610_v43  ;;  %v5937_v31 = vpack.i.bf16 %v718_v1, %v717_v34  ;;  %v5326_v57 = vunpack.i.h.bf16 %v7131_v17 }
 0x128   : > { %v5629_v61 = vpop.permute.xlu1 %5628  ;;  %v1944_v44 = vsel %vm1939_vm7, %v1911_v2, %v5625_v63  ;;  %v1945_v41 = vsel %vm1939_vm7, %v1912_v24, %v5626_v27  ;;  %v1881_v16 = vsel %vm1873_vm5, %v1848_v62, %v5611_v51  ;;  %v1913_v36 = vsel %vm1906_vm6, %v1880_v7, %v5620_v40 }
 0x129   : > { %v5634_v25 = vpop.permute.xlu0 %5633  ;;  %v5631_v9 = vunpack.i.h.bf16 %v5629_v61  ;;  %v5630_v30 = vunpack.i.l.bf16 %v5629_v61  ;;  %v1914_v15 = vsel %vm1906_vm6, %v1881_v16, %v5621_v53  ;;  %v5325_v11 = vunpack.i.l.bf16 %v7131_v17 }
 0x12a   : > { %v5636_v58 = vunpack.i.h.bf16 %v5634_v25  ;;  %v5635_v6 = vunpack.i.l.bf16 %v5634_v25  ;;  %5918 = vrot.lane.b32.xlu1 %v9608_v55, %s6694_s24  ;;  %v5331_v5 = vunpack.i.h.bf16 %v7137_v37  ;;  %v5330_v4 = vunpack.i.l.bf16 %v7137_v37 }
 0x12b   : > { %5923 = vrot.lane.b32.xlu0 %v7338_v33, %s6695_s26  ;;  %v1946_v56 = vsel %vm1939_vm7, %v1913_v36, %v5630_v30  ;;  %v1947_v33 = vsel %vm1939_vm7, %v1914_v15, %v5631_v9  ;;  %v5411_v50 = vunpack.i.h.bf16 %v7201_v49  ;;  %v5410_v3 = vunpack.i.l.bf16 %v7201_v49 }
 0x12c   : > { %v1977_v54 = vsel %vm1972_vm8, %v1944_v44, %v5635_v6  ;;  %v1978_v42 = vsel %vm1972_vm8, %v1945_v41, %v5636_v58  ;;  %v5639_v13 = vpop.permute.xlu1 %5638  ;;  %v5485_v39 = vunpack.i.l.bf16 %v7256_v38  ;;  %v1752_v22 = vsel %vm397_vm1, %v7028_v19, %v5326_v57 }
 0x12d   : > { %v5641_v29 = vunpack.i.h.bf16 %v5639_v13  ;;  %v5640_v10 = vunpack.i.l.bf16 %v5639_v13  ;;  %v5644_v28 = vpop.permute.xlu0 %5643  ;;  %v2007_v45 = vpack.c.bf16 %v1978_v42, %v1977_v54  ;;  %v1751_v43 = vsel %vm397_vm1, %v7026_v18, %v5325_v11 }
 0x12e   : > { %5928 = vrot.lane.b32.xlu1 %v5927_v12, %s6695_s26  ;;  %v5406_v12 = vunpack.i.h.bf16 %v7195_v60  ;;  %v1754_v37 = vsel %vm397_vm1, %v7032_v21, %v5331_v5  ;;  %v5486_v27 = vunpack.i.h.bf16 %v7256_v38  ;;  %v5490_v59 = vunpack.i.l.bf16 %v7261_v47  ;;  %s6701_s26 = smov [#allocation4]  }
 0x12f   : > { %v1979_v8 = vsel %vm1972_vm8, %v1946_v56, %v5640_v10  ;;  %v1980_v48 = vsel %vm1972_vm8, %v1947_v33, %v5641_v29  ;;  %5933 = vrot.lane.b32.xlu0 %v7340_v46, %s6696_s10  ;;  %5178 = vmatprep.mubr.msk.bf16.mxu0 %vm2041_vm9, %v2007_v45  ;;  %v5405_v46 = vunpack.i.l.bf16 %v7195_v60  ;;  %v5491_v60 = vunpack.i.h.bf16 %v7261_v47 }
 0x130   : > { %v5649_v14 = vpop.permute.xlu1 %5648  ;;  %v2008_v32 = vpack.c.bf16 %v1980_v48, %v1979_v8  ;;  %v5646_v49 = vunpack.i.h.bf16 %v5644_v28  ;;  %v5645_v0 = vunpack.i.l.bf16 %v5644_v28  ;;  %v1753_v26 = vsel %vm397_vm1, %v7030_v20, %v5330_v4 }
 0x131   : > { %v5654_v52 = vpop.permute.xlu0 %5653  ;;  %v1783_v19 = vsel %vm318_vm0, %v1751_v43, %v5405_v46  ;;  %v1784_v51 = vsel %vm318_vm0, %v1752_v22, %v5406_v12  ;;  %v1786_v18 = vsel %vm318_vm0, %v1754_v37, %v5411_v50  ;;  %v1785_v21 = vsel %vm318_vm0, %v1753_v26, %v5410_v3 }
 0x132   : > { %5938 = vrot.lane.b32.xlu1 %v5937_v31, %s6696_s10  ;;  %5179 = vmatmul.mubr.msk.bf16.gmra.mrb[4].mxu0 %vm2041_vm9, %v2008_v32  ;;  %v1816_v38 = vsel %vm1807_vm3, %v1783_v19, %v5485_v39  ;;  %v5656_v40 = vunpack.i.h.bf16 %v5654_v52  ;;  %v5655_v61 = vunpack.i.l.bf16 %v5654_v52  ;;  %v1817_v47 = vsel %vm1807_vm3, %v1784_v51, %v5486_v27  ;;  %v9611_v51 = vld [vmem:[#allocation19_spill] sm:$0xff] }
 0x133   : > { %v5650_v2 = vunpack.i.l.bf16 %v5649_v14  ;;  %v1818_v20 = vsel %vm1807_vm3, %v1785_v21, %v5490_v59  ;;  %v1819_v9 = vsel %vm1807_vm3, %v1786_v18, %v5491_v60  ;;  %v1849_v30 = vsel %vm1840_vm4, %v1816_v38, %v5645_v0  ;;  %v9610_v0 = vld [vmem:[#allocation18_spill] sm:$0xff]  ;;  %v9612_v38 = vld [vmem:[#allocation28_spill] sm:$0xff] }
 0x134   : > { %v5659_v17 = vpop.permute.xlu1 %5658  ;;  %v1850_v58 = vsel %vm1840_vm4, %v1817_v47, %v5646_v49  ;;  %v5651_v6 = vunpack.i.h.bf16 %v5649_v14  ;;  %v1882_v44 = vsel %vm1873_vm5, %v1849_v30, %v5655_v61  ;;  %v5336_v37 = vunpack.i.h.bf16 %v7139_v23  ;;  %v6594_v47 = vld [vmem:[#allocation2 + $0xc7] sm:$0xff] }
 0x135   : > { %v5664_v63 = vpop.permute.xlu0 %5663  ;;  %v5660_v55 = vunpack.i.l.bf16 %v5659_v17  ;;  %v1883_v41 = vsel %vm1873_vm5, %v1850_v58, %v5656_v40  ;;  %v5661_v34 = vunpack.i.h.bf16 %v5659_v17  ;;  %v1851_v36 = vsel %vm1840_vm4, %v1818_v20, %v5650_v2 }
 0x136   : > { %v5666_v24 = vunpack.i.h.bf16 %v5664_v63  ;;  %v5665_v53 = vunpack.i.l.bf16 %v5664_v63  ;;  %v1852_v56 = vsel %vm1840_vm4, %v1819_v9, %v5651_v6  ;;  %v5335_v27 = vunpack.i.l.bf16 %v7139_v23  ;;  %v9609_v63 = vld [vmem:[#allocation9_spill] sm:$0xff] }
 0x137   : > { %v1884_v33 = vsel %vm1873_vm5, %v1851_v36, %v5660_v55  ;;  %v1885_v48 = vsel %vm1873_vm5, %v1852_v56, %v5661_v34  ;;  %v5341_v60 = vunpack.i.h.bf16 %v9609_v63  ;;  %v5340_v49 = vunpack.i.l.bf16 %v9609_v63  ;;  %v9615_v9 = vld [vmem:[#allocation29_spill] sm:$0xff] }
 0x138   : > { %v5669_v35 = vpop.permute.xlu1 %5668  ;;  %v1915_v54 = vsel %vm1906_vm6, %v1882_v44, %v5665_v53  ;;  %v1916_v42 = vsel %vm1906_vm6, %v1883_v41, %v5666_v24  ;;  %v5416_v26 = vunpack.i.h.bf16 %v9610_v0  ;;  %v5415_v19 = vunpack.i.l.bf16 %v9610_v0  ;;  %v9614_v24 = vld [vmem:[#allocation8_spill] sm:$0xff] }
 0x139   : > { %v5674_v25 = vpop.permute.xlu0 %5673  ;;  %v5670_v1 = vunpack.i.l.bf16 %v5669_v35  ;;  %v5671_v13 = vunpack.i.h.bf16 %v5669_v35  ;;  %v5421_v18 = vunpack.i.h.bf16 %v9611_v51  ;;  %v5420_v21 = vunpack.i.l.bf16 %v9611_v51  ;;  %v9613_v35 = vld [vmem:[#allocation7_spill] sm:$0xff] }
 0x13a   : > { %v5676_v62 = vunpack.i.h.bf16 %v5674_v25  ;;  %v5675_v7 = vunpack.i.l.bf16 %v5674_v25  ;;  %v5495_v40 = vunpack.i.l.bf16 %v9612_v38  ;;  %v1756_v23 = vsel %vm397_vm1, %v9613_v35, %v5336_v37 }
 0x13b   : > { %v1917_v14 = vsel %vm1906_vm6, %v1884_v33, %v5670_v1  ;;  %v1918_v5 = vsel %vm1906_vm6, %v1885_v48, %v5671_v13  ;;  %v1755_v2 = vsel %vm397_vm1, %v6594_v47, %v5335_v27  ;;  %v1758_v53 = vsel %vm397_vm1, %v9614_v24, %v5341_v60 }
 0x13c   : > { %v5679_v16 = vpop.permute.xlu1 %5678  ;;  %v1948_v31 = vsel %vm1939_vm7, %v1915_v54, %v5675_v7  ;;  %v1949_v8 = vsel %vm1939_vm7, %v1916_v42, %v5676_v62  ;;  %v5496_v25 = vunpack.i.h.bf16 %v9612_v38  ;;  %v5501_v30 = vunpack.i.h.bf16 %v9615_v9  ;;  %v6595_v62 = vld [vmem:[#allocation2 + $0xe7] sm:$0xff] }
 0x13d   : > { %v5684_v15 = vpop.permute.xlu0 %5683  ;;  %v5681_v29 = vunpack.i.h.bf16 %v5679_v16  ;;  %v5680_v10 = vunpack.i.l.bf16 %v5679_v16  ;;  %v5500_v58 = vunpack.i.l.bf16 %v9615_v9  ;;  %v1757_v7 = vsel %vm397_vm1, %v6595_v62, %v5340_v49  ;;  %v9618_v62 = vld [vmem:[#allocation20_spill] sm:$0xff] }
 0x13e   : > { %v5686_v28 = vunpack.i.h.bf16 %v5684_v15  ;;  %v5685_v45 = vunpack.i.l.bf16 %v5684_v15  ;;  %v1787_v44 = vsel %vm318_vm0, %v1755_v2, %v5415_v19  ;;  %v1788_v41 = vsel %vm318_vm0, %v1756_v23, %v5416_v26 }
 0x13f   : > { %v1950_v50 = vsel %vm1939_vm7, %v1917_v14, %v5680_v10  ;;  %v1951_v3 = vsel %vm1939_vm7, %v1918_v5, %v5681_v29  ;;  %v1790_v34 = vsel %vm318_vm0, %v1758_v53, %v5421_v18  ;;  %v1789_v1 = vsel %vm318_vm0, %v1757_v7, %v5420_v21 }
 0x140   : > { %v1981_v32 = vsel %vm1972_vm8, %v1948_v31, %v5685_v45  ;;  %v1982_v57 = vsel %vm1972_vm8, %v1949_v8, %v5686_v28  ;;  %v5689_v11 = vpop.permute.xlu1 %5688  ;;  %v1820_v16 = vsel %vm1807_vm3, %v1787_v44, %v5495_v40  ;;  %v1821_v13 = vsel %vm1807_vm3, %v1788_v41, %v5496_v25  ;;  %v9616_v25 = vld [vmem:[#allocation10_spill] sm:$0xff]  ;;  %v9619_v41 = vld [vmem:[#allocation21_spill] sm:$0xff] }
 0x141   : > { %v5691_v52 = vunpack.i.h.bf16 %v5689_v11  ;;  %v5690_v4 = vunpack.i.l.bf16 %v5689_v11  ;;  %v5694_v12 = vpop.permute.xlu0 %5693  ;;  %v2009_v46 = vpack.c.bf16 %v1982_v57, %v1981_v32  ;;  %v1822_v45 = vsel %vm1807_vm3, %v1789_v1, %v5500_v58 }
 0x142   : > { %v5696_v6 = vunpack.i.h.bf16 %v5694_v12  ;;  %v5695_v55 = vunpack.i.l.bf16 %v5694_v12  ;;  %v1823_v56 = vsel %vm1807_vm3, %v1790_v34, %v5501_v30  ;;  %v5345_v9 = vunpack.i.l.bf16 %v9616_v25  ;;  %v9617_v30 = vld [vmem:[#allocation11_spill] sm:$0xff] }
 0x143   : > { %v1983_v39 = vsel %vm1972_vm8, %v1950_v50, %v5690_v4  ;;  %v1984_v17 = vsel %vm1972_vm8, %v1951_v3, %v5691_v52  ;;  %5182 = vmatprep.mubr.msk.bf16.mxu0 %vm2041_vm9, %v2009_v46  ;;  %v5351_v58 = vunpack.i.h.bf16 %v9617_v30  ;;  %v5426_v7 = vunpack.i.h.bf16 %v9618_v62 }
 0x144   : > { %v7549_v22 = vpop.permute.xlu1 %5698  ;;  %v2010_v43 = vpack.c.bf16 %v1984_v17, %v1983_v39  ;;  %v1853_v33 = vsel %vm1840_vm4, %v1820_v16, %v5695_v55  ;;  %v1854_v31 = vsel %vm1840_vm4, %v1821_v13, %v5696_v6  ;;  %v5350_v55 = vunpack.i.l.bf16 %v9617_v30  ;;  %v9620_v16 = vld [vmem:[#allocation30_spill] sm:$0xff] }
 0x145   : > { %v5704_v59 = vpop.permute.xlu0 %5703  ;;  %v5700_v15 = vunpack.i.l.bf16 %v7549_v22  ;;  %v5701_v8 = vunpack.i.h.bf16 %v7549_v22  ;;  %v5425_v44 = vunpack.i.l.bf16 %v9618_v62  ;;  %v5431_v34 = vunpack.i.h.bf16 %v9619_v41 }
 0x146   : > { %5183 = vmatmul.mubr.msk.bf16.gmra.mrb[8].mxu0 %vm2041_vm9, %v2010_v43  ;;  %v5706_v36 = vunpack.i.h.bf16 %v5704_v59  ;;  %v5705_v54 = vunpack.i.l.bf16 %v5704_v59  ;;  %v5430_v1 = vunpack.i.l.bf16 %v9619_v41 }
 0x147   : > { %v1855_v12 = vsel %vm1840_vm4, %v1822_v45, %v5700_v15  ;;  %v1856_v27 = vsel %vm1840_vm4, %v1823_v56, %v5701_v8  ;;  %v6597_v15 = vld [vmem:[#allocation2 + $0x107] sm:$0xff]  ;;  %v5506_v45 = vunpack.i.h.bf16 %v9620_v16 }
 0x148   : > { %v5709_v61 = vpop.permute.xlu1 %5708  ;;  %v1886_v57 = vsel %vm1873_vm5, %v1853_v33, %v5705_v54  ;;  %v1887_v11 = vsel %vm1873_vm5, %v1854_v31, %v5706_v36  ;;  %v5505_v36 = vunpack.i.l.bf16 %v9620_v16  ;;  %v9621_v33 = vld [vmem:[#allocation31_spill] sm:$0xff] }
 0x149   : > { %v5714_v20 = vpop.permute.xlu0 %5713  ;;  %v5710_v48 = vunpack.i.l.bf16 %v5709_v61  ;;  %v5711_v5 = vunpack.i.h.bf16 %v5709_v61  ;;  %v5511_v31 = vunpack.i.h.bf16 %v9621_v33  ;;  %v5510_v8 = vunpack.i.l.bf16 %v9621_v33 }
 0x14a   : > { %v5716_v29 = vunpack.i.h.bf16 %v5714_v20  ;;  %v5715_v10 = vunpack.i.l.bf16 %v5714_v20  ;;  %v5346_v20 = vunpack.i.h.bf16 %v9616_v25 }
 0x14b   : > { %v1888_v63 = vsel %vm1873_vm5, %v1855_v12, %v5710_v48  ;;  %v1889_v49 = vsel %vm1873_vm5, %v1856_v27, %v5711_v5 }
 0x14c   : > { %v5719_v42 = vpop.permute.xlu1 %5718  ;;  %v1919_v46 = vsel %vm1906_vm6, %v1886_v57, %v5715_v10  ;;  %v1920_v50 = vsel %vm1906_vm6, %v1887_v11, %v5716_v29  ;;  %v1759_v29 = vsel %vm397_vm1, %v6597_v15, %v5345_v9  ;;  %v6598_v10 = vld [vmem:[#allocation2 + $0x12f] sm:$0xff] }
 0x14d   : > { %v5724_v28 = vpop.permute.xlu0 %5723  ;;  %v5720_v52 = vunpack.i.l.bf16 %v5719_v42  ;;  %v5721_v3 = vunpack.i.h.bf16 %v5719_v42  ;;  %v6596_v42 = vld [vmem:[#allocation2 + $0x10f] sm:$0xff]  ;;  %v1791_v11 = vsel %vm318_vm0, %v1759_v29, %v5425_v44 }
 0x14e   : > { %v5726_v14 = vunpack.i.h.bf16 %v5724_v28  ;;  %v5725_v32 = vunpack.i.l.bf16 %v5724_v28  ;;  %v1760_v13 = vsel %vm397_vm1, %v6596_v42, %v5346_v20  ;;  %v1762_v28 = vsel %vm397_vm1, %v6598_v10, %v5351_v58 }
 0x14f   : > { %v1921_v0 = vsel %vm1906_vm6, %v1888_v63, %v5720_v52  ;;  %v1922_v18 = vsel %vm1906_vm6, %v1889_v49, %v5721_v3  ;;  %v1792_v5 = vsel %vm318_vm0, %v1760_v13, %v5426_v7  ;;  %v1794_v52 = vsel %vm318_vm0, %v1762_v28, %v5431_v34 }
 0x150   : > { %v5729_v4 = vpop.permute.xlu1 %5728  ;;  %v1952_v60 = vsel %vm1939_vm7, %v1919_v46, %v5725_v32  ;;  %v1953_v59 = vsel %vm1939_vm7, %v1920_v50, %v5726_v14  ;;  %v6599_v32 = vld [vmem:[#allocation2 + $0x127] sm:$0xff]  ;;  %v1824_v12 = vsel %vm1807_vm3, %v1791_v11, %v5505_v36  ;;  %v1827_v63 = vsel %vm1807_vm3, %v1794_v52, %v5511_v31  ;;  %v9623_v31 = vld [vmem:[#allocation13_spill] sm:$0xff] }
 0x151   : > { %v5734_v39 = vpop.permute.xlu0 %5733  ;;  %v5731_v17 = vunpack.i.h.bf16 %v5729_v4  ;;  %v5730_v22 = vunpack.i.l.bf16 %v5729_v4  ;;  %v1761_v57 = vsel %vm397_vm1, %v6599_v32, %v5350_v55  ;;  %v9624_v32 = vld [vmem:[#allocation22_spill] sm:$0xff] }
 0x152   : > { %v5736_v43 = vunpack.i.h.bf16 %v5734_v39  ;;  %v5735_v37 = vunpack.i.l.bf16 %v5734_v39  ;;  %v1793_v4 = vsel %vm318_vm0, %v1761_v57, %v5430_v1  ;;  %v1825_v39 = vsel %vm1807_vm3, %v1792_v5, %v5506_v45  ;;  %v9622_v45 = vld [vmem:[#allocation12_spill] sm:$0xff]  ;;  %v9625_v5 = vld [vmem:[#allocation23_spill] sm:$0xff] }
 0x153   : > { %v1954_v35 = vsel %vm1939_vm7, %v1921_v0, %v5730_v22  ;;  %v1955_v23 = vsel %vm1939_vm7, %v1922_v18, %v5731_v17  ;;  %v1826_v27 = vsel %vm1807_vm3, %v1793_v4, %v5510_v8  ;;  %v5355_v33 = vunpack.i.l.bf16 %v9622_v45 }
 0x154   : > { %v1985_v26 = vsel %vm1972_vm8, %v1952_v60, %v5735_v37  ;;  %v1986_v19 = vsel %vm1972_vm8, %v1953_v59, %v5736_v43  ;;  %v5739_v51 = vpop.permute.xlu1 %5738  ;;  %v5361_v8 = vunpack.i.h.bf16 %v9623_v31  ;;  %v5436_v57 = vunpack.i.h.bf16 %v9624_v32 }
 0x155   : > { %v5741_v21 = vunpack.i.h.bf16 %v5739_v51  ;;  %v5740_v38 = vunpack.i.l.bf16 %v5739_v51  ;;  %v5744_v40 = vpop.permute.xlu0 %5743  ;;  %v2011_v61 = vpack.c.bf16 %v1986_v19, %v1985_v26  ;;  %v5435_v11 = vunpack.i.l.bf16 %v9624_v32 }
 0x156   : > { %v5746_v48 = vunpack.i.h.bf16 %v5744_v40  ;;  %v5745_v14 = vunpack.i.l.bf16 %v5744_v40  ;;  %v5441_v52 = vunpack.i.h.bf16 %v9625_v5  ;;  %v5440_v4 = vunpack.i.l.bf16 %v9625_v5 }
 0x157   : > { %v1987_v47 = vsel %vm1972_vm8, %v1954_v35, %v5740_v38  ;;  %v1988_v2 = vsel %vm1972_vm8, %v1955_v23, %v5741_v21  ;;  %5186 = vmatprep.mubr.msk.bf16.mxu0 %vm2041_vm9, %v2011_v61 }
 0x158   : > { %v7601_v24 = vpop.permute.xlu1 %5748  ;;  %v2012_v53 = vpack.c.bf16 %v1988_v2, %v1987_v47  ;;  %v1857_v60 = vsel %vm1840_vm4, %v1824_v12, %v5745_v14  ;;  %v1858_v59 = vsel %vm1840_vm4, %v1825_v39, %v5746_v48  ;;  %v5360_v14 = vunpack.i.l.bf16 %v9623_v31  ;;  %v9626_v12 = vld [vmem:[#allocation32_spill] sm:$0xff] }
 0x159   : > { %v5754_v6 = vpop.permute.xlu0 %5753  ;;  %v5750_v17 = vunpack.i.l.bf16 %v7601_v24  ;;  %v5751_v49 = vunpack.i.h.bf16 %v7601_v24 }
 0x15a   : > { %5187 = vmatmul.mubr.msk.bf16.gmra.mrb[12].mxu0 %vm2041_vm9, %v2012_v53  ;;  %v5756_v46 = vunpack.i.h.bf16 %v5754_v6  ;;  %v5755_v50 = vunpack.i.l.bf16 %v5754_v6 }
 0x15b   : > { %v1859_v61 = vsel %vm1840_vm4, %v1826_v27, %v5750_v17  ;;  %v1860_v9 = vsel %vm1840_vm4, %v1827_v63, %v5751_v49  ;;  %v6601_v17 = vld [vmem:[#allocation2 + $0x147] sm:$0xff]  ;;  %v5516_v27 = vunpack.i.h.bf16 %v9626_v12 }
 0x15c   : > { %v5759_v54 = vpop.permute.xlu1 %5758  ;;  %v1890_v51 = vsel %vm1873_vm5, %v1857_v60, %v5755_v50  ;;  %v1891_v18 = vsel %vm1873_vm5, %v1858_v59, %v5756_v46  ;;  %v5515_v46 = vunpack.i.l.bf16 %v9626_v12  ;;  %v9627_v60 = vld [vmem:[#allocation33_spill] sm:$0xff] }
 0x15d   : > { %v5764_v56 = vpop.permute.xlu0 %5763  ;;  %v5760_v0 = vunpack.i.l.bf16 %v5759_v54  ;;  %v5761_v21 = vunpack.i.h.bf16 %v5759_v54  ;;  %v5521_v59 = vunpack.i.h.bf16 %v9627_v60  ;;  %v5520_v49 = vunpack.i.l.bf16 %v9627_v60 }
 0x15e   : > { %v5766_v22 = vunpack.i.h.bf16 %v5764_v56  ;;  %v5765_v43 = vunpack.i.l.bf16 %v5764_v56  ;;  %v5356_v56 = vunpack.i.h.bf16 %v9622_v45 }
 0x15f   : > { %v1892_v30 = vsel %vm1873_vm5, %v1859_v61, %v5760_v0  ;;  %v1893_v55 = vsel %vm1873_vm5, %v1860_v9, %v5761_v21 }
 0x160   : > { %v5769_v3 = vpop.permute.xlu1 %5768  ;;  %v1923_v35 = vsel %vm1906_vm6, %v1890_v51, %v5765_v43  ;;  %v1924_v23 = vsel %vm1906_vm6, %v1891_v18, %v5766_v22  ;;  %v1763_v22 = vsel %vm397_vm1, %v6601_v17, %v5355_v33  ;;  %v6602_v43 = vld [vmem:[#allocation2 + $0x16f] sm:$0xff] }
 0x161   : > { %v5774_v37 = vpop.permute.xlu0 %5773  ;;  %v5770_v38 = vunpack.i.l.bf16 %v5769_v3  ;;  %v5771_v47 = vunpack.i.h.bf16 %v5769_v3  ;;  %v6600_v3 = vld [vmem:[#allocation2 + $0x14f] sm:$0xff]  ;;  %v1795_v18 = vsel %vm318_vm0, %v1763_v22, %v5435_v11 }
 0x162   : > { %v5776_v26 = vunpack.i.h.bf16 %v5774_v37  ;;  %v5775_v19 = vunpack.i.l.bf16 %v5774_v37  ;;  %v1764_v39 = vsel %vm397_vm1, %v6600_v3, %v5356_v56  ;;  %v1766_v37 = vsel %vm397_vm1, %v6602_v43, %v5361_v8 }
 0x163   : > { %v1925_v62 = vsel %vm1906_vm6, %v1892_v30, %v5770_v38  ;;  %v1926_v34 = vsel %vm1906_vm6, %v1893_v55, %v5771_v47  ;;  %v1796_v21 = vsel %vm318_vm0, %v1764_v39, %v5436_v57  ;;  %v1798_v38 = vsel %vm318_vm0, %v1766_v37, %v5441_v52 }
 0x164   : > { %v5779_v40 = vpop.permute.xlu1 %5778  ;;  %v1956_v58 = vsel %vm1939_vm7, %v1923_v35, %v5775_v19  ;;  %v1957_v6 = vsel %vm1939_vm7, %v1924_v23, %v5776_v26  ;;  %v6603_v19 = vld [vmem:[#allocation2 + $0x167] sm:$0xff]  ;;  %v1828_v61 = vsel %vm1807_vm3, %v1795_v18, %v5515_v46  ;;  %v1831_v30 = vsel %vm1807_vm3, %v1798_v38, %v5521_v59 }
 0x165   : > { %v5784_v2 = vpop.permute.xlu0 %5783  ;;  %v5781_v53 = vunpack.i.h.bf16 %v5779_v40  ;;  %v5780_v24 = vunpack.i.l.bf16 %v5779_v40  ;;  %v1765_v51 = vsel %vm397_vm1, %v6603_v19, %v5360_v14  ;;  %v9629_v59 = vld [vmem:[#allocation15_spill] sm:$0xff]  ;;  %v9630_v19 = vld [vmem:[#allocation24_spill] sm:$0xff] }
 0x166   : > { %v5786_v25 = vunpack.i.h.bf16 %v5784_v2  ;;  %v5785_v20 = vunpack.i.l.bf16 %v5784_v2  ;;  %v1797_v40 = vsel %vm318_vm0, %v1765_v51, %v5440_v4  ;;  %v1829_v2 = vsel %vm1807_vm3, %v1796_v21, %v5516_v27  ;;  %v9628_v27 = vld [vmem:[#allocation14_spill] sm:$0xff]  ;;  %v9631_v21 = vld [vmem:[#allocation25_spill] sm:$0xff] }
 0x167   : > { %v1958_v42 = vsel %vm1939_vm7, %v1925_v62, %v5780_v24  ;;  %v1959_v13 = vsel %vm1939_vm7, %v1926_v34, %v5781_v53  ;;  %v1830_v9 = vsel %vm1807_vm3, %v1797_v40, %v5520_v49  ;;  %v5365_v60 = vunpack.i.l.bf16 %v9628_v27 }
 0x168   : > { %v1989_v7 = vsel %vm1972_vm8, %v1956_v58, %v5785_v20  ;;  %v1990_v44 = vsel %vm1972_vm8, %v1957_v6, %v5786_v25  ;;  %v5789_v41 = vpop.permute.xlu1 %5788  ;;  %v5371_v49 = vunpack.i.h.bf16 %v9629_v59  ;;  %v5446_v51 = vunpack.i.h.bf16 %v9630_v19 }
 0x169   : > { %v5791_v1 = vunpack.i.h.bf16 %v5789_v41  ;;  %v5790_v16 = vunpack.i.l.bf16 %v5789_v41  ;;  %v5794_v36 = vpop.permute.xlu0 %5793  ;;  %v2013_v54 = vpack.c.bf16 %v1990_v44, %v1989_v7  ;;  %v5445_v18 = vunpack.i.l.bf16 %v9630_v19 }
 0x16a   : > { %v5796_v0 = vunpack.i.h.bf16 %v5794_v36  ;;  %v5795_v26 = vunpack.i.l.bf16 %v5794_v36  ;;  %v5451_v38 = vunpack.i.h.bf16 %v9631_v21  ;;  %v5450_v40 = vunpack.i.l.bf16 %v9631_v21 }
 0x16b   : > { %v1991_v15 = vsel %vm1972_vm8, %v1958_v42, %v5790_v16  ;;  %v1992_v29 = vsel %vm1972_vm8, %v1959_v13, %v5791_v1  ;;  %5190 = vmatprep.mubr.msk.bf16.mxu0 %vm2041_vm9, %v2013_v54 }
 0x16c   : > { %v7651_v10 = vpop.permute.xlu1 %5798  ;;  %v2014_v28 = vpack.c.bf16 %v1992_v29, %v1991_v15  ;;  %v1861_v58 = vsel %vm1840_vm4, %v1828_v61, %v5795_v26  ;;  %v1862_v6 = vsel %vm1840_vm4, %v1829_v2, %v5796_v0  ;;  %v5370_v26 = vunpack.i.l.bf16 %v9629_v59  ;;  %v9632_v61 = vld [vmem:[#allocation34_spill] sm:$0xff] }
 0x16d   : > { %v5804_v48 = vpop.permute.xlu0 %5803  ;;  %v5800_v53 = vunpack.i.l.bf16 %v7651_v10  ;;  %v5801_v55 = vunpack.i.h.bf16 %v7651_v10 }
 0x16e   : > { %5191 = vmatmul.mubr.msk.bf16.gmra.mrb[16].mxu0 %vm2041_vm9, %v2014_v28  ;;  %v5806_v35 = vunpack.i.h.bf16 %v5804_v48  ;;  %v5805_v23 = vunpack.i.l.bf16 %v5804_v48 }
 0x16f   : > { %v1863_v54 = vsel %vm1840_vm4, %v1830_v9, %v5800_v53  ;;  %v1864_v33 = vsel %vm1840_vm4, %v1831_v30, %v5801_v55  ;;  %v6605_v53 = vld [vmem:[#allocation2 + $0x187] sm:$0xff]  ;;  %v5526_v9 = vunpack.i.h.bf16 %v9632_v61 }
 0x170   : > { %v5809_v50 = vpop.permute.xlu1 %5808  ;;  %v1894_v41 = vsel %vm1873_vm5, %v1861_v58, %v5805_v23  ;;  %v1895_v34 = vsel %vm1873_vm5, %v1862_v6, %v5806_v35  ;;  %v5525_v35 = vunpack.i.l.bf16 %v9632_v61  ;;  %v9633_v58 = vld [vmem:[#allocation35_spill] sm:$0xff] }
 0x171   : > { %v5814_v63 = vpop.permute.xlu0 %5813  ;;  %v5810_v62 = vunpack.i.l.bf16 %v5809_v50  ;;  %v5811_v1 = vunpack.i.h.bf16 %v5809_v50  ;;  %v5531_v6 = vunpack.i.h.bf16 %v9633_v58  ;;  %v5530_v55 = vunpack.i.l.bf16 %v9633_v58 }
 0x172   : > { %v5816_v24 = vunpack.i.h.bf16 %v5814_v63  ;;  %v5815_v25 = vunpack.i.l.bf16 %v5814_v63  ;;  %v5366_v63 = vunpack.i.h.bf16 %v9628_v27 }
 0x173   : > { %v1896_v31 = vsel %vm1873_vm5, %v1863_v54, %v5810_v62  ;;  %v1897_v14 = vsel %vm1873_vm5, %v1864_v33, %v5811_v1 }
 0x174   : > { %v5819_v47 = vpop.permute.xlu1 %5818  ;;  %v1927_v42 = vsel %vm1906_vm6, %v1894_v41, %v5815_v25  ;;  %v1928_v13 = vsel %vm1906_vm6, %v1895_v34, %v5816_v24  ;;  %v1767_v24 = vsel %vm397_vm1, %v6605_v53, %v5365_v60  ;;  %v6606_v25 = vld [vmem:[#allocation2 + $0x1af] sm:$0xff] }
 0x175   : > { %v5824_v20 = vpop.permute.xlu0 %5823  ;;  %v5820_v16 = vunpack.i.l.bf16 %v5819_v47  ;;  %v5821_v15 = vunpack.i.h.bf16 %v5819_v47  ;;  %v6604_v47 = vld [vmem:[#allocation2 + $0x18f] sm:$0xff]  ;;  %v1799_v34 = vsel %vm318_vm0, %v1767_v24, %v5445_v18 }
 0x176   : > { %v5826_v7 = vunpack.i.h.bf16 %v5824_v20  ;;  %v5825_v44 = vunpack.i.l.bf16 %v5824_v20  ;;  %v1768_v2 = vsel %vm397_vm1, %v6604_v47, %v5366_v63  ;;  %v1770_v20 = vsel %vm397_vm1, %v6606_v25, %v5371_v49 }
 0x177   : > { %v1929_v32 = vsel %vm1906_vm6, %v1896_v31, %v5820_v16  ;;  %v1930_v52 = vsel %vm1906_vm6, %v1897_v14, %v5821_v15  ;;  %v1800_v1 = vsel %vm318_vm0, %v1768_v2, %v5446_v51  ;;  %v1802_v16 = vsel %vm318_vm0, %v1770_v20, %v5451_v38 }
 0x178   : > { %v5829_v36 = vpop.permute.xlu1 %5828  ;;  %v1960_v8 = vsel %vm1939_vm7, %v1927_v42, %v5825_v44  ;;  %v1961_v48 = vsel %vm1939_vm7, %v1928_v13, %v5826_v7  ;;  %v6607_v44 = vld [vmem:[#allocation2 + $0x1a7] sm:$0xff]  ;;  %v1832_v54 = vsel %vm1807_vm3, %v1799_v34, %v5525_v35  ;;  %v1835_v31 = vsel %vm1807_vm3, %v1802_v16, %v5531_v6  ;;  %v9635_v6 = vld [vmem:[#allocation17_spill] sm:$0xff] }
 0x179   : > { %v5834_v29 = vpop.permute.xlu0 %5833  ;;  %v5831_v28 = vunpack.i.h.bf16 %v5829_v36  ;;  %v5830_v10 = vunpack.i.l.bf16 %v5829_v36  ;;  %v1769_v41 = vsel %vm397_vm1, %v6607_v44, %v5370_v26  ;;  %v9636_v44 = vld [vmem:[#allocation26_spill] sm:$0xff] }
 0x17a   : > { %v5836_v45 = vunpack.i.h.bf16 %v5834_v29  ;;  %v5835_v56 = vunpack.i.l.bf16 %v5834_v29  ;;  %v1801_v36 = vsel %vm318_vm0, %v1769_v41, %v5450_v40  ;;  %v1833_v29 = vsel %vm1807_vm3, %v1800_v1, %v5526_v9  ;;  %v9634_v9 = vld [vmem:[#allocation16_spill] sm:$0xff]  ;;  %v9637_v1 = vld [vmem:[#allocation27_spill] sm:$0xff] }
 0x17b   : > { %v1962_v3 = vsel %vm1939_vm7, %v1929_v32, %v5830_v10  ;;  %v1963_v39 = vsel %vm1939_vm7, %v1930_v52, %v5831_v28  ;;  %v1834_v33 = vsel %vm1807_vm3, %v1801_v36, %v5530_v55  ;;  %v5375_v58 = vunpack.i.l.bf16 %v9634_v9 }
 0x17c   : > { %v1993_v57 = vsel %vm1972_vm8, %v1960_v8, %v5835_v56  ;;  %v1994_v11 = vsel %vm1972_vm8, %v1961_v48, %v5836_v45  ;;  %v5839_v5 = vpop.permute.xlu1 %5838  ;;  %v5381_v55 = vunpack.i.h.bf16 %v9635_v6  ;;  %v5456_v41 = vunpack.i.h.bf16 %v9636_v44 }
 0x17d   : > { %v5841_v4 = vunpack.i.h.bf16 %v5839_v5  ;;  %v5840_v12 = vunpack.i.l.bf16 %v5839_v5  ;;  %v5844_v46 = vpop.permute.xlu0 %5843  ;;  %v2015_v50 = vpack.c.bf16 %v1994_v11, %v1993_v57  ;;  %v5455_v34 = vunpack.i.l.bf16 %v9636_v44 }
 0x17e   : > { %v5846_v62 = vunpack.i.h.bf16 %v5844_v46  ;;  %v5845_v7 = vunpack.i.l.bf16 %v5844_v46  ;;  %v5461_v16 = vunpack.i.h.bf16 %v9637_v1  ;;  %v5460_v36 = vunpack.i.l.bf16 %v9637_v1 }
 0x17f   : > { %v1995_v17 = vsel %vm1972_vm8, %v1962_v3, %v5840_v12  ;;  %v1996_v22 = vsel %vm1972_vm8, %v1963_v39, %v5841_v4  ;;  %5194 = vmatprep.mubr.msk.bf16.mxu0 %vm2041_vm9, %v2015_v50 }
 0x180   : > { %v7701_v43 = vpop.permute.xlu1 %5848  ;;  %v2016_v37 = vpack.c.bf16 %v1996_v22, %v1995_v17  ;;  %v1865_v8 = vsel %vm1840_vm4, %v1832_v54, %v5845_v7  ;;  %v1866_v48 = vsel %vm1840_vm4, %v1833_v29, %v5846_v62  ;;  %v5380_v7 = vunpack.i.l.bf16 %v9635_v6  ;;  %v9638_v54 = vld [vmem:[#allocation36_spill] sm:$0xff] }
 0x181   : > { %v5854_v0 = vpop.permute.xlu0 %5853  ;;  %v5850_v28 = vunpack.i.l.bf16 %v7701_v43  ;;  %v5851_v14 = vunpack.i.h.bf16 %v7701_v43 }
 0x182   : > { %5195 = vmatmul.mubr.msk.bf16.gmra.mrb[20].mxu0 %vm2041_vm9, %v2016_v37  ;;  %v5856_v42 = vunpack.i.h.bf16 %v5854_v0  ;;  %v5855_v13 = vunpack.i.l.bf16 %v5854_v0 }
 0x183   : > { %v1867_v50 = vsel %vm1840_vm4, %v1834_v33, %v5850_v28  ;;  %v1868_v60 = vsel %vm1840_vm4, %v1835_v31, %v5851_v14  ;;  %v6609_v28 = vld [vmem:[#allocation2 + $0x1c7] sm:$0xff]  ;;  %v5536_v33 = vunpack.i.h.bf16 %v9638_v54 }
 0x184   : > { %v5859_v23 = vpop.permute.xlu1 %5858  ;;  %v1898_v5 = vsel %vm1873_vm5, %v1865_v8, %v5855_v13  ;;  %v1899_v52 = vsel %vm1873_vm5, %v1866_v48, %v5856_v42  ;;  %v5535_v42 = vunpack.i.l.bf16 %v9638_v54  ;;  %v9639_v8 = vld [vmem:[#allocation37_spill] sm:$0xff] }
 0x185   : > { %v5864_v30 = vpop.permute.xlu0 %5863  ;;  %v5860_v32 = vunpack.i.l.bf16 %v5859_v23  ;;  %v5861_v4 = vunpack.i.h.bf16 %v5859_v23  ;;  %v5541_v48 = vunpack.i.h.bf16 %v9639_v8  ;;  %v5540_v14 = vunpack.i.l.bf16 %v9639_v8 }
 0x186   : > { %v5866_v10 = vunpack.i.h.bf16 %v5864_v30  ;;  %v5865_v45 = vunpack.i.l.bf16 %v5864_v30  ;;  %v5376_v30 = vunpack.i.h.bf16 %v9634_v9 }
 0x187   : > { %v1900_v59 = vsel %vm1873_vm5, %v1867_v50, %v5860_v32  ;;  %v1901_v26 = vsel %vm1873_vm5, %v1868_v60, %v5861_v4 }
 0x188   : > { %v5869_v15 = vpop.permute.xlu1 %5868  ;;  %v1931_v3 = vsel %vm1906_vm6, %v1898_v5, %v5865_v45  ;;  %v1932_v39 = vsel %vm1906_vm6, %v1899_v52, %v5866_v10  ;;  %v1771_v10 = vsel %vm397_vm1, %v6609_v28, %v5375_v58  ;;  %v6610_v45 = vld [vmem:[#allocation2 + $0x1ef] sm:$0xff] }
 0x189   : > { %v5874_v56 = vpop.permute.xlu0 %5873  ;;  %v5870_v12 = vunpack.i.l.bf16 %v5869_v15  ;;  %v5871_v17 = vunpack.i.h.bf16 %v5869_v15  ;;  %v6608_v15 = vld [vmem:[#allocation2 + $0x1cf] sm:$0xff]  ;;  %v1803_v52 = vsel %vm318_vm0, %v1771_v10, %v5455_v34 }
 0x18a   : > { %v5876_v57 = vunpack.i.h.bf16 %v5874_v56  ;;  %v5875_v11 = vunpack.i.l.bf16 %v5874_v56  ;;  %v1772_v29 = vsel %vm397_vm1, %v6608_v15, %v5376_v30  ;;  %v1774_v56 = vsel %vm397_vm1, %v6610_v45, %v5381_v55 }
 0x18b   : > { %v1933_v19 = vsel %vm1906_vm6, %v1900_v59, %v5870_v12  ;;  %v1934_v38 = vsel %vm1906_vm6, %v1901_v26, %v5871_v17  ;;  %v1804_v4 = vsel %vm318_vm0, %v1772_v29, %v5456_v41  ;;  %v1806_v12 = vsel %vm318_vm0, %v1774_v56, %v5461_v16 }
 0x18c   : > { %v5879_v46 = vpop.permute.xlu1 %5878  ;;  %v1964_v49 = vsel %vm1939_vm7, %v1931_v3, %v5875_v11  ;;  %v1965_v0 = vsel %vm1939_vm7, %v1932_v39, %v5876_v57  ;;  %v6611_v11 = vld [vmem:[#allocation2 + $0x1e7] sm:$0xff]  ;;  %v1836_v50 = vsel %vm1807_vm3, %v1803_v52, %v5535_v42  ;;  %v1839_v59 = vsel %vm1807_vm3, %v1806_v12, %v5541_v48 }
 0x18d   : > { %v5884_v22 = vpop.permute.xlu0 %5883  ;;  %v5881_v37 = vunpack.i.h.bf16 %v5879_v46  ;;  %v5880_v43 = vunpack.i.l.bf16 %v5879_v46  ;;  %v1773_v5 = vsel %vm397_vm1, %v6611_v11, %v5380_v7 }
 0x18e   : > { %v5886_v27 = vunpack.i.h.bf16 %v5884_v22  ;;  %v5885_v63 = vunpack.i.l.bf16 %v5884_v22  ;;  %v1805_v46 = vsel %vm318_vm0, %v1773_v5, %v5460_v36  ;;  %v1837_v22 = vsel %vm1807_vm3, %v1804_v4, %v5536_v33 }
 0x18f   : > { %v1966_v47 = vsel %vm1939_vm7, %v1933_v19, %v5880_v43  ;;  %v1967_v2 = vsel %vm1939_vm7, %v1934_v38, %v5881_v37  ;;  %v1838_v60 = vsel %vm1807_vm3, %v1805_v46, %v5540_v14 }
 0x190   : > { %v1997_v51 = vsel %vm1972_vm8, %v1964_v49, %v5885_v63  ;;  %v1998_v18 = vsel %vm1972_vm8, %v1965_v0, %v5886_v27  ;;  %v5889_v21 = vpop.permute.xlu1 %5888 }
 0x191   : > { %v5891_v40 = vunpack.i.h.bf16 %v5889_v21  ;;  %v5890_v61 = vunpack.i.l.bf16 %v5889_v21  ;;  %v5894_v35 = vpop.permute.xlu0 %5893  ;;  %v2017_v23 = vpack.c.bf16 %v1998_v18, %v1997_v51 }
 0x192   : > { %v5896_v32 = vunpack.i.h.bf16 %v5894_v35  ;;  %v5895_v57 = vunpack.i.l.bf16 %v5894_v35 }
 0x193   : > { %v1999_v53 = vsel %vm1972_vm8, %v1966_v47, %v5890_v61  ;;  %v2000_v24 = vsel %vm1972_vm8, %v1967_v2, %v5891_v40  ;;  %5198 = vmatprep.mubr.msk.bf16.mxu0 %vm2041_vm9, %v2017_v23 }
 0x194   : > { %v7751_v25 = vpop.permute.xlu1 %5898  ;;  %v2018_v20 = vpack.c.bf16 %v2000_v24, %v1999_v53  ;;  %v1869_v49 = vsel %vm1840_vm4, %v1836_v50, %v5895_v57  ;;  %v1870_v0 = vsel %vm1840_vm4, %v1837_v22, %v5896_v32 }
 0x195   : > { %v5904_v62 = vpop.permute.xlu0 %5903  ;;  %v5900_v37 = vunpack.i.l.bf16 %v7751_v25  ;;  %v5901_v26 = vunpack.i.h.bf16 %v7751_v25 }
 0x196   : > { %5199 = vmatmul.mubr.msk.bf16.gmra.mrb[24].mxu0 %vm2041_vm9, %v2018_v20  ;;  %v5906_v3 = vunpack.i.h.bf16 %v5904_v62  ;;  %v5905_v39 = vunpack.i.l.bf16 %v5904_v62 }
 0x197   : > { %v1871_v23 = vsel %vm1840_vm4, %v1838_v60, %v5900_v37  ;;  %v1872_v58 = vsel %vm1840_vm4, %v1839_v59, %v5901_v26 }
 0x198   : > { %v5909_v13 = vpop.permute.xlu1 %5908  ;;  %v1902_v21 = vsel %vm1873_vm5, %v1869_v49, %v5905_v39  ;;  %v1903_v38 = vsel %vm1873_vm5, %v1870_v0, %v5906_v3 }
 0x199   : > { %v5914_v31 = vpop.permute.xlu0 %5913  ;;  %v5910_v19 = vunpack.i.l.bf16 %v5909_v13  ;;  %v5911_v40 = vunpack.i.h.bf16 %v5909_v13 }
 0x19a   : > { %v5916_v43 = vunpack.i.h.bf16 %v5914_v31  ;;  %v5915_v27 = vunpack.i.l.bf16 %v5914_v31 }
 0x19b   : > { %v1904_v6 = vsel %vm1873_vm5, %v1871_v23, %v5910_v19  ;;  %v1905_v7 = vsel %vm1873_vm5, %v1872_v58, %v5911_v40 }
 0x19c   : > { %v5919_v17 = vpop.permute.xlu1 %5918  ;;  %v1935_v47 = vsel %vm1906_vm6, %v1902_v21, %v5915_v27  ;;  %v1936_v2 = vsel %vm1906_vm6, %v1903_v38, %v5916_v43 }
 0x19d   : > { %v5924_v63 = vpop.permute.xlu0 %5923  ;;  %v5920_v61 = vunpack.i.l.bf16 %v5919_v17  ;;  %v5921_v53 = vunpack.i.h.bf16 %v5919_v17 }
 0x19e   : > { %v5926_v51 = vunpack.i.h.bf16 %v5924_v63  ;;  %v5925_v18 = vunpack.i.l.bf16 %v5924_v63 }
 0x19f   : > { %v1937_v44 = vsel %vm1906_vm6, %v1904_v6, %v5920_v61  ;;  %v1938_v16 = vsel %vm1906_vm6, %v1905_v7, %v5921_v53 }
 0x1a0   : > { %v5929_v35 = vpop.permute.xlu1 %5928  ;;  %v1968_v55 = vsel %vm1939_vm7, %v1935_v47, %v5925_v18  ;;  %v1969_v62 = vsel %vm1939_vm7, %v1936_v2, %v5926_v51 }
 0x1a1   : > { %v5934_v24 = vpop.permute.xlu0 %5933  ;;  %v5931_v20 = vunpack.i.h.bf16 %v5929_v35  ;;  %v5930_v25 = vunpack.i.l.bf16 %v5929_v35 }
 0x1a2   : > { %v5936_v9 = vunpack.i.h.bf16 %v5934_v24  ;;  %v5935_v30 = vunpack.i.l.bf16 %v5934_v24 }
 0x1a3   : > { %v1970_v13 = vsel %vm1939_vm7, %v1937_v44, %v5930_v25  ;;  %v1971_v15 = vsel %vm1939_vm7, %v1938_v16, %v5931_v20 }
 0x1a4   : > { %v2001_v41 = vsel %vm1972_vm8, %v1968_v55, %v5935_v30  ;;  %v2002_v34 = vsel %vm1972_vm8, %v1969_v62, %v5936_v9  ;;  %v5939_v1 = vpop.permute.xlu1 %5938 }
 0x1a5   : > { %v5941_v36 = vunpack.i.h.bf16 %v5939_v1  ;;  %v5940_v54 = vunpack.i.l.bf16 %v5939_v1  ;;  %v2019_v42 = vpack.c.bf16 %v2002_v34, %v2001_v41 }
 0x1a7   : > { %v2003_v29 = vsel %vm1972_vm8, %v1970_v13, %v5940_v54  ;;  %v2004_v28 = vsel %vm1972_vm8, %v1971_v15, %v5941_v36  ;;  %5202 = vmatprep.mubr.msk.bf16.mxu0 %vm2041_vm9, %v2019_v42 }
 0x1a8   : > { %v2020_v10 = vpack.c.bf16 %v2004_v28, %v2003_v29 }
 0x1aa   : > { %5203 = vmatmul.mubr.msk.bf16.gmra.mrb[28].mxu0 %vm2041_vm9, %v2020_v10 }
 0x1f5   : > { %v7802_v45 = vpop.f32.mrb[0].mxu0 }
 0x1f6   : > { %v7804_v56 = vpop.f32.mrb[1].mxu0  ;;  %v2327_v48 = vmul.f32 %v7802_v45, %v7802_v45  ;;  %v2258_v5 = vsel %vm318_vm0, %v7802_v45, 0.0 }
 0x1f7   : > { %v2325_v33 = vmul.f32 %v7804_v56, %v7804_v56  ;;  %v7808_v31 = vpop.f32.mrb[2].mxu0  ;;  %v2255_v14 = vsel %vm318_vm0, %v7804_v56, 0.0 }
 0x1f8   : > { %v7810_v8 = vpop.f32.mrb[3].mxu0  ;;  %v2328_v4 = vmul.f32 %v7808_v31, %v7808_v31  ;;  %v2360_v3 = vsel %vm318_vm0, %v2327_v48, 0.0  ;;  %v2260_v39 = vsel %vm318_vm0, %v7808_v31, 0.0 }
 0x1f9   : > { %v2256_v32 = vsel %vm318_vm0, %v7810_v8, 0.0  ;;  %v2326_v57 = vmul.f32 %v7810_v8, %v7810_v8  ;;  %v2357_v52 = vsel %vm318_vm0, %v2325_v33, 0.0 }
 0x1fa   : > { %v2257_v11 = vadd.f32 %v2256_v32, %v2255_v14  ;;  %v2362_v37 = vsel %vm318_vm0, %v2328_v4, 0.0 }
 0x1fb   : > { %v2358_v12 = vsel %vm318_vm0, %v2326_v57, 0.0 }
 0x1fc   : > { %v2259_v46 = vadd.f32 %v2258_v5, %v2257_v11  ;;  %v2359_v50 = vadd.f32 %v2358_v12, %v2357_v52 }
 0x1fe   : > { %v2361_v17 = vadd.f32 %v2360_v3, %v2359_v50  ;;  %v2261_v22 = vadd.f32 %v2260_v39, %v2259_v46 }
 0x200   : > { %v2363_v43 = vadd.f32 %v2362_v37, %v2361_v17 }
 0x205   : > { %v7830_v27 = vpop.f32.mrb[4].mxu0 }
 0x206   : > { %v7832_v63 = vpop.f32.mrb[5].mxu0  ;;  %v2331_v19 = vmul.f32 %v7830_v27, %v7830_v27  ;;  %v2266_v61 = vsel %vm318_vm0, %v7830_v27, 0.0 }
 0x207   : > { %v2262_v60 = vsel %vm318_vm0, %v7832_v63, 0.0  ;;  %v2329_v59 = vmul.f32 %v7832_v63, %v7832_v63  ;;  %v7838_v49 = vpop.f32.mrb[6].mxu0 }
 0x208   : > { %v2263_v0 = vadd.f32 %v2262_v60, %v2261_v22  ;;  %v7840_v26 = vpop.f32.mrb[7].mxu0  ;;  %v2332_v35 = vmul.f32 %v7838_v49, %v7838_v49  ;;  %v2368_v53 = vsel %vm318_vm0, %v2331_v19, 0.0  ;;  %v2268_v24 = vsel %vm318_vm0, %v7838_v49, 0.0 }
 0x209   : > { %v2364_v51 = vsel %vm318_vm0, %v2329_v59, 0.0  ;;  %v2264_v18 = vsel %vm318_vm0, %v7840_v26, 0.0  ;;  %v2330_v21 = vmul.f32 %v7840_v26, %v7840_v26 }
 0x20a   : > { %v2365_v38 = vadd.f32 %v2364_v51, %v2363_v43  ;;  %v2265_v40 = vadd.f32 %v2264_v18, %v2263_v0  ;;  %v2370_v9 = vsel %vm318_vm0, %v2332_v35, 0.0 }
 0x20b   : > { %v2366_v23 = vsel %vm318_vm0, %v2330_v21, 0.0 }
 0x20c   : > { %v2267_v47 = vadd.f32 %v2266_v61, %v2265_v40  ;;  %v2367_v2 = vadd.f32 %v2366_v23, %v2365_v38  ;;  %v2641_v23 = vld [vmem:[#allocation2 + $0x8] sm:$0xff] }
 0x20e   : > { %v2369_v20 = vadd.f32 %v2368_v53, %v2367_v2  ;;  %v2269_v25 = vadd.f32 %v2268_v24, %v2267_v47  ;;  %v2642_v47 = vld [vmem:[#allocation2 + $0x10] sm:$0xff] }
 0x20f   : > { %v5942_v53 = vpack.i.bf16 %v2642_v47, %v2641_v23  ;;  %v2673_v24 = vld [vmem:[#allocation2 + $0x9] sm:$0xff] }
 0x210   : > { %v2371_v30 = vadd.f32 %v2370_v9, %v2369_v20  ;;  %v2674_v20 = vld [vmem:[#allocation2 + $0x11] sm:$0xff] }
 0x211   : > { %5943 = vrot.lane.b32.xlu0 %v5942_v53, %s6690_s23 }
 0x219   : > { %v7858_v58 = vpop.f32.mrb[8].mxu0 }
 0x21a   : > { %v7860_v6 = vpop.f32.mrb[9].mxu0  ;;  %v2335_v34 = vmul.f32 %v7858_v58, %v7858_v58  ;;  %v2274_v13 = vsel %vm318_vm0, %v7858_v58, 0.0 }
 0x21b   : > { %v2270_v55 = vsel %vm318_vm0, %v7860_v6, 0.0  ;;  %v2333_v62 = vmul.f32 %v7860_v6, %v7860_v6  ;;  %v7866_v7 = vpop.f32.mrb[10].mxu0 }
 0x21c   : > { %v2271_v44 = vadd.f32 %v2270_v55, %v2269_v25  ;;  %v7868_v41 = vpop.f32.mrb[11].mxu0  ;;  %v2336_v15 = vmul.f32 %v7866_v7, %v7866_v7  ;;  %v2376_v33 = vsel %vm318_vm0, %v2335_v34, 0.0  ;;  %v2276_v48 = vsel %vm318_vm0, %v7866_v7, 0.0 }
 0x21d   : > { %v2372_v1 = vsel %vm318_vm0, %v2333_v62, 0.0  ;;  %v2272_v16 = vsel %vm318_vm0, %v7868_v41, 0.0  ;;  %v2334_v36 = vmul.f32 %v7868_v41, %v7868_v41  ;;  %v5947_v25 = vpack.i.bf16 %v2674_v20, %v2673_v24 }
 0x21e   : > { %v2373_v54 = vadd.f32 %v2372_v1, %v2371_v30  ;;  %v2273_v42 = vadd.f32 %v2272_v16, %v2271_v44  ;;  %v2378_v57 = vsel %vm318_vm0, %v2336_v15, 0.0 }
 0x21f   : > { %v2374_v29 = vsel %vm318_vm0, %v2334_v36, 0.0  ;;  %5948 = vrot.lane.b32.xlu0 %v5947_v25, %s6692_s25 }
 0x220   : > { %v2275_v28 = vadd.f32 %v2274_v13, %v2273_v42  ;;  %v2375_v10 = vadd.f32 %v2374_v29, %v2373_v54 }
 0x222   : > { %v2377_v14 = vadd.f32 %v2376_v33, %v2375_v10  ;;  %v2277_v32 = vadd.f32 %v2276_v48, %v2275_v28 }
 0x224   : > { %v2379_v11 = vadd.f32 %v2378_v57, %v2377_v14 }
 0x22d   : > { %v7886_v5 = vpop.f32.mrb[12].mxu0 }
 0x22e   : > { %v7888_v52 = vpop.f32.mrb[13].mxu0  ;;  %v2339_v39 = vmul.f32 %v7886_v5, %v7886_v5  ;;  %v2282_v59 = vsel %vm318_vm0, %v7886_v5, 0.0 }
 0x22f   : > { %v2278_v4 = vsel %vm318_vm0, %v7888_v52, 0.0  ;;  %v2337_v12 = vmul.f32 %v7888_v52, %v7888_v52  ;;  %v7894_v46 = vpop.f32.mrb[14].mxu0 }
 0x230   : > { %v2279_v50 = vadd.f32 %v2278_v4, %v2277_v32  ;;  %v7896_v3 = vpop.f32.mrb[15].mxu0  ;;  %v2340_v0 = vmul.f32 %v7894_v46, %v7894_v46  ;;  %v2384_v21 = vsel %vm318_vm0, %v2339_v39, 0.0  ;;  %v2284_v38 = vsel %vm318_vm0, %v7894_v46, 0.0 }
 0x231   : > { %v2380_v17 = vsel %vm318_vm0, %v2337_v12, 0.0  ;;  %v2280_v22 = vsel %vm318_vm0, %v7896_v3, 0.0  ;;  %v2338_v37 = vmul.f32 %v7896_v3, %v7896_v3 }
 0x232   : > { %v2381_v43 = vadd.f32 %v2380_v17, %v2379_v11  ;;  %v2281_v60 = vadd.f32 %v2280_v22, %v2279_v50  ;;  %v2386_v35 = vsel %vm318_vm0, %v2340_v0, 0.0 }
 0x233   : > { %v2382_v19 = vsel %vm318_vm0, %v2338_v37, 0.0 }
 0x234   : > { %v2283_v51 = vadd.f32 %v2282_v59, %v2281_v60  ;;  %v2383_v18 = vadd.f32 %v2382_v19, %v2381_v43 }
 0x236   : > { %v2385_v40 = vadd.f32 %v2384_v21, %v2383_v18  ;;  %v2285_v61 = vadd.f32 %v2284_v38, %v2283_v51 }
 0x238   : > { %v2387_v2 = vadd.f32 %v2386_v35, %v2385_v40 }
 0x241   : > { %v7916_v9 = vpop.f32.mrb[16].mxu0 }
 0x242   : > { %v7918_v30 = vpop.f32.mrb[17].mxu0  ;;  %v2343_v16 = vmul.f32 %v7916_v9, %v7916_v9  ;;  %v2290_v29 = vsel %vm318_vm0, %v7916_v9, 0.0 }
 0x243   : > { %v2286_v55 = vsel %vm318_vm0, %v7918_v30, 0.0  ;;  %v2341_v62 = vmul.f32 %v7918_v30, %v7918_v30  ;;  %v7924_v44 = vpop.f32.mrb[18].mxu0 }
 0x244   : > { %v2287_v34 = vadd.f32 %v2286_v55, %v2285_v61  ;;  %v7926_v1 = vpop.f32.mrb[19].mxu0  ;;  %v2344_v28 = vmul.f32 %v7924_v44, %v7924_v44  ;;  %v2392_v14 = vsel %vm318_vm0, %v2343_v16, 0.0  ;;  %v2292_v32 = vsel %vm318_vm0, %v7924_v44, 0.0 }
 0x245   : > { %v2388_v36 = vsel %vm318_vm0, %v2341_v62, 0.0  ;;  %v2288_v54 = vsel %vm318_vm0, %v7926_v1, 0.0  ;;  %v2342_v42 = vmul.f32 %v7926_v1, %v7926_v1 }
 0x246   : > { %v2389_v13 = vadd.f32 %v2388_v36, %v2387_v2  ;;  %v2289_v15 = vadd.f32 %v2288_v54, %v2287_v34  ;;  %v2394_v4 = vsel %vm318_vm0, %v2344_v28, 0.0 }
 0x247   : > { %v2390_v10 = vsel %vm318_vm0, %v2342_v42, 0.0 }
 0x248   : > { %v2291_v33 = vadd.f32 %v2290_v29, %v2289_v15  ;;  %v2391_v48 = vadd.f32 %v2390_v10, %v2389_v13 }
 0x24a   : > { %v2393_v57 = vadd.f32 %v2392_v14, %v2391_v48  ;;  %v2293_v11 = vadd.f32 %v2292_v32, %v2291_v33 }
 0x24c   : > { %v2395_v12 = vadd.f32 %v2394_v4, %v2393_v57 }
 0x255   : > { %v7944_v50 = vpop.f32.mrb[20].mxu0 }
 0x256   : > { %v7946_v39 = vpop.f32.mrb[21].mxu0  ;;  %v2347_v59 = vmul.f32 %v7944_v50, %v7944_v50  ;;  %v2298_v38 = vsel %vm318_vm0, %v7944_v50, 0.0 }
 0x257   : > { %v2294_v17 = vsel %vm318_vm0, %v7946_v39, 0.0  ;;  %v2345_v22 = vmul.f32 %v7946_v39, %v7946_v39  ;;  %v7952_v37 = vpop.f32.mrb[22].mxu0 }
 0x258   : > { %v2295_v43 = vadd.f32 %v2294_v17, %v2293_v11  ;;  %v7954_v60 = vpop.f32.mrb[23].mxu0  ;;  %v2348_v40 = vmul.f32 %v7952_v37, %v7952_v37  ;;  %v2400_v47 = vsel %vm318_vm0, %v2347_v59, 0.0  ;;  %v2300_v2 = vsel %vm318_vm0, %v7952_v37, 0.0 }
 0x259   : > { %v2396_v0 = vsel %vm318_vm0, %v2345_v22, 0.0  ;;  %v2296_v19 = vsel %vm318_vm0, %v7954_v60, 0.0  ;;  %v2346_v51 = vmul.f32 %v7954_v60, %v7954_v60 }
 0x25a   : > { %v2397_v18 = vadd.f32 %v2396_v0, %v2395_v12  ;;  %v2297_v21 = vadd.f32 %v2296_v19, %v2295_v43  ;;  %v2402_v20 = vsel %vm318_vm0, %v2348_v40, 0.0 }
 0x25b   : > { %v2398_v61 = vsel %vm318_vm0, %v2346_v51, 0.0 }
 0x25c   : > { %v2299_v35 = vadd.f32 %v2298_v38, %v2297_v21  ;;  %v2399_v23 = vadd.f32 %v2398_v61, %v2397_v18 }
 0x25e   : > { %v2401_v53 = vadd.f32 %v2400_v47, %v2399_v23  ;;  %v2301_v24 = vadd.f32 %v2300_v2, %v2299_v35 }
 0x260   : > { %v2403_v25 = vadd.f32 %v2402_v20, %v2401_v53 }
 0x269   : > { %v7972_v55 = vpop.f32.mrb[24].mxu0 }
 0x26a   : > { %v7974_v62 = vpop.f32.mrb[25].mxu0  ;;  %v2351_v13 = vmul.f32 %v7972_v55, %v7972_v55  ;;  %v2306_v48 = vsel %vm318_vm0, %v7972_v55, 0.0 }
 0x26b   : > { %v2302_v34 = vsel %vm318_vm0, %v7974_v62, 0.0  ;;  %v2349_v16 = vmul.f32 %v7974_v62, %v7974_v62  ;;  %v7980_v36 = vpop.f32.mrb[26].mxu0 }
 0x26c   : > { %v2303_v54 = vadd.f32 %v2302_v34, %v2301_v24  ;;  %v7982_v42 = vpop.f32.mrb[27].mxu0  ;;  %v2352_v14 = vmul.f32 %v7980_v36, %v7980_v36  ;;  %v2408_v4 = vsel %vm318_vm0, %v2351_v13, 0.0  ;;  %v2308_v12 = vsel %vm318_vm0, %v7980_v36, 0.0 }
 0x26d   : > { %v2404_v15 = vsel %vm318_vm0, %v2349_v16, 0.0  ;;  %v2304_v29 = vsel %vm318_vm0, %v7982_v42, 0.0  ;;  %v2350_v28 = vmul.f32 %v7982_v42, %v7982_v42 }
 0x26e   : > { %v2405_v10 = vadd.f32 %v2404_v15, %v2403_v25  ;;  %v2305_v33 = vadd.f32 %v2304_v29, %v2303_v54  ;;  %v2410_v43 = vsel %vm318_vm0, %v2352_v14, 0.0 }
 0x26f   : > { %v2406_v32 = vsel %vm318_vm0, %v2350_v28, 0.0 }
 0x270   : > { %v2307_v57 = vadd.f32 %v2306_v48, %v2305_v33  ;;  %v2407_v11 = vadd.f32 %v2406_v32, %v2405_v10 }
 0x272   : > { %v2409_v17 = vadd.f32 %v2408_v4, %v2407_v11  ;;  %v2309_v22 = vadd.f32 %v2308_v12, %v2307_v57 }
 0x274   : > { %v2411_v59 = vadd.f32 %v2410_v43, %v2409_v17 }
 0x27d   : > { %v8000_v0 = vpop.f32.mrb[28].mxu0 }
 0x27e   : > { %v8002_v19 = vpop.f32.mrb[29].mxu0  ;;  %v2355_v61 = vmul.f32 %v8000_v0, %v8000_v0  ;;  %v2314_v24 = vsel %vm318_vm0, %v8000_v0, 0.0 }
 0x27f   : > { %v2310_v51 = vsel %vm318_vm0, %v8002_v19, 0.0  ;;  %v2353_v18 = vmul.f32 %v8002_v19, %v8002_v19  ;;  %v8008_v21 = vpop.f32.mrb[30].mxu0 }
 0x280   : > { %v2311_v38 = vadd.f32 %v2310_v51, %v2309_v22  ;;  %v2243_v40 = vpop.f32.mrb[31].mxu0  ;;  %v2356_v20 = vmul.f32 %v8008_v21, %v8008_v21  ;;  %v2416_v54 = vsel %vm318_vm0, %v2355_v61, 0.0  ;;  %v2316_v13 = vsel %vm318_vm0, %v8008_v21, 0.0 }
 0x281   : > { %v2412_v35 = vsel %vm318_vm0, %v2353_v18, 0.0  ;;  %v2312_v23 = vsel %vm318_vm0, %v2243_v40, 0.0  ;;  %v2354_v47 = vmul.f32 %v2243_v40, %v2243_v40 }
 0x282   : > { %v2413_v2 = vadd.f32 %v2412_v35, %v2411_v59  ;;  %v2313_v53 = vadd.f32 %v2312_v23, %v2311_v38  ;;  %v2418_v28 = vsel %vm318_vm0, %v2356_v20, 0.0 }
 0x283   : > { %v2414_v25 = vsel %vm318_vm0, %v2354_v47, 0.0  ;;  %v2438_v47 = vlaneseq }
 0x284   : > { %v2315_v34 = vadd.f32 %v2314_v24, %v2313_v53  ;;  %v2415_v16 = vadd.f32 %v2414_v25, %v2413_v2  ;;  %v2430_v53 = vld [vmem:[%s9529_s2] sm:$0x1] }
 0x285   : > { %v2439_v2 = vshrl.u32 %v2438_v47, 7 }
 0x286   : > { %v2317_v15 = vadd.f32 %v2316_v13, %v2315_v34  ;;  %v2417_v29 = vadd.f32 %v2416_v54, %v2415_v16  ;;  %v2434_v34 = vld [vmem:[%s9530_s3] sm:$0x1] }
 0x287   : > { %v8026_v24 = vsub.s32 0, %v2439_v2 }
 0x288   : > { %v2318_v10 = vrot.slane %v2317_v15, 4  ;;  %v2419_v33 = vadd.f32 %v2418_v28, %v2417_v29 }
 0x289   : > { %9640 = vst [vmem:[#allocation9_spill] sm:$0xff] %v8026_v24 }
 0x28a   : > { %v2319_v48 = vadd.f32 %v2318_v10, %v2317_v15  ;;  %v2420_v14 = vrot.slane %v2419_v33, 4 }
 0x28c   : > { %v2320_v32 = vrot.slane %v2319_v48, 2  ;;  %v2421_v57 = vadd.f32 %v2420_v14, %v2419_v33 }
 0x28e   : > { %v2321_v11 = vadd.f32 %v2320_v32, %v2319_v48  ;;  %v2422_v4 = vrot.slane %v2421_v57, 2 }
 0x290   : > { %v2322_v12 = vrot.slane %v2321_v11, 1  ;;  %v2423_v17 = vadd.f32 %v2422_v4, %v2421_v57 }
 0x292   : > { %v2323_v22 = vadd.f32 %v2322_v12, %v2321_v11  ;;  %v2424_v43 = vrot.slane %v2423_v17, 1 }
 0x294   : > { %v2324_v59 = vmul.f32 0.00390625, %v2323_v22  ;;  %v2425_v51 = vadd.f32 %v2424_v43, %v2423_v17 }
 0x296   : > { %v2426_v18 = vmul.f32 0.00390625, %v2425_v51  ;;  %v2427_v38 = vmul.f32 %v2324_v59, %v2324_v59 }
 0x298   : > { %v2428_v61 = vsub.f32 %v2426_v18, %v2427_v38 }
 0x29a   : > { %v2429_v35 = vmax.f32 %v2428_v61, 0.0 }
 0x29c   : > { %v2431_v23 = vadd.f32 1e-05, %v2429_v35 }
 0x29e   : > { %6590 = vrsqrt.f32 %v2431_v23 }
 0x2a8   : > { %v6591_v20 = vpop.eup %6590 }
 0x2a9   : > { %v2433_v25 = vmul.f32 %v6591_v20, %v2430_v53 }
 0x2ab   : > { %v2435_v16 = vmul.f32 %v2433_v25, %v2324_v59  ;;  %v2441_v54 = vrot.slane %v2433_v25, %v8026_v24 }
 0x2ad   : > { %v2436_v13 = vsub.f32 %v2434_v34, %v2435_v16  ;;  %v2472_v15 = vmul.f32 %v2441_v54, %v2243_v40  ;;  %v2443_v29 = vmul.f32 %v2441_v54, %v7804_v56  ;;  %v2444_v28 = vmul.f32 %v2441_v54, %v7810_v8 }
 0x2ae   : > { %v2445_v10 = vmul.f32 %v7802_v45, %v2441_v54  ;;  %v2446_v33 = vmul.f32 %v7808_v31, %v2441_v54  ;;  %v2447_v48 = vmul.f32 %v2441_v54, %v7832_v63  ;;  %v2448_v14 = vmul.f32 %v2441_v54, %v7840_v26 }
 0x2af   : > { %v2479_v32 = vrot.slane %v2436_v13, %v8026_v24  ;;  %v2449_v57 = vmul.f32 %v7830_v27, %v2441_v54  ;;  %v2450_v11 = vmul.f32 %v7838_v49, %v2441_v54  ;;  %v2451_v40 = vmul.f32 %v2441_v54, %v7860_v6 }
 0x2b0   : > { %v2452_v56 = vmul.f32 %v2441_v54, %v7868_v41  ;;  %v2453_v8 = vmul.f32 %v7858_v58, %v2441_v54  ;;  %v2454_v45 = vmul.f32 %v7866_v7, %v2441_v54  ;;  %v2455_v31 = vmul.f32 %v2441_v54, %v7888_v52 }
 0x2b1   : > { %v2510_v4 = vadd.f32 %v2479_v32, %v2472_v15  ;;  %v2456_v63 = vmul.f32 %v2441_v54, %v7896_v3  ;;  %v2457_v26 = vmul.f32 %v7886_v5, %v2441_v54  ;;  %v2458_v12 = vmul.f32 %v7894_v46, %v2441_v54 }
 0x2b2   : > { %v2459_v27 = vmul.f32 %v2441_v54, %v7918_v30  ;;  %v2460_v49 = vmul.f32 %v2441_v54, %v7926_v1  ;;  %v2461_v6 = vmul.f32 %v7916_v9, %v2441_v54  ;;  %v2462_v41 = vmul.f32 %v7924_v44, %v2441_v54 }
 0x2b3   : > { %v2542_v58 = vmul.f32 0.01, %v2510_v4  ;;  %v2463_v7 = vmul.f32 %v2441_v54, %v7946_v39  ;;  %v2464_v52 = vmul.f32 %v2441_v54, %v7954_v60  ;;  %v2465_v17 = vmul.f32 %v7944_v50, %v2441_v54 }
 0x2b4   : > { %v2466_v3 = vmul.f32 %v7952_v37, %v2441_v54  ;;  %v2467_v5 = vmul.f32 %v2441_v54, %v7974_v62  ;;  %v2468_v46 = vmul.f32 %v2441_v54, %v7982_v42  ;;  %v2469_v30 = vmul.f32 %v7972_v55, %v2441_v54 }
 0x2b5   : > { %v2574_v1 = vmax.f32 %v2510_v4, %v2542_v58  ;;  %v2470_v9 = vmul.f32 %v7980_v36, %v2441_v54  ;;  %v2471_v44 = vmul.f32 %v2441_v54, %v8002_v19  ;;  %v2473_v22 = vmul.f32 %v8000_v0, %v2441_v54 }
 0x2b6   : > { %v2474_v39 = vmul.f32 %v8008_v21, %v2441_v54  ;;  %v2481_v60 = vadd.f32 %v2479_v32, %v2443_v29  ;;  %v8064_v43 = vadd.f32 %v2479_v32, %v2444_v28  ;;  %v2483_v50 = vadd.f32 %v2479_v32, %v2445_v10 }
 0x2b7   : > { %2606 = vst.msk [vmem:[#allocation2 + $0x1f0] sm:$0xff] %vm318_vm0, %v2574_v1  ;;  %v2484_v37 = vadd.f32 %v2479_v32, %v2446_v33  ;;  %v8067_v62 = vadd.f32 %v2479_v32, %v2447_v48  ;;  %v8069_v42 = vadd.f32 %v2479_v32, %v2448_v14  ;;  %v8071_v55 = vadd.f32 %v2479_v32, %v2449_v57 }
 0x2b8   : > { %v8073_v36 = vadd.f32 %v2479_v32, %v2450_v11  ;;  %v8075_v19 = vadd.f32 %v2479_v32, %v2451_v40  ;;  %v8077_v0 = vadd.f32 %v2479_v32, %v2452_v56  ;;  %v8079_v21 = vadd.f32 %v2479_v32, %v2453_v8 }
 0x2b9   : > { %v8081_v59 = vadd.f32 %v2479_v32, %v2454_v45  ;;  %v8083_v51 = vadd.f32 %v2479_v32, %v2455_v31  ;;  %v8085_v18 = vadd.f32 %v2479_v32, %v2456_v63  ;;  %v8087_v38 = vadd.f32 %v2479_v32, %v2457_v26 }
 0x2ba   : > { %v8089_v61 = vadd.f32 %v2479_v32, %v2458_v12  ;;  %v8091_v35 = vadd.f32 %v2479_v32, %v2459_v27  ;;  %v8093_v23 = vadd.f32 %v2479_v32, %v2460_v49  ;;  %v8095_v47 = vadd.f32 %v2479_v32, %v2461_v6 }
 0x2bb   : > { %v8097_v2 = vadd.f32 %v2479_v32, %v2462_v41  ;;  %v8099_v53 = vadd.f32 %v2479_v32, %v2463_v7  ;;  %v8101_v20 = vadd.f32 %v2479_v32, %v2464_v52  ;;  %v8103_v25 = vadd.f32 %v2479_v32, %v2465_v17 }
 0x2bc   : > { %v8105_v34 = vadd.f32 %v2479_v32, %v2466_v3  ;;  %v8107_v16 = vadd.f32 %v2479_v32, %v2467_v5  ;;  %v8109_v54 = vadd.f32 %v2479_v32, %v2468_v46  ;;  %v8111_v13 = vadd.f32 %v2479_v32, %v2469_v30 }
 0x2bd   : > { %v8113_v15 = vadd.f32 %v2479_v32, %v2470_v9  ;;  %v8115_v29 = vadd.f32 %v2479_v32, %v2471_v44  ;;  %v8117_v28 = vadd.f32 %v2479_v32, %v2473_v22  ;;  %v8119_v10 = vadd.f32 %v2479_v32, %v2474_v39 }
 0x2be   : > { %v2513_v33 = vmul.f32 0.01, %v2481_v60  ;;  %v2514_v48 = vmul.f32 0.01, %v8064_v43  ;;  %v2515_v14 = vmul.f32 0.01, %v2483_v50 }
 0x2bf   : > { %v2516_v57 = vmul.f32 0.01, %v2484_v37  ;;  %v2517_v11 = vmul.f32 0.01, %v8067_v62  ;;  %v2518_v40 = vmul.f32 0.01, %v8069_v42 }
 0x2c0   : > { %v2519_v56 = vmul.f32 0.01, %v8071_v55  ;;  %v2520_v8 = vmul.f32 0.01, %v8073_v36  ;;  %v2521_v45 = vmul.f32 0.01, %v8075_v19  ;;  %v2547_v31 = vmax.f32 %v2483_v50, %v2515_v14 }
 0x2c1   : > { %v2522_v4 = vmul.f32 0.01, %v8077_v0  ;;  %v2523_v32 = vmul.f32 0.01, %v8079_v21  ;;  %v2524_v63 = vmul.f32 0.01, %v8081_v59  ;;  %v2548_v26 = vmax.f32 %v2484_v37, %v2516_v57 }
 0x2c2   : > { %v2525_v12 = vmul.f32 0.01, %v8083_v51  ;;  %v2526_v27 = vmul.f32 0.01, %v8085_v18  ;;  %v2527_v49 = vmul.f32 0.01, %v8087_v38  ;;  %v2545_v6 = vmax.f32 %v2481_v60, %v2513_v33 }
 0x2c3   : > { %2579 = vst.msk [vmem:[#allocation2 + $0x48] sm:$0xff] %vm318_vm0, %v2547_v31  ;;  %v2528_v41 = vmul.f32 0.01, %v8089_v61  ;;  %v2529_v58 = vmul.f32 0.01, %v8091_v35  ;;  %2580 = vst.msk [vmem:[#allocation2 + $0x50] sm:$0xff] %vm318_vm0, %v2548_v26  ;;  %v2546_v52 = vmax.f32 %v8064_v43, %v2514_v48  ;;  %v2549_v46 = vmax.f32 %v8067_v62, %v2517_v11 }
 0x2c4   : > { %v2530_v7 = vmul.f32 0.01, %v8093_v23  ;;  %v2531_v17 = vmul.f32 0.01, %v8095_v47  ;;  %v2532_v3 = vmul.f32 0.01, %v8097_v2  ;;  %v2550_v44 = vmax.f32 %v8069_v42, %v2518_v40 }
 0x2c5   : > { %v2533_v5 = vmul.f32 0.01, %v8099_v53  ;;  %2577 = vst.msk [vmem:[#allocation2 + $0x28] sm:$0xff] %vm318_vm0, %v2545_v6  ;;  %v2534_v30 = vmul.f32 0.01, %v8101_v20  ;;  %2578 = vst.msk [vmem:[#allocation2 + $0x30] sm:$0xff] %vm318_vm0, %v2546_v52  ;;  %v2551_v43 = vmax.f32 %v8071_v55, %v2519_v56  ;;  %v2552_v42 = vmax.f32 %v8073_v36, %v2520_v8 }
 0x2c6   : > { %v2535_v1 = vmul.f32 0.01, %v8103_v25  ;;  %v2536_v9 = vmul.f32 0.01, %v8105_v34  ;;  %v2537_v22 = vmul.f32 0.01, %v8107_v16  ;;  %v2553_v48 = vmax.f32 %v8075_v19, %v2521_v45 }
 0x2c7   : > { %v2538_v39 = vmul.f32 0.01, %v8109_v54  ;;  %v2539_v60 = vmul.f32 0.01, %v8111_v13  ;;  %2581 = vst.msk [vmem:[#allocation2 + $0x68] sm:$0xff] %vm318_vm0, %v2549_v46  ;;  %2582 = vst.msk [vmem:[#allocation2 + $0x70] sm:$0xff] %vm318_vm0, %v2550_v44  ;;  %v2554_v14 = vmax.f32 %v8077_v0, %v2522_v4  ;;  %v2555_v55 = vmax.f32 %v8079_v21, %v2523_v32 }
 0x2c8   : > { %v2540_v50 = vmul.f32 0.01, %v8113_v15  ;;  %v2541_v37 = vmul.f32 0.01, %v8115_v29  ;;  %v2543_v62 = vmul.f32 0.01, %v8117_v28  ;;  %v2556_v11 = vmax.f32 %v8081_v59, %v2524_v63 }
 0x2c9   : > { %v2544_v33 = vmul.f32 0.01, %v8119_v10  ;;  %2583 = vst.msk [vmem:[#allocation2 + $0x88] sm:$0xff] %vm318_vm0, %v2551_v43  ;;  %v2557_v40 = vmax.f32 %v8083_v51, %v2525_v12  ;;  %v2558_v56 = vmax.f32 %v8085_v18, %v2526_v27  ;;  %v2559_v36 = vmax.f32 %v8087_v38, %v2527_v49  ;;  %2584 = vst.msk [vmem:[#allocation2 + $0x90] sm:$0xff] %vm318_vm0, %v2552_v42 }
 0x2ca   : > { %v2645_v57 = vld [vmem:[#allocation2 + $0x48] sm:$0xff]  ;;  %v2646_v8 = vld [vmem:[#allocation2 + $0x50] sm:$0xff]  ;;  %v2560_v19 = vmax.f32 %v8089_v61, %v2528_v41  ;;  %v2561_v0 = vmax.f32 %v8091_v35, %v2529_v58  ;;  %v2562_v21 = vmax.f32 %v8093_v23, %v2530_v7  ;;  %v2563_v45 = vmax.f32 %v8095_v47, %v2531_v17  ;;  %2585 = vst.msk [vmem:[#allocation2 + $0xa8] sm:$0xff] %vm318_vm0, %v2553_v48 }
 0x2cb   : > { %2586 = vst.msk [vmem:[#allocation2 + $0xb0] sm:$0xff] %vm318_vm0, %v2554_v14  ;;  %2587 = vst.msk [vmem:[#allocation2 + $0xc8] sm:$0xff] %vm318_vm0, %v2555_v55  ;;  %v8176_v59 = vpack.i.bf16 %v2646_v8, %v2645_v57  ;;  %v2564_v51 = vmax.f32 %v8097_v2, %v2532_v3  ;;  %v2565_v18 = vmax.f32 %v8099_v53, %v2533_v5  ;;  %v2677_v55 = vld [vmem:[#allocation2 + $0x49] sm:$0xff]  ;;  %v2678_v57 = vld [vmem:[#allocation2 + $0x51] sm:$0xff] }
 0x2cc   : > { %v2566_v38 = vmax.f32 %v8101_v20, %v2534_v30  ;;  %v2643_v61 = vld [vmem:[#allocation2 + $0x28] sm:$0xff]  ;;  %2588 = vst.msk [vmem:[#allocation2 + $0xd0] sm:$0xff] %vm318_vm0, %v2556_v11  ;;  %2589 = vst.msk [vmem:[#allocation2 + $0xe8] sm:$0xff] %vm318_vm0, %v2557_v40  ;;  %v2567_v35 = vmax.f32 %v8103_v25, %v2535_v1  ;;  %v2568_v23 = vmax.f32 %v8105_v34, %v2536_v9  ;;  %v2644_v53 = vld [vmem:[#allocation2 + $0x30] sm:$0xff] }
 0x2cd   : > { %2590 = vst.msk [vmem:[#allocation2 + $0xf0] sm:$0xff] %vm318_vm0, %v2558_v56  ;;  %2591 = vst.msk [vmem:[#allocation2 + $0x108] sm:$0xff] %vm318_vm0, %v2559_v36  ;;  %v2569_v47 = vmax.f32 %v8107_v16, %v2537_v22  ;;  %v2570_v2 = vmax.f32 %v8109_v54, %v2538_v39  ;;  %5958 = vrot.lane.b32.xlu0 %v8176_v59, %s6690_s23  ;;  %v2571_v20 = vmax.f32 %v8111_v13, %v2539_v60  ;;  %v2672_v40 = vld [vmem:[#allocation2 + $0x1f0] sm:$0xff] }
 0x2ce   : > { %2592 = vst.msk [vmem:[#allocation2 + $0x110] sm:$0xff] %vm318_vm0, %v2560_v19  ;;  %2593 = vst.msk [vmem:[#allocation2 + $0x128] sm:$0xff] %vm318_vm0, %v2561_v0  ;;  %v2572_v25 = vmax.f32 %v8113_v15, %v2540_v50  ;;  %v2573_v34 = vmax.f32 %v8115_v29, %v2541_v37  ;;  %v2575_v16 = vmax.f32 %v8117_v28, %v2543_v62  ;;  %v2647_v15 = vld [vmem:[#allocation2 + $0x68] sm:$0xff]  ;;  %v2648_v29 = vld [vmem:[#allocation2 + $0x70] sm:$0xff] }
 0x2cf   : > { %2594 = vst.msk [vmem:[#allocation2 + $0x130] sm:$0xff] %vm318_vm0, %v2562_v21  ;;  %2595 = vst.msk [vmem:[#allocation2 + $0x148] sm:$0xff] %vm318_vm0, %v2563_v45  ;;  %v2576_v54 = vmax.f32 %v8119_v10, %v2544_v33  ;;  %v8203_v31 = vpack.i.bf16 %v2644_v53, %v2643_v61  ;;  %v8218_v4 = vpack.i.bf16 %v2648_v29, %v2647_v15  ;;  %v2675_v0 = vld [vmem:[#allocation2 + $0x29] sm:$0xff]  ;;  %v2676_v21 = vld [vmem:[#allocation2 + $0x31] sm:$0xff] }
 0x2d0   : > { %2596 = vst.msk [vmem:[#allocation2 + $0x150] sm:$0xff] %vm318_vm0, %v2564_v51  ;;  %2597 = vst.msk [vmem:[#allocation2 + $0x168] sm:$0xff] %vm318_vm0, %v2565_v18  ;;  %v2649_v13 = vld [vmem:[#allocation2 + $0x88] sm:$0xff]  ;;  %v2650_v28 = vld [vmem:[#allocation2 + $0x90] sm:$0xff]  ;;  %v6032_v56 = vpack.i.bf16 %v2678_v57, %v2677_v55  ;;  %v6027_v51 = vpack.i.bf16 %v2676_v21, %v2675_v0 }
 0x2d1   : > { %2598 = vst.msk [vmem:[#allocation2 + $0x170] sm:$0xff] %vm318_vm0, %v2566_v38  ;;  %2599 = vst.msk [vmem:[#allocation2 + $0x188] sm:$0xff] %vm318_vm0, %v2567_v35  ;;  %5953 = vrot.lane.b32.xlu1 %v8203_v31, %s6690_s23  ;;  %v8216_v10 = vpack.i.bf16 %v2650_v28, %v2649_v13  ;;  %v2651_v26 = vld [vmem:[#allocation2 + $0xa8] sm:$0xff]  ;;  %v2682_v19 = vld [vmem:[#allocation2 + $0x91] sm:$0xff] }
 0x2d2   : > { %2600 = vst.msk [vmem:[#allocation2 + $0x190] sm:$0xff] %vm318_vm0, %v2568_v23  ;;  %2601 = vst.msk [vmem:[#allocation2 + $0x1a8] sm:$0xff] %vm318_vm0, %v2569_v47  ;;  %v2653_v32 = vld [vmem:[#allocation2 + $0xc8] sm:$0xff]  ;;  %v2652_v12 = vld [vmem:[#allocation2 + $0xb0] sm:$0xff] }
 0x2d3   : > { %2602 = vst.msk [vmem:[#allocation2 + $0x1b0] sm:$0xff] %vm318_vm0, %v2570_v2  ;;  %2603 = vst.msk [vmem:[#allocation2 + $0x1c8] sm:$0xff] %vm318_vm0, %v2571_v20  ;;  %v2654_v63 = vld [vmem:[#allocation2 + $0xd0] sm:$0xff]  ;;  %5968 = vrot.lane.b32.xlu0 %v8216_v10, %s6690_s23  ;;  %v8226_v49 = vpack.i.bf16 %v2652_v12, %v2651_v26  ;;  %v2655_v58 = vld [vmem:[#allocation2 + $0xe8] sm:$0xff] }
 0x2d4   : > { %2604 = vst.msk [vmem:[#allocation2 + $0x1d0] sm:$0xff] %vm318_vm0, %v2572_v25  ;;  %2605 = vst.msk [vmem:[#allocation2 + $0x1e8] sm:$0xff] %vm318_vm0, %v2573_v34  ;;  %v8224_v27 = vpack.i.bf16 %v2654_v63, %v2653_v32  ;;  %v2657_v6 = vld [vmem:[#allocation2 + $0x108] sm:$0xff]  ;;  %v2656_v7 = vld [vmem:[#allocation2 + $0xf0] sm:$0xff] }
 0x2d5   : > { %2607 = vst.msk [vmem:[#allocation2 + $0x208] sm:$0xff] %vm318_vm0, %v2575_v16  ;;  %2608 = vst.msk [vmem:[#allocation2 + $0x210] sm:$0xff] %vm318_vm0, %v2576_v54  ;;  %5963 = vrot.lane.b32.xlu1 %v8218_v4, %s6690_s23  ;;  %v2658_v41 = vld [vmem:[#allocation2 + $0x110] sm:$0xff]  ;;  %v8234_v17 = vpack.i.bf16 %v2656_v7, %v2655_v58  ;;  %v2659_v46 = vld [vmem:[#allocation2 + $0x128] sm:$0xff] }
 0x2d6   : > { %v8232_v52 = vpack.i.bf16 %v2658_v41, %v2657_v6  ;;  %v2661_v3 = vld [vmem:[#allocation2 + $0x148] sm:$0xff]  ;;  %v2660_v30 = vld [vmem:[#allocation2 + $0x130] sm:$0xff]  ;;  %v6585_v15 = vld [vmem:[%s9531_s4] sm:$0xff]  }
 0x2d7   : > { %5978 = vrot.lane.b32.xlu0 %v8224_v27, %s6690_s23  ;;  %v2662_v5 = vld [vmem:[#allocation2 + $0x150] sm:$0xff]  ;;  %v8242_v9 = vpack.i.bf16 %v2660_v30, %v2659_v46  ;;  %v2663_v39 = vld [vmem:[#allocation2 + $0x168] sm:$0xff]  ;;  %5206 = vmatprep.subr.bf16.mxu1 %v6585_v15  ;;  %v6588_v12 = vld [vmem:[%s9531_s4 + $0x18] sm:$0xff]  }
 0x2d8   : > { %v8240_v1 = vpack.i.bf16 %v2662_v5, %v2661_v3  ;;  %v2665_v44 = vld [vmem:[#allocation2 + $0x188] sm:$0xff]  ;;  %v2664_v60 = vld [vmem:[#allocation2 + $0x170] sm:$0xff]  ;;  %5207 = vmatpush3.bf16.msra.mxu1 %v6585_v15  ;;  %v6589_v7 = vld [vmem:[%s9531_s4 + $0x20] ss:$0 sps:$4 sm:$0xff]  }
 0x2d9   : > { %5973 = vrot.lane.b32.xlu1 %v8226_v49, %s6690_s23  ;;  %v2666_v22 = vld [vmem:[#allocation2 + $0x190] sm:$0xff]  ;;  %v8248_v50 = vpack.i.bf16 %v2664_v60, %v2663_v39  ;;  %v2667_v42 = vld [vmem:[#allocation2 + $0x1a8] sm:$0xff]  ;;  %v8368_v60 = vpop.permute.xlu0 %5943 }
 0x2da   : > { %v6007_v43 = vpack.i.bf16 %v2666_v22, %v2665_v44  ;;  %v2669_v37 = vld [vmem:[#allocation2 + $0x1c8] sm:$0xff]  ;;  %v2668_v33 = vld [vmem:[#allocation2 + $0x1b0] sm:$0xff] }
 0x2db   : > { %5988 = vrot.lane.b32.xlu0 %v8232_v52, %s6690_s23  ;;  %v2670_v62 = vld [vmem:[#allocation2 + $0x1d0] sm:$0xff]  ;;  %v6012_v14 = vpack.i.bf16 %v2668_v33, %v2667_v42  ;;  %v2671_v11 = vld [vmem:[#allocation2 + $0x1e8] sm:$0xff] }
 0x2dc   : > { %v6017_v48 = vpack.i.bf16 %v2670_v62, %v2669_v37  ;;  %v6022_v36 = vpack.i.bf16 %v2672_v40, %v2671_v11  ;;  %v2681_v8 = vld [vmem:[#allocation2 + $0x89] sm:$0xff]  ;;  %v2686_v38 = vld [vmem:[#allocation2 + $0xd1] sm:$0xff] }
 0x2dd   : > { %5983 = vrot.lane.b32.xlu1 %v8234_v17, %s6690_s23  ;;  %v8257_v45 = vpack.i.bf16 %v2682_v19, %v2681_v8  ;;  %v2685_v18 = vld [vmem:[#allocation2 + $0xc9] sm:$0xff]  ;;  %v2680_v35 = vld [vmem:[#allocation2 + $0x71] sm:$0xff]  ;;  %v8380_v37 = vpop.permute.xlu0 %5948 }
 0x2de   : > { %v2679_v61 = vld [vmem:[#allocation2 + $0x69] sm:$0xff]  ;;  %v8262_v23 = vpack.i.bf16 %v2686_v38, %v2685_v18  ;;  %v2684_v25 = vld [vmem:[#allocation2 + $0xb1] sm:$0xff] }
 0x2df   : > { %5998 = vrot.lane.b32.xlu0 %v8240_v1, %s6690_s23  ;;  %v6037_v47 = vpack.i.bf16 %v2680_v35, %v2679_v61  ;;  %v8264_v2 = vld [vmem:[#allocation2 + $0x27] sm:$0xff]  ;;  %v8266_v53 = vld [vmem:[#allocation2 + $0x2f] sm:$0xff] }
 0x2e0   : > { %v2683_v20 = vld [vmem:[#allocation2 + $0xa9] sm:$0xff]  ;;  %v6062_v34 = vpack.i.bf16 %v8266_v53, %v8264_v2  ;;  %v2688_v13 = vld [vmem:[#allocation2 + $0xf1] sm:$0xff] }
 0x2e1   : > { %5993 = vrot.lane.b32.xlu1 %v8242_v9, %s6690_s23  ;;  %v8273_v16 = vpack.i.bf16 %v2684_v25, %v2683_v20  ;;  %v2687_v54 = vld [vmem:[#allocation2 + $0xe9] sm:$0xff]  ;;  %v2880_v35 = vld [vmem:[#allocation2 + $0x131] sm:$0xff] }
 0x2e2   : > { %v8281_v29 = vpack.i.bf16 %v2688_v13, %v2687_v54  ;;  %v8285_v28 = vld [vmem:[#allocation2 + $0x47] sm:$0xff]  ;;  %v8287_v32 = vld [vmem:[#allocation2 + $0x4f] sm:$0xff] }
 0x2e3   : > { %6008 = vrot.lane.b32.xlu0 %v6007_v43, %s6690_s23  ;;  %v6586_v63 = vld [vmem:[%s9531_s4 + $0x8] sm:$0xff]   ;;  %v6067_v26 = vpack.i.bf16 %v8287_v32, %v8285_v28 }
 0x2e4   : > { %5208 = vmatprep.subr.bf16.mxu1 %v6586_v63  ;;  %v8309_v6 = vld [vmem:[#allocation2 + $0x67] sm:$0xff]  ;;  %v8311_v41 = vld [vmem:[#allocation2 + $0x6f] sm:$0xff] }
 0x2e5   : > { %6003 = vrot.lane.b32.xlu1 %v8248_v50, %s6690_s23  ;;  %5209 = vmatpush3.bf16.msra.mxu1 %v6586_v63  ;;  %v6097_v58 = vpack.i.bf16 %v8311_v41, %v8309_v6  ;;  %v8326_v3 = vld [vmem:[#allocation2 + $0x87] sm:$0xff]  ;;  %v8328_v5 = vld [vmem:[#allocation2 + $0x8f] sm:$0xff] }
 0x2e6   : > { %v6127_v46 = vpack.i.bf16 %v8328_v5, %v8326_v3  ;;  %v8342_v30 = vld [vmem:[#allocation2 + $0xaf] sm:$0xff]  ;;  %v8396_v33 = vld [vmem:[#allocation2 + $0x107] sm:$0xff] }
 0x2e7   : > { %6018 = vrot.lane.b32.xlu0 %v6017_v48, %s6690_s23  ;;  %v8358_v22 = vld [vmem:[#allocation2 + $0xcf] sm:$0xff]  ;;  %v2627_v0 = vld [vmem:[#allocation2 + $0x127] sm:$0xff] }
 0x2e8   : > { %v8376_v43 = vld [vmem:[#allocation2 + $0xef] sm:$0xff] }
 0x2e9   : > { %6013 = vrot.lane.b32.xlu1 %v6012_v14, %s6690_s23  ;;  %v8398_v48 = vld [vmem:[#allocation2 + $0x10f] sm:$0xff] }
 0x2ea   : > { %v6247_v57 = vpack.i.bf16 %v8398_v48, %v8396_v33  ;;  %v2783_v40 = vld [vmem:[#allocation2 + $0x109] sm:$0xff] }
 0x2eb   : > { %6033 = vrot.lane.b32.xlu0 %v6032_v56, %s6692_s25  ;;  %v2628_v21 = vld [vmem:[#allocation2 + $0x12f] sm:$0xff] }
 0x2ec   : > { %v6277_v18 = vpack.i.bf16 %v2628_v21, %v2627_v0  ;;  %v2630_v54 = vld [vmem:[#allocation2 + $0x14f] sm:$0xff] }
 0x2ed   : > { %6023 = vrot.lane.b32.xlu1 %v6022_v36, %s6690_s23  ;;  %s6698_s23 = smov 48   ;;  %v2610_v0 = vld [vmem:[#allocation2 + $0xf] sm:$0xff] }
 0x2ef   : > { %6043 = vrot.lane.b32.xlu0 %v8257_v45, %s6692_s25 }
 0x2f1   : > { %6028 = vrot.lane.b32.xlu1 %v6027_v51, %s6692_s25 }
 0x2f3   : > { %6053 = vrot.lane.b32.xlu0 %v8262_v23, %s6692_s25 }
 0x2f5   : > { %6038 = vrot.lane.b32.xlu1 %v6037_v47, %s6692_s25 }
 0x2f7   : > { %6063 = vrot.lane.b32.xlu0 %v6062_v34, %s6694_s24 }
 0x2f9   : > { %6048 = vrot.lane.b32.xlu1 %v8273_v16, %s6692_s25 }
 0x2fb   : > { %6073 = vrot.lane.b32.xlu0 %v8203_v31, %s6696_s10  ;;  %v6587_v31 = vld [vmem:[%s9531_s4 + $0x10] sm:$0xff]  }
 0x2fc   : > { %5210 = vmatprep.subr.bf16.mxu1 %v6587_v31 }
 0x2fd   : > { %6058 = vrot.lane.b32.xlu1 %v8281_v29, %s6692_s25  ;;  %5211 = vmatpush3.bf16.msra.mxu1 %v6587_v31  ;;  %v2787_v31 = vld [vmem:[#allocation2 + $0x149] sm:$0xff] }
 0x2fe   : > { %5212 = vmatprep.subr.bf16.mxu1 %v6588_v12 }
 0x2ff   : > { %6083 = vrot.lane.b32.xlu0 %v6027_v51, %s6697_s13 }
 0x301   : > { %6068 = vrot.lane.b32.xlu1 %v6067_v26, %s6694_s24  ;;  %5213 = vmatpush3.bf16.msra.mxu1 %v6588_v12  ;;  %v2788_v12 = vld [vmem:[#allocation2 + $0x151] sm:$0xff] }
 0x302   : > { %5249 = vmatprep.subr.msk.bf16.mxu1 %vm4282_vm10, %v6589_v7 }
 0x303   : > { %6093 = vrot.lane.b32.xlu0 %v6067_v26, %s6698_s23 }
 0x305   : > { %6078 = vrot.lane.b32.xlu1 %v8176_v59, %s6696_s10 }
 0x307   : > { %6103 = vrot.lane.b32.xlu0 %v8176_v59, %s6699_s12  ;;  %v4284_v59 = vsel %vm4282_vm10, %v6589_v7, 0  ;;  %v6337_v7 = vpack.i.bf16 %v2788_v12, %v2787_v31 }
 0x308   : > { %5215 = vmatpush3.bf16.msra.mxu1 %v4284_v59  ;;  %v2631_v59 = vld [vmem:[#allocation2 + $0x167] sm:$0xff] }
 0x309   : > { %6088 = vrot.lane.b32.xlu1 %v6032_v56, %s6697_s13 }
 0x30b   : > { %6113 = vrot.lane.b32.xlu0 %v6032_v56, %s6700_s21  ;;  %v2784_v56 = vld [vmem:[#allocation2 + $0x111] sm:$0xff] }
 0x30c   : > { %v6267_v19 = vpack.i.bf16 %v2784_v56, %v2783_v40  ;;  %v5945_v40 = vunpack.i.l.bf16 %v8368_v60 }
 0x30d   : > { %6098 = vrot.lane.b32.xlu1 %v6097_v58, %s6698_s23 }
 0x30f   : > { %6123 = vrot.lane.b32.xlu0 %v6097_v58, %s6694_s24 }
 0x311   : > { %6108 = vrot.lane.b32.xlu1 %v8218_v4, %s6699_s12 }
 0x313   : > { %6133 = vrot.lane.b32.xlu0 %v8218_v4, %s6696_s10  ;;  %v8340_v4 = vld [vmem:[#allocation2 + $0xa7] sm:$0xff] }
 0x314   : > { %v6157_v44 = vpack.i.bf16 %v8342_v30, %v8340_v4 }
 0x315   : > { %6118 = vrot.lane.b32.xlu1 %v6037_v47, %s6700_s21 }
 0x317   : > { %6143 = vrot.lane.b32.xlu0 %v6037_v47, %s6697_s13 }
 0x319   : > { %6128 = vrot.lane.b32.xlu1 %v6127_v46, %s6694_s24 }
 0x31b   : > { %6153 = vrot.lane.b32.xlu0 %v6127_v46, %s6698_s23  ;;  %v2632_v46 = vld [vmem:[#allocation2 + $0x16f] sm:$0xff] }
 0x31d   : > { %6138 = vrot.lane.b32.xlu1 %v8216_v10, %s6696_s10 }
 0x31f   : > { %6163 = vrot.lane.b32.xlu0 %v8216_v10, %s6699_s12  ;;  %v8356_v10 = vld [vmem:[#allocation2 + $0xc7] sm:$0xff] }
 0x320   : > { %v6187_v39 = vpack.i.bf16 %v8358_v22, %v8356_v10 }
 0x321   : > { %6148 = vrot.lane.b32.xlu1 %v8257_v45, %s6697_s13 }
 0x323   : > { %6173 = vrot.lane.b32.xlu0 %v8257_v45, %s6700_s21 }
 0x325   : > { %6158 = vrot.lane.b32.xlu1 %v6157_v44, %s6698_s23 }
 0x327   : > { %6183 = vrot.lane.b32.xlu0 %v6157_v44, %s6694_s24 }
 0x329   : > { %6168 = vrot.lane.b32.xlu1 %v8226_v49, %s6699_s12 }
 0x32b   : > { %6193 = vrot.lane.b32.xlu0 %v8226_v49, %s6696_s10  ;;  %v8374_v49 = vld [vmem:[#allocation2 + $0xe7] sm:$0xff] }
 0x32c   : > { %v6217_v62 = vpack.i.bf16 %v8376_v43, %v8374_v49 }
 0x32d   : > { %6178 = vrot.lane.b32.xlu1 %v8273_v16, %s6700_s21 }
 0x32f   : > { %6203 = vrot.lane.b32.xlu0 %v8273_v16, %s6697_s13  ;;  %v2629_v16 = vld [vmem:[#allocation2 + $0x147] sm:$0xff] }
 0x331   : > { %6188 = vrot.lane.b32.xlu1 %v6187_v39, %s6694_s24 }
 0x333   : > { %6213 = vrot.lane.b32.xlu0 %v6187_v39, %s6698_s23 }
 0x335   : > { %6198 = vrot.lane.b32.xlu1 %v8224_v27, %s6696_s10 }
 0x337   : > { %6223 = vrot.lane.b32.xlu0 %v8224_v27, %s6699_s12 }
 0x339   : > { %6208 = vrot.lane.b32.xlu1 %v8262_v23, %s6697_s13 }
 0x33b   : > { %6233 = vrot.lane.b32.xlu0 %v8262_v23, %s6700_s21 }
 0x33d   : > { %6218 = vrot.lane.b32.xlu1 %v6217_v62, %s6698_s23 }
 0x33f   : > { %6243 = vrot.lane.b32.xlu0 %v6217_v62, %s6694_s24  ;;  %v8388_v27 = vpop.permute.xlu0 %5958  ;;  %v6347_v62 = vpack.i.bf16 %v2632_v46, %v2631_v59 }
 0x341   : > { %6228 = vrot.lane.b32.xlu1 %v8234_v17, %s6699_s12 }
 0x343   : > { %v8392_v42 = vpop.permute.xlu1 %5953  ;;  %6253 = vrot.lane.b32.xlu0 %v8234_v17, %s6696_s10 }
 0x345   : > { %6238 = vrot.lane.b32.xlu1 %v8281_v29, %s6700_s21  ;;  %v8402_v14 = vpop.permute.xlu0 %5968 }
 0x347   : > { %v8404_v55 = vpop.permute.xlu1 %5963  ;;  %6263 = vrot.lane.b32.xlu0 %v8281_v29, %s6697_s13  ;;  %v6317_v29 = vpack.i.bf16 %v2630_v54, %v2629_v16  ;;  %v2633_v54 = vld [vmem:[#allocation2 + $0x187] sm:$0xff] }
 0x349   : > { %6248 = vrot.lane.b32.xlu1 %v6247_v57, %s6694_s24  ;;  %v8411_v17 = vpop.permute.xlu0 %5978 }
 0x34b   : > { %v8413_v11 = vpop.permute.xlu1 %5973  ;;  %6273 = vrot.lane.b32.xlu0 %v6247_v57, %s6698_s23  ;;  %v5946_v57 = vunpack.i.h.bf16 %v8368_v60 }
 0x34d   : > { %6258 = vrot.lane.b32.xlu1 %v8232_v52, %s6696_s10  ;;  %v8418_v36 = vpop.permute.xlu0 %5988 }
 0x34f   : > { %v8420_v8 = vpop.permute.xlu1 %5983  ;;  %6283 = vrot.lane.b32.xlu0 %v8232_v52, %s6699_s12  ;;  %v2879_v52 = vld [vmem:[#allocation2 + $0x129] sm:$0xff] }
 0x350   : > { %v6297_v20 = vpack.i.bf16 %v2880_v35, %v2879_v52  ;;  %v5951_v52 = vunpack.i.h.bf16 %v8380_v37  ;;  %v5950_v35 = vunpack.i.l.bf16 %v8380_v37 }
 0x351   : > { %6268 = vrot.lane.b32.xlu1 %v6267_v19, %s6697_s13  ;;  %v8425_v45 = vpop.permute.xlu0 %5998 }
 0x353   : > { %v8427_v51 = vpop.permute.xlu1 %5993  ;;  %6293 = vrot.lane.b32.xlu0 %v6267_v19, %s6700_s21 }
 0x355   : > { %6278 = vrot.lane.b32.xlu1 %v6277_v18, %s6698_s23  ;;  %v8431_v38 = vpop.permute.xlu0 %6008 }
 0x357   : > { %v8433_v61 = vpop.permute.xlu1 %6003  ;;  %6303 = vrot.lane.b32.xlu0 %v6267_v19, %s6692_s25  ;;  %v2609_v19 = vld [vmem:[#allocation2 + $0x7] sm:$0xff] }
 0x358   : > { %v3921_v60 = vsel %vm318_vm0, %v2609_v19, %v5945_v40 }
 0x359   : > { %6288 = vrot.lane.b32.xlu1 %v8242_v9, %s6699_s12  ;;  %v8438_v23 = vpop.permute.xlu0 %6018  ;;  %v3953_v46 = vsel %vm1840_vm4, %v3921_v60, %v5950_v35  ;;  %v5955_v60 = vunpack.i.l.bf16 %v8392_v42 }
 0x35a   : > { %9641 = vst [vmem:[#allocation18_spill] sm:$0xff] %v8438_v23 }
 0x35b   : > { %v8440_v47 = vpop.permute.xlu1 %6013  ;;  %6313 = vrot.lane.b32.xlu0 %v6277_v18, %s6694_s24  ;;  %v2884_v18 = vld [vmem:[#allocation2 + $0x171] sm:$0xff] }
 0x35d   : > { %6298 = vrot.lane.b32.xlu1 %v6297_v20, %s6700_s21  ;;  %v8444_v25 = vpop.permute.xlu0 %6033 }
 0x35f   : > { %v8446_v34 = vpop.permute.xlu1 %6023  ;;  %6323 = vrot.lane.b32.xlu0 %v8242_v9, %s6696_s10 }
 0x360   : > { %9642 = vst [vmem:[#allocation19_spill] sm:$0xff] %v8446_v34 }
 0x361   : > { %6308 = vrot.lane.b32.xlu1 %v6297_v20, %s6692_s25  ;;  %v8451_v13 = vpop.permute.xlu0 %6043 }
 0x363   : > { %v8453_v15 = vpop.permute.xlu1 %6028  ;;  %6333 = vrot.lane.b32.xlu0 %v6297_v20, %s6697_s13  ;;  %v3922_v20 = vsel %vm318_vm0, %v2610_v0, %v5946_v57 }
 0x364   : > { %v3954_v37 = vsel %vm1840_vm4, %v3922_v20, %v5951_v52  ;;  %v5956_v20 = vunpack.i.h.bf16 %v8392_v42 }
 0x365   : > { %6318 = vrot.lane.b32.xlu1 %v6317_v29, %s6694_s24  ;;  %v8457_v63 = vpop.permute.xlu0 %6053 }
 0x367   : > { %v8459_v26 = vpop.permute.xlu1 %6038  ;;  %6343 = vrot.lane.b32.xlu0 %v6317_v29, %s6698_s23  ;;  %v2634_v29 = vld [vmem:[#allocation2 + $0x18f] sm:$0xff] }
 0x368   : > { %v6387_v0 = vpack.i.bf16 %v2634_v29, %v2633_v54 }
 0x369   : > { %6328 = vrot.lane.b32.xlu1 %v8240_v1, %s6696_s10  ;;  %v6064_v9 = vpop.permute.xlu0 %6063 }
 0x36a   : > { %v6065_v59 = vunpack.i.l.bf16 %v6064_v9 }
 0x36b   : > { %v8464_v58 = vpop.permute.xlu1 %6048  ;;  %6353 = vrot.lane.b32.xlu0 %v8240_v1, %s6699_s12  ;;  %v2883_v1 = vld [vmem:[#allocation2 + $0x169] sm:$0xff] }
 0x36c   : > { %v6367_v12 = vpack.i.bf16 %v2884_v18, %v2883_v1 }
 0x36d   : > { %6338 = vrot.lane.b32.xlu1 %v6337_v7, %s6697_s13  ;;  %v6074_v44 = vpop.permute.xlu0 %6073 }
 0x36e   : > { %v6076_v24 = vunpack.i.h.bf16 %v6074_v44  ;;  %v6075_v34 = vunpack.i.l.bf16 %v6074_v44 }
 0x36f   : > { %v8469_v39 = vpop.permute.xlu1 %6058  ;;  %6363 = vrot.lane.b32.xlu0 %v6337_v7, %s6700_s21 }
 0x371   : > { %6348 = vrot.lane.b32.xlu1 %v6347_v62, %s6698_s23  ;;  %v6084_v56 = vpop.permute.xlu0 %6083 }
 0x372   : > { %v6086_v57 = vunpack.i.h.bf16 %v6084_v56  ;;  %v6085_v40 = vunpack.i.l.bf16 %v6084_v56 }
 0x373   : > { %v8475_v21 = vpop.permute.xlu1 %6068  ;;  %6373 = vrot.lane.b32.xlu0 %v6337_v7, %s6692_s25  ;;  %v6066_v7 = vunpack.i.h.bf16 %v6064_v9 }
 0x375   : > { %6358 = vrot.lane.b32.xlu1 %v8248_v50, %s6699_s12  ;;  %v6094_v16 = vpop.permute.xlu0 %6093  ;;  %v3986_v9 = vsel %vm1906_vm6, %v3954_v37, %v6066_v7  ;;  %v2760_v37 = vld [vmem:[#allocation2 + $0x190] sm:$0xff] }
 0x376   : > { %v6096_v23 = vunpack.i.h.bf16 %v6094_v16  ;;  %v6095_v1 = vunpack.i.l.bf16 %v6094_v16  ;;  %v4018_v56 = vsel %vm1972_vm8, %v3986_v9, %v6076_v24  ;;  %v6030_v9 = vunpack.i.l.bf16 %v8453_v15 }
 0x377   : > { %v8484_v31 = vpop.permute.xlu1 %6078  ;;  %6383 = vrot.lane.b32.xlu0 %v6347_v62, %s6694_s24  ;;  %v3985_v62 = vsel %vm1906_vm6, %v3953_v46, %v6065_v59  ;;  %v4051_v54 = vsel %vm4049_vm11, %v4018_v56, %v6086_v57  ;;  %v2759_v46 = vld [vmem:[#allocation2 + $0x188] sm:$0xff] }
 0x378   : > { %v4017_v44 = vsel %vm1972_vm8, %v3985_v62, %v6075_v34 }
 0x379   : > { %6368 = vrot.lane.b32.xlu1 %v6367_v12, %s6700_s21  ;;  %v6104_v19 = vpop.permute.xlu0 %6103  ;;  %v4050_v16 = vsel %vm4049_vm11, %v4017_v44, %v6085_v40  ;;  %v6071_v40 = vunpack.i.h.bf16 %v8475_v21  ;;  %v6081_v44 = vunpack.i.h.bf16 %v8484_v31 }
 0x37a   : > { %v6106_v52 = vunpack.i.h.bf16 %v6104_v19  ;;  %v6105_v35 = vunpack.i.l.bf16 %v6104_v19  ;;  %v4083_v7 = vsel %vm4082_vm12, %v4050_v16, %v6095_v1  ;;  %v6031_v19 = vunpack.i.h.bf16 %v8453_v15 }
 0x37b   : > { %v8490_v18 = vpop.permute.xlu1 %6088  ;;  %6393 = vrot.lane.b32.xlu0 %v8248_v50, %s6696_s10  ;;  %v4084_v50 = vsel %vm4082_vm12, %v4051_v54, %v6096_v23  ;;  %v6070_v1 = vunpack.i.l.bf16 %v8475_v21  ;;  %v6080_v15 = vunpack.i.l.bf16 %v8484_v31  ;;  %v3924_v21 = vsel %vm318_vm0, %v8266_v53, %v5956_v20 }
 0x37c   : > { %v4116_v42 = vsel %vm4115_vm13, %v4083_v7, %v6105_v35  ;;  %v4117_v57 = vsel %vm4115_vm13, %v4084_v50, %v6106_v52  ;;  %v6397_v35 = vpack.i.bf16 %v2760_v37, %v2759_v46  ;;  %v3923_v52 = vsel %vm318_vm0, %v8264_v2, %v5955_v60  ;;  %v2792_v2 = vld [vmem:[#allocation2 + $0x191] sm:$0xff] }
 0x37d   : > { %6378 = vrot.lane.b32.xlu1 %v6367_v12, %s6692_s25  ;;  %v6114_v29 = vpop.permute.xlu0 %6113  ;;  %v6091_v16 = vunpack.i.h.bf16 %v8490_v18  ;;  %v6090_v54 = vunpack.i.l.bf16 %v8490_v18  ;;  %v3955_v7 = vsel %vm1840_vm4, %v3923_v52, %v6030_v9  ;;  %v3956_v50 = vsel %vm1840_vm4, %v3924_v21, %v6031_v19 }
 0x37e   : > { %v6116_v34 = vunpack.i.h.bf16 %v6114_v29  ;;  %v6115_v59 = vunpack.i.l.bf16 %v6114_v29  ;;  %v3987_v60 = vsel %vm1906_vm6, %v3955_v7, %v6070_v1  ;;  %v3988_v53 = vsel %vm1906_vm6, %v3956_v50, %v6071_v40  ;;  %v2855_v50 = vld [vmem:[#allocation2 + $0x1a8] sm:$0xff] }
 0x37f   : > { %v6099_v24 = vpop.permute.xlu1 %6098  ;;  %6403 = vrot.lane.b32.xlu0 %v6367_v12, %s6697_s13  ;;  %v4019_v18 = vsel %vm1972_vm8, %v3987_v60, %v6080_v15  ;;  %v4020_v37 = vsel %vm1972_vm8, %v3988_v53, %v6081_v44  ;;  %v2888_v60 = vld [vmem:[#allocation2 + $0x1b1] sm:$0xff]  ;;  %v6036_v53 = vunpack.i.h.bf16 %v8444_v25 }
 0x380   : > { %v4149_v23 = vsel %vm4148_vm14, %v4116_v42, %v6115_v59  ;;  %v4150_v62 = vsel %vm4148_vm14, %v4117_v57, %v6116_v34  ;;  %v6101_v31 = vunpack.i.h.bf16 %v6099_v24  ;;  %v6100_v34 = vunpack.i.l.bf16 %v6099_v24  ;;  %v2791_v59 = vld [vmem:[#allocation2 + $0x189] sm:$0xff] }
 0x381   : > { %6388 = vrot.lane.b32.xlu1 %v6387_v0, %s6694_s24  ;;  %v8517_v56 = vpop.permute.xlu0 %6123  ;;  %v4181_v12 = vpack.c.bf16 %v4150_v62, %v4149_v23  ;;  %v4052_v24 = vsel %vm4049_vm11, %v4019_v18, %v6090_v54  ;;  %v6407_v42 = vpack.i.bf16 %v2792_v2, %v2791_v59  ;;  %v2635_v57 = vld [vmem:[#allocation2 + $0x1a7] sm:$0xff]  ;;  %v2636_v23 = vld [vmem:[#allocation2 + $0x1af] sm:$0xff] }
 0x382   : > { %v4085_v1 = vsel %vm4082_vm12, %v4052_v24, %v6100_v34  ;;  %v6417_v7 = vpack.i.bf16 %v2636_v23, %v2635_v57  ;;  %v5960_v34 = vunpack.i.l.bf16 %v8388_v27  ;;  %v2887_v2 = vld [vmem:[#allocation2 + $0x1a9] sm:$0xff]  ;;  %v6125_v24 = vunpack.i.l.bf16 %v8517_v56 }
 0x383   : > { %v6109_v29 = vpop.permute.xlu1 %6108  ;;  %6413 = vrot.lane.b32.xlu0 %v6387_v0, %s6698_s23  ;;  %5216 = vmatprep.mubr.msk.bf16.mxu1 %vm4233_vm15, %v4181_v12  ;;  %v4053_v0 = vsel %vm4049_vm11, %v4020_v37, %v6091_v16  ;;  %v6126_v37 = vunpack.i.h.bf16 %v8517_v56 }
 0x384   : > { %v6111_v20 = vunpack.i.h.bf16 %v6109_v29  ;;  %v6110_v46 = vunpack.i.l.bf16 %v6109_v29  ;;  %v4086_v40 = vsel %vm4082_vm12, %v4053_v0, %v6101_v31  ;;  %v2856_v31 = vld [vmem:[#allocation2 + $0x1b0] sm:$0xff]  ;;  %v3925_v57 = vsel %vm318_vm0, %v8285_v28, %v5960_v34  ;;  %v2637_v34 = vld [vmem:[#allocation2 + $0x1c7] sm:$0xff] }
 0x385   : > { %6398 = vrot.lane.b32.xlu1 %v6397_v35, %s6696_s10  ;;  %v6134_v19 = vpop.permute.xlu0 %6133  ;;  %v6427_v18 = vpack.i.bf16 %v2856_v31, %v2855_v50 }
 0x386   : > { %v4118_v15 = vsel %vm4115_vm13, %v4085_v1, %v6110_v46  ;;  %v4119_v44 = vsel %vm4115_vm13, %v4086_v40, %v6111_v20  ;;  %v6035_v20 = vunpack.i.l.bf16 %v8444_v25  ;;  %v6136_v0 = vunpack.i.h.bf16 %v6134_v19 }
 0x387   : > { %v6119_v9 = vpop.permute.xlu1 %6118  ;;  %6423 = vrot.lane.b32.xlu0 %v6397_v35, %s6699_s12  ;;  %v5961_v35 = vunpack.i.h.bf16 %v8388_v27  ;;  %v6437_v27 = vpack.i.bf16 %v2888_v60, %v2887_v2 }
 0x388   : > { %v6121_v62 = vunpack.i.h.bf16 %v6119_v9  ;;  %v6120_v12 = vunpack.i.l.bf16 %v6119_v9  ;;  %v6135_v9 = vunpack.i.l.bf16 %v6134_v19 }
 0x389   : > { %6408 = vrot.lane.b32.xlu1 %v6407_v42, %s6697_s13  ;;  %v6144_v16 = vpop.permute.xlu0 %6143  ;;  %v3926_v25 = vsel %vm318_vm0, %v8287_v32, %v5961_v35 }
 0x38a   : > { %v4151_v52 = vsel %vm4148_vm14, %v4118_v15, %v6120_v12  ;;  %v4152_v21 = vsel %vm4148_vm14, %v4119_v44, %v6121_v62  ;;  %v6146_v23 = vunpack.i.h.bf16 %v6144_v16  ;;  %v6145_v1 = vunpack.i.l.bf16 %v6144_v16 }
 0x38b   : > { %v4182_v54 = vpack.c.bf16 %v4152_v21, %v4151_v52  ;;  %v8544_v29 = vpop.permute.xlu1 %6128  ;;  %6433 = vrot.lane.b32.xlu0 %v6407_v42, %s6700_s21  ;;  %v3957_v62 = vsel %vm1840_vm4, %v3925_v57, %v6035_v20  ;;  %v3958_v56 = vsel %vm1840_vm4, %v3926_v25, %v6036_v53  ;;  %v5966_v16 = vunpack.i.h.bf16 %v8404_v55 }
 0x38c   : > { %v3990_v19 = vsel %vm1906_vm6, %v3958_v56, %v6126_v37  ;;  %v3989_v44 = vsel %vm1906_vm6, %v3957_v62, %v6125_v24  ;;  %v6041_v37 = vunpack.i.h.bf16 %v8459_v26  ;;  %v6040_v24 = vunpack.i.l.bf16 %v8459_v26 }
 0x38d   : > { %6418 = vrot.lane.b32.xlu1 %v6417_v7, %s6698_s23  ;;  %5217 = vmatmul.mubr.msk.bf16.vlgmr.msra.gmra.mrb[0].mxu1 %vm4233_vm15, %v4182_v54  ;;  %v6154_v59 = vpop.permute.xlu0 %6153  ;;  %v4021_v28 = vsel %vm1972_vm8, %v3989_v44, %v6135_v9  ;;  %v4022_v32 = vsel %vm1972_vm8, %v3990_v19, %v6136_v0  ;;  %v5965_v54 = vunpack.i.l.bf16 %v8404_v55  ;;  %v6131_v9 = vunpack.i.h.bf16 %v8544_v29 }
 0x38e   : > { %v6156_v12 = vunpack.i.h.bf16 %v6154_v59  ;;  %v4054_v50 = vsel %vm4049_vm11, %v4021_v28, %v6145_v1  ;;  %v4055_v31 = vsel %vm4049_vm11, %v4022_v32, %v6146_v23  ;;  %v6130_v57 = vunpack.i.l.bf16 %v8544_v29  ;;  %v2764_v32 = vld [vmem:[#allocation2 + $0x1d0] sm:$0xff] }
 0x38f   : > { %v8553_v46 = vpop.permute.xlu1 %6138  ;;  %6443 = vrot.lane.b32.xlu0 %v6407_v42, %s6692_s25  ;;  %v6155_v42 = vunpack.i.l.bf16 %v6154_v59  ;;  %v2638_v59 = vld [vmem:[#allocation2 + $0x1cf] sm:$0xff]  ;;  %v3927_v29 = vsel %vm318_vm0, %v8309_v6, %v5965_v54 }
 0x390   : > { %v6141_v1 = vunpack.i.h.bf16 %v8553_v46  ;;  %v6140_v26 = vunpack.i.l.bf16 %v8553_v46  ;;  %v6457_v56 = vpack.i.bf16 %v2638_v59, %v2637_v34  ;;  %v3959_v44 = vsel %vm1840_vm4, %v3927_v29, %v6040_v24  ;;  %v2763_v46 = vld [vmem:[#allocation2 + $0x1c8] sm:$0xff] }
 0x391   : > { %6428 = vrot.lane.b32.xlu1 %v6427_v18, %s6699_s12  ;;  %v6164_v40 = vpop.permute.xlu0 %6163  ;;  %v4087_v2 = vsel %vm4082_vm12, %v4054_v50, %v6155_v42  ;;  %v6467_v59 = vpack.i.bf16 %v2764_v32, %v2763_v46 }
 0x392   : > { %v6166_v52 = vunpack.i.h.bf16 %v6164_v40  ;;  %v6165_v21 = vunpack.i.l.bf16 %v6164_v40 }
 0x393   : > { %v6149_v15 = vpop.permute.xlu1 %6148  ;;  %6453 = vrot.lane.b32.xlu0 %v6417_v7, %s6694_s24  ;;  %v4088_v7 = vsel %vm4082_vm12, %v4055_v31, %v6156_v12 }
 0x394   : > { %v4120_v55 = vsel %vm4115_vm13, %v4087_v2, %v6165_v21  ;;  %v4121_v0 = vsel %vm4115_vm13, %v4088_v7, %v6166_v52  ;;  %v6151_v12 = vunpack.i.h.bf16 %v6149_v15  ;;  %v6150_v42 = vunpack.i.l.bf16 %v6149_v15 }
 0x395   : > { %6438 = vrot.lane.b32.xlu1 %v6437_v27, %s6700_s21  ;;  %v6174_v35 = vpop.permute.xlu0 %6173 }
 0x396   : > { %v6176_v60 = vunpack.i.h.bf16 %v6174_v35  ;;  %v6175_v53 = vunpack.i.l.bf16 %v6174_v35 }
 0x397   : > { %v6159_v20 = vpop.permute.xlu1 %6158  ;;  %6463 = vrot.lane.b32.xlu0 %v6427_v18, %s6696_s10  ;;  %v3928_v18 = vsel %vm318_vm0, %v8311_v41, %v5966_v16  ;;  %v3991_v41 = vsel %vm1906_vm6, %v3959_v44, %v6130_v57  ;;  %v6045_v44 = vunpack.i.l.bf16 %v8451_v13 }
 0x398   : > { %v4153_v25 = vsel %vm4148_vm14, %v4120_v55, %v6175_v53  ;;  %v4154_v23 = vsel %vm4148_vm14, %v4121_v0, %v6176_v60  ;;  %v3960_v52 = vsel %vm1840_vm4, %v3928_v18, %v6041_v37  ;;  %v6161_v21 = vunpack.i.h.bf16 %v6159_v20  ;;  %v2796_v37 = vld [vmem:[#allocation2 + $0x1d1] sm:$0xff] }
 0x399   : > { %6448 = vrot.lane.b32.xlu1 %v6437_v27, %s6692_s25  ;;  %v4183_v40 = vpack.c.bf16 %v4154_v23, %v4153_v25  ;;  %v8589_v62 = vpop.permute.xlu0 %6183  ;;  %v6160_v28 = vunpack.i.l.bf16 %v6159_v20  ;;  %v3992_v16 = vsel %vm1906_vm6, %v3960_v52, %v6131_v9  ;;  %v4023_v15 = vsel %vm1972_vm8, %v3991_v41, %v6140_v26  ;;  %v2795_v20 = vld [vmem:[#allocation2 + $0x1c9] sm:$0xff] }
 0x39a   : > { %v4024_v50 = vsel %vm1972_vm8, %v3992_v16, %v6141_v1  ;;  %v4056_v35 = vsel %vm4049_vm11, %v4023_v15, %v6150_v42  ;;  %v6477_v1 = vpack.i.bf16 %v2796_v37, %v2795_v20  ;;  %v8616_v26 = vld [vmem:[#allocation2 + $0x1e7] sm:$0xff]  ;;  %v5970_v18 = vunpack.i.l.bf16 %v8402_v14  ;;  %v2860_v42 = vld [vmem:[#allocation2 + $0x1f0] sm:$0xff] }
 0x39b   : > { %v6169_v19 = vpop.permute.xlu1 %6168  ;;  %6473 = vrot.lane.b32.xlu0 %v6437_v27, %s6697_s13  ;;  %5220 = vmatprep.mubr.msk.bf16.mxu1 %vm4233_vm15, %v4183_v40  ;;  %v4057_v27 = vsel %vm4049_vm11, %v4024_v50, %v6151_v12  ;;  %v4089_v2 = vsel %vm4082_vm12, %v4056_v35, %v6160_v28  ;;  %v8618_v40 = vld [vmem:[#allocation2 + $0x1ef] sm:$0xff]  ;;  %v6186_v28 = vunpack.i.h.bf16 %v8589_v62  ;;  %v6185_v46 = vunpack.i.l.bf16 %v8589_v62 }
 0x39c   : > { %v6171_v6 = vunpack.i.h.bf16 %v6169_v19  ;;  %v6170_v54 = vunpack.i.l.bf16 %v6169_v19  ;;  %v4090_v7 = vsel %vm4082_vm12, %v4057_v27, %v6161_v21  ;;  %v2859_v12 = vld [vmem:[#allocation2 + $0x1e8] sm:$0xff]  ;;  %v6046_v19 = vunpack.i.h.bf16 %v8451_v13  ;;  %v2892_v35 = vld [vmem:[#allocation2 + $0x1f1] sm:$0xff] }
 0x39d   : > { %6458 = vrot.lane.b32.xlu1 %v6457_v56, %s6694_s24  ;;  %v6194_v31 = vpop.permute.xlu0 %6193  ;;  %v6487_v21 = vpack.i.bf16 %v8618_v40, %v8616_v26  ;;  %v6497_v41 = vpack.i.bf16 %v2860_v42, %v2859_v12  ;;  %v3929_v13 = vsel %vm318_vm0, %v8326_v3, %v5970_v18  ;;  %v2891_v50 = vld [vmem:[#allocation2 + $0x1e9] sm:$0xff]  ;;  %v5976_v37 = vunpack.i.h.bf16 %v8413_v11 }
 0x39e   : > { %v4122_v24 = vsel %vm4115_vm13, %v4089_v2, %v6170_v54  ;;  %v4123_v55 = vsel %vm4115_vm13, %v4090_v7, %v6171_v6  ;;  %v6196_v32 = vunpack.i.h.bf16 %v6194_v31  ;;  %v3961_v62 = vsel %vm1840_vm4, %v3929_v13, %v6045_v44 }
 0x39f   : > { %v6179_v34 = vpop.permute.xlu1 %6178  ;;  %6483 = vrot.lane.b32.xlu0 %v6457_v56, %s6698_s23  ;;  %v5971_v56 = vunpack.i.h.bf16 %v8402_v14  ;;  %v6195_v14 = vunpack.i.l.bf16 %v6194_v31  ;;  %v3993_v7 = vsel %vm1906_vm6, %v3961_v62, %v6185_v46  ;;  %v6507_v20 = vpack.i.bf16 %v2892_v35, %v2891_v50 }
 0x3a0   : > { %v6181_v60 = vunpack.i.h.bf16 %v6179_v34  ;;  %v6180_v53 = vunpack.i.l.bf16 %v6179_v34  ;;  %v6050_v12 = vunpack.i.l.bf16 %v8464_v58 }
 0x3a1   : > { %6468 = vrot.lane.b32.xlu1 %v6467_v59, %s6696_s10  ;;  %v6204_v57 = vpop.permute.xlu0 %6203  ;;  %v3930_v16 = vsel %vm318_vm0, %v8328_v5, %v5971_v56  ;;  %v4025_v3 = vsel %vm1972_vm8, %v3993_v7, %v6195_v14 }
 0x3a2   : > { %v4155_v0 = vsel %vm4148_vm14, %v4122_v24, %v6180_v53  ;;  %v4156_v9 = vsel %vm4148_vm14, %v4123_v55, %v6181_v60  ;;  %v6206_v6 = vunpack.i.h.bf16 %v6204_v57  ;;  %v6205_v54 = vunpack.i.l.bf16 %v6204_v57 }
 0x3a3   : > { %v4184_v25 = vpack.c.bf16 %v4156_v9, %v4155_v0  ;;  %v8614_v23 = vpop.permute.xlu1 %6188  ;;  %6493 = vrot.lane.b32.xlu0 %v6467_v59, %s6699_s12  ;;  %v3962_v27 = vsel %vm1840_vm4, %v3930_v16, %v6046_v19  ;;  %v5975_v24 = vunpack.i.l.bf16 %v8413_v11 }
 0x3a4   : > { %v3994_v2 = vsel %vm1906_vm6, %v3962_v27, %v6186_v28  ;;  %v4058_v55 = vsel %vm4049_vm11, %v4025_v3, %v6205_v54  ;;  %v6191_v19 = vunpack.i.h.bf16 %v8614_v23  ;;  %v6190_v44 = vunpack.i.l.bf16 %v8614_v23  ;;  %v2736_v27 = vld [vmem:[#allocation2 + $0x20f] sm:$0xff] }
 0x3a5   : > { %6478 = vrot.lane.b32.xlu1 %v6477_v1, %s6697_s13  ;;  %5221 = vmatmul.mubr.msk.bf16.gmra.mrb[4].mxu1 %vm4233_vm15, %v4184_v25  ;;  %v6214_v29 = vpop.permute.xlu0 %6213  ;;  %v4026_v53 = vsel %vm1972_vm8, %v3994_v2, %v6196_v32  ;;  %v3931_v13 = vsel %vm318_vm0, %v8340_v4, %v5975_v24 }
 0x3a6   : > { %v6216_v34 = vunpack.i.h.bf16 %v6214_v29  ;;  %v6215_v31 = vunpack.i.l.bf16 %v6214_v29  ;;  %v4059_v0 = vsel %vm4049_vm11, %v4026_v53, %v6206_v6  ;;  %v6051_v29 = vunpack.i.h.bf16 %v8464_v58 }
 0x3a7   : > { %v8627_v52 = vpop.permute.xlu1 %6198  ;;  %6503 = vrot.lane.b32.xlu0 %v6477_v1, %s6700_s21 }
 0x3a8   : > { %v4091_v57 = vsel %vm4082_vm12, %v4058_v55, %v6215_v31  ;;  %v4092_v25 = vsel %vm4082_vm12, %v4059_v0, %v6216_v34  ;;  %v6201_v32 = vunpack.i.h.bf16 %v8627_v52  ;;  %v6200_v58 = vunpack.i.l.bf16 %v8627_v52  ;;  %v2735_v52 = vld [vmem:[#allocation2 + $0x207] sm:$0xff] }
 0x3a9   : > { %6488 = vrot.lane.b32.xlu1 %v6487_v21, %s6698_s23  ;;  %v6224_v15 = vpop.permute.xlu0 %6223  ;;  %v6527_v3 = vpack.i.bf16 %v2736_v27, %v2735_v52  ;;  %v2767_v0 = vld [vmem:[#allocation2 + $0x208] sm:$0xff] }
 0x3aa   : > { %v6226_v5 = vunpack.i.h.bf16 %v6224_v15  ;;  %v6225_v60 = vunpack.i.l.bf16 %v6224_v15  ;;  %v3963_v15 = vsel %vm1840_vm4, %v3931_v13, %v6050_v12 }
 0x3ab   : > { %v6209_v59 = vpop.permute.xlu1 %6208  ;;  %6513 = vrot.lane.b32.xlu0 %v6477_v1, %s6692_s25 }
 0x3ac   : > { %v4124_v42 = vsel %vm4115_vm13, %v4091_v57, %v6225_v60  ;;  %v4125_v11 = vsel %vm4115_vm13, %v4092_v25, %v6226_v5  ;;  %v6211_v23 = vunpack.i.h.bf16 %v6209_v59  ;;  %v6210_v6 = vunpack.i.l.bf16 %v6209_v59 }
 0x3ad   : > { %6498 = vrot.lane.b32.xlu1 %v6497_v41, %s6699_s12  ;;  %v6234_v9 = vpop.permute.xlu0 %6233 }
 0x3ae   : > { %v6236_v1 = vunpack.i.h.bf16 %v6234_v9  ;;  %v6235_v56 = vunpack.i.l.bf16 %v6234_v9  ;;  %v2768_v9 = vld [vmem:[#allocation2 + $0x210] sm:$0xff] }
 0x3af   : > { %v6219_v18 = vpop.permute.xlu1 %6218  ;;  %6523 = vrot.lane.b32.xlu0 %v6487_v21, %s6694_s24  ;;  %v3932_v21 = vsel %vm318_vm0, %v8342_v30, %v5976_v37  ;;  %v3995_v30 = vsel %vm1906_vm6, %v3963_v15, %v6190_v44  ;;  %v5980_v44 = vunpack.i.l.bf16 %v8411_v17 }
 0x3b0   : > { %v4157_v28 = vsel %vm4148_vm14, %v4124_v42, %v6235_v56  ;;  %v4158_v46 = vsel %vm4148_vm14, %v4125_v11, %v6236_v1  ;;  %v3964_v50 = vsel %vm1840_vm4, %v3932_v21, %v6051_v29  ;;  %v6221_v35 = vunpack.i.h.bf16 %v6219_v18  ;;  %v2800_v11 = vld [vmem:[#allocation2 + $0x211] sm:$0xff] }
 0x3b1   : > { %6508 = vrot.lane.b32.xlu1 %v6507_v20, %s6700_s21  ;;  %v4185_v14 = vpack.c.bf16 %v4158_v46, %v4157_v28  ;;  %v8665_v16 = vpop.permute.xlu0 %6243  ;;  %v6220_v62 = vunpack.i.l.bf16 %v6219_v18  ;;  %v3996_v34 = vsel %vm1906_vm6, %v3964_v50, %v6191_v19  ;;  %v4027_v59 = vsel %vm1972_vm8, %v3995_v30, %v6200_v58  ;;  %v2831_v46 = vld [vmem:[#allocation2 + $0x227] sm:$0xff] }
 0x3b2   : > { %v4028_v2 = vsel %vm1972_vm8, %v3996_v34, %v6201_v32  ;;  %v6537_v42 = vpack.i.bf16 %v2768_v9, %v2767_v0  ;;  %v5981_v19 = vunpack.i.h.bf16 %v8411_v17  ;;  %v2832_v32 = vld [vmem:[#allocation2 + $0x22f] sm:$0xff]  ;;  %v6056_v58 = vunpack.i.h.bf16 %v8457_v63 }
 0x3b3   : > { %v6229_v54 = vpop.permute.xlu1 %6228  ;;  %6533 = vrot.lane.b32.xlu0 %v6497_v41, %s6696_s10  ;;  %5224 = vmatprep.mubr.msk.bf16.mxu1 %vm4233_vm15, %v4185_v14  ;;  %v4060_v41 = vsel %vm4049_vm11, %v4027_v59, %v6210_v6  ;;  %v4061_v5 = vsel %vm4049_vm11, %v4028_v2, %v6211_v23  ;;  %v6055_v14 = vunpack.i.l.bf16 %v8457_v63  ;;  %v6246_v23 = vunpack.i.h.bf16 %v8665_v16  ;;  %v2863_v50 = vld [vmem:[#allocation2 + $0x228] sm:$0xff]  ;;  %v2896_v34 = vld [vmem:[#allocation2 + $0x231] sm:$0xff] }
 0x3b4   : > { %v6231_v4 = vunpack.i.h.bf16 %v6229_v54  ;;  %v6230_v31 = vunpack.i.l.bf16 %v6229_v54  ;;  %v4093_v53 = vsel %vm4082_vm12, %v4060_v41, %v6220_v62  ;;  %v4094_v37 = vsel %vm4082_vm12, %v4061_v5, %v6221_v35  ;;  %v2895_v30 = vld [vmem:[#allocation2 + $0x229] sm:$0xff] }
 0x3b5   : > { %6518 = vrot.lane.b32.xlu1 %v6507_v20, %s6692_s25  ;;  %v8680_v7 = vpop.permute.xlu0 %6253  ;;  %v6245_v6 = vunpack.i.l.bf16 %v8665_v16  ;;  %v6557_v15 = vpack.i.bf16 %v2832_v32, %v2831_v46  ;;  %v3934_v63 = vsel %vm318_vm0, %v8358_v22, %v5981_v19  ;;  %v3933_v35 = vsel %vm318_vm0, %v8356_v10, %v5980_v44  ;;  %v2864_v16 = vld [vmem:[#allocation2 + $0x230] sm:$0xff] }
 0x3b6   : > { %v4126_v57 = vsel %vm4115_vm13, %v4093_v53, %v6230_v31  ;;  %v4127_v25 = vsel %vm4115_vm13, %v4094_v37, %v6231_v4  ;;  %v6256_v54 = vunpack.i.h.bf16 %v8680_v7  ;;  %v6255_v17 = vunpack.i.l.bf16 %v8680_v7 }
 0x3b7   : > { %v6239_v60 = vpop.permute.xlu1 %6238  ;;  %6543 = vrot.lane.b32.xlu0 %v6507_v20, %s6697_s13  ;;  %v2799_v20 = vld [vmem:[#allocation2 + $0x209] sm:$0xff]  ;;  %v3965_v4 = vsel %vm1840_vm4, %v3933_v35, %v6055_v14  ;;  %v3966_v31 = vsel %vm1840_vm4, %v3934_v63, %v6056_v58  ;;  %v6567_v53 = vpack.i.bf16 %v2864_v16, %v2863_v50  ;;  %v6577_v37 = vpack.i.bf16 %v2896_v34, %v2895_v30 }
 0x3b8   : > { %v6241_v24 = vunpack.i.h.bf16 %v6239_v60  ;;  %v6240_v55 = vunpack.i.l.bf16 %v6239_v60  ;;  %v6547_v13 = vpack.i.bf16 %v2800_v11, %v2799_v20  ;;  %v3998_v41 = vsel %vm1906_vm6, %v3966_v31, %v6246_v23 }
 0x3b9   : > { %6528 = vrot.lane.b32.xlu1 %v6527_v3, %s6694_s24  ;;  %v6264_v18 = vpop.permute.xlu0 %6263  ;;  %v3997_v22 = vsel %vm1906_vm6, %v3965_v4, %v6245_v6  ;;  %v6060_v20 = vunpack.i.l.bf16 %v8469_v39 }
 0x3ba   : > { %v4159_v1 = vsel %vm4148_vm14, %v4126_v57, %v6240_v55  ;;  %v4160_v56 = vsel %vm4148_vm14, %v4127_v25, %v6241_v24  ;;  %v6266_v62 = vunpack.i.h.bf16 %v6264_v18  ;;  %v6265_v52 = vunpack.i.l.bf16 %v6264_v18 }
 0x3bb   : > { %v4186_v29 = vpack.c.bf16 %v4160_v56, %v4159_v1  ;;  %v8692_v12 = vpop.permute.xlu1 %6248  ;;  %6553 = vrot.lane.b32.xlu0 %v6527_v3, %s6698_s23  ;;  %v4029_v10 = vsel %vm1972_vm8, %v3997_v22, %v6255_v17  ;;  %v4030_v3 = vsel %vm1972_vm8, %v3998_v41, %v6256_v54  ;;  %v5986_v24 = vunpack.i.h.bf16 %v8420_v8 }
 0x3bc   : > { %v5985_v55 = vunpack.i.l.bf16 %v8420_v8  ;;  %v4062_v0 = vsel %vm4049_vm11, %v4029_v10, %v6265_v52  ;;  %v4063_v9 = vsel %vm4049_vm11, %v4030_v3, %v6266_v62  ;;  %v6251_v19 = vunpack.i.h.bf16 %v8692_v12 }
 0x3bd   : > { %6538 = vrot.lane.b32.xlu1 %v6537_v42, %s6696_s10  ;;  %5225 = vmatmul.mubr.msk.bf16.gmra.mrb[8].mxu1 %vm4233_vm15, %v4186_v29  ;;  %v6274_v28 = vpop.permute.xlu0 %6273  ;;  %v6250_v44 = vunpack.i.l.bf16 %v8692_v12 }
 0x3be   : > { %v6276_v59 = vunpack.i.h.bf16 %v6274_v28  ;;  %v6275_v2 = vunpack.i.l.bf16 %v6274_v28  ;;  %v3935_v23 = vsel %vm318_vm0, %v8374_v49, %v5985_v55  ;;  %v5990_v55 = vunpack.i.l.bf16 %v8418_v36 }
 0x3bf   : > { %v8701_v21 = vpop.permute.xlu1 %6258  ;;  %6563 = vrot.lane.b32.xlu0 %v6537_v42, %s6699_s12  ;;  %v6061_v42 = vunpack.i.h.bf16 %v8469_v39  ;;  %v3967_v17 = vsel %vm1840_vm4, %v3935_v23, %v6060_v20  ;;  %v5996_v23 = vunpack.i.h.bf16 %v8427_v51 }
 0x3c0   : > { %v4095_v25 = vsel %vm4082_vm12, %v4062_v0, %v6275_v2  ;;  %v4096_v1 = vsel %vm4082_vm12, %v4063_v9, %v6276_v59  ;;  %v6261_v32 = vunpack.i.h.bf16 %v8701_v21  ;;  %v6260_v58 = vunpack.i.l.bf16 %v8701_v21 }
 0x3c1   : > { %6548 = vrot.lane.b32.xlu1 %v6547_v13, %s6697_s13  ;;  %v6284_v27 = vpop.permute.xlu0 %6283  ;;  %v3999_v21 = vsel %vm1906_vm6, %v3967_v17, %v6250_v44  ;;  %v3937_v20 = vsel %vm318_vm0, %v8396_v33, %v5990_v55  ;;  %s9473_s13 = scalar_lea.hbm %s9535_s8, %s5127_s20 }
 0x3c2   : > { %v6286_v5 = vunpack.i.h.bf16 %v6284_v27  ;;  %v6285_v60 = vunpack.i.l.bf16 %v6284_v27  ;;  %v4031_v49 = vsel %vm1972_vm8, %v3999_v21, %v6260_v58 }
 0x3c3   : > { %v6269_v7 = vpop.permute.xlu1 %6268  ;;  %6573 = vrot.lane.b32.xlu0 %v6547_v13, %s6700_s21  ;;  %v3936_v13 = vsel %vm318_vm0, %v8376_v43, %v5986_v24  ;;  %v5991_v24 = vunpack.i.h.bf16 %v8418_v36 }
 0x3c4   : > { %v4128_v11 = vsel %vm4115_vm13, %v4095_v25, %v6285_v60  ;;  %v4129_v8 = vsel %vm4115_vm13, %v4096_v1, %v6286_v5  ;;  %v6271_v6 = vunpack.i.h.bf16 %v6269_v7  ;;  %v6270_v12 = vunpack.i.l.bf16 %v6269_v7 }
 0x3c5   : > { %6558 = vrot.lane.b32.xlu1 %v6557_v15, %s6698_s23  ;;  %v6294_v57 = vpop.permute.xlu0 %6293  ;;  %v3968_v15 = vsel %vm1840_vm4, %v3936_v13, %v6061_v42  ;;  %v3938_v42 = vsel %vm318_vm0, %v8398_v48, %v5991_v24 }
 0x3c6   : > { %v6296_v56 = vunpack.i.h.bf16 %v6294_v57  ;;  %v6295_v18 = vunpack.i.l.bf16 %v6294_v57  ;;  %v4000_v35 = vsel %vm1906_vm6, %v3968_v15, %v6251_v19  ;;  %v4064_v16 = vsel %vm4049_vm11, %v4031_v49, %v6270_v12 }
 0x3c7   : > { %v6279_v29 = vpop.permute.xlu1 %6278  ;;  %v4032_v52 = vsel %vm1972_vm8, %v4000_v35, %v6261_v32 }
 0x3c8   : > { %v4161_v28 = vsel %vm4148_vm14, %v4128_v11, %v6295_v18  ;;  %v4162_v46 = vsel %vm4148_vm14, %v4129_v8, %v6296_v56  ;;  %v6281_v50 = vunpack.i.h.bf16 %v6279_v29  ;;  %v6280_v63 = vunpack.i.l.bf16 %v6279_v29 }
 0x3c9   : > { %6568 = vrot.lane.b32.xlu1 %v6567_v53, %s6699_s12  ;;  %v4187_v14 = vpack.c.bf16 %v4162_v46, %v4161_v28  ;;  %v6304_v39 = vpop.permute.xlu0 %6303  ;;  %v4065_v30 = vsel %vm4049_vm11, %v4032_v52, %v6271_v6  ;;  %v5995_v6 = vunpack.i.l.bf16 %v8427_v51  ;;  %s9197_s12 = scalar_lea.vmem %s9534_s7, %s5125_s18  ;;  %s5075_s18 = sshll.u32 %s304_s17, 5 }
 0x3ca   : > { %v4097_v4 = vsel %vm4082_vm12, %v4064_v16, %v6280_v63  ;;  %v4098_v31 = vsel %vm4082_vm12, %v4065_v30, %v6281_v50  ;;  %v6306_v9 = vunpack.i.h.bf16 %v6304_v39  ;;  %v6305_v57 = vunpack.i.l.bf16 %v6304_v39  ;;  %s9454_s19 = scalar_lea.vmem [#allocation4], %s5075_s18 }
 0x3cb   : > { %v6289_v54 = vpop.permute.xlu1 %6288  ;;  %5228 = vmatprep.mubr.msk.bf16.mxu1 %vm4233_vm15, %v4187_v14  ;;  %s4984_s25 = sshll.u32 %s9454_s19, 4  ;;  %s9475_s25 = int_to_ptr.vmem [resolvable:$true] %s4984_s25 }
 0x3cc   : > { %v6291_v62 = vunpack.i.h.bf16 %v6289_v54  ;;  %v6290_v43 = vunpack.i.l.bf16 %v6289_v54  ;;  %v3970_v44 = vsel %vm1840_vm4, %v3938_v42, %v6306_v9  ;;  %v3969_v36 = vsel %vm1840_vm4, %v3937_v20, %v6305_v57  ;;  %s6624_s23 = scalar_lea.vmem %s9475_s25, 512 }
 0x3cd   : > { %6578 = vrot.lane.b32.xlu1 %v6577_v37, %s6700_s21  ;;  %v6314_v27 = vpop.permute.xlu0 %6313  ;;  %p6625_p11 = scmp.ne.s32.totalorder %s9475_s25, %s6624_s23 }
 0x3ce   : > { %v4130_v7 = vsel %vm4115_vm13, %v4097_v4, %v6290_v43  ;;  %v4131_v41 = vsel %vm4115_vm13, %v4098_v31, %v6291_v62  ;;  %v6316_v1 = vunpack.i.h.bf16 %v6314_v27  ;;  %v6315_v56 = vunpack.i.l.bf16 %v6314_v27 }
 0x3cf   : > { %v6299_v34 = vpop.permute.xlu1 %6298  ;;  %p6626_p12 = pnand %p6625_p11, %p6785_p5 }
 0x3d0   : > { %v6301_v59 = vunpack.i.h.bf16 %v6299_v34  ;;  %v6300_v2 = vunpack.i.l.bf16 %v6299_v34  ;;  %v4001_v58 = vsel %vm1906_vm6, %v3969_v36, %v6315_v56  ;;  %v4002_v14 = vsel %vm1906_vm6, %v3970_v44, %v6316_v1 }
 0x3d1   : > { %v6324_v60 = vpop.permute.xlu0 %6323  ;;  %p6627_p13 = pneg %p6626_p12 }
 0x3d2   : > { %v4163_v22 = vsel %vm4148_vm14, %v4130_v7, %v6300_v2  ;;  %v4164_v5 = vsel %vm4148_vm14, %v4131_v41, %v6301_v59  ;;  %v6326_v18 = vunpack.i.h.bf16 %v6324_v60  ;;  %v6325_v29 = vunpack.i.l.bf16 %v6324_v60  ;;  %v6612_v2 = vld [vmem:[#allocation2 + $0x12f] sm:$0xff]  ;;  %v6613_v41 = vld [vmem:[#allocation2 + $0x127] sm:$0xff] }
 0x3d3   : > { %v4188_v10 = vpack.c.bf16 %v4164_v5, %v4163_v22  ;;  %v6309_v3 = vpop.permute.xlu1 %6308  ;;  %v3940_v7 = vsel %vm318_vm0, %v6612_v2, %v5996_v23  ;;  %v3939_v22 = vsel %vm318_vm0, %v6613_v41, %v5995_v6 }
 0x3d4   : > { %v4033_v48 = vsel %vm1972_vm8, %v4001_v58, %v6325_v29  ;;  %v4034_v33 = vsel %vm1972_vm8, %v4002_v14, %v6326_v18  ;;  %v6311_v62 = vunpack.i.h.bf16 %v6309_v3  ;;  %v6310_v43 = vunpack.i.l.bf16 %v6309_v3 }
 0x3d5   : > { %5229 = vmatmul.mubr.msk.bf16.gmra.mrb[12].mxu1 %vm4233_vm15, %v4188_v10  ;;  %v6334_v53 = vpop.permute.xlu0 %6333 }
 0x3d6   : > { %v6336_v11 = vunpack.i.h.bf16 %v6334_v53  ;;  %v6335_v8 = vunpack.i.l.bf16 %v6334_v53  ;;  %v3971_v3 = vsel %vm1840_vm4, %v3939_v22, %v6310_v43  ;;  %v3972_v53 = vsel %vm1840_vm4, %v3940_v7, %v6311_v62  ;;  %v6615_v62 = vld [vmem:[#allocation2 + $0x147] sm:$0xff] }
 0x3d7   : > { %v8759_v37 = vpop.permute.xlu1 %6318  ;;  %v6006_v22 = vunpack.i.h.bf16 %v8433_v61 }
 0x3d8   : > { %v4066_v12 = vsel %vm4049_vm11, %v4033_v48, %v6335_v8  ;;  %v4067_v54 = vsel %vm4049_vm11, %v4034_v33, %v6336_v11  ;;  %v6321_v51 = vunpack.i.h.bf16 %v8759_v37  ;;  %v6320_v27 = vunpack.i.l.bf16 %v8759_v37 }
 0x3d9   : > { %v6344_v0 = vpop.permute.xlu0 %6343  ;;  %v6001_v48 = vunpack.i.h.bf16 %v8425_v45  ;;  %v6000_v33 = vunpack.i.l.bf16 %v8425_v45 }
 0x3da   : > { %v6346_v28 = vunpack.i.h.bf16 %v6344_v0  ;;  %v6345_v46 = vunpack.i.l.bf16 %v6344_v0  ;;  %v4003_v55 = vsel %vm1906_vm6, %v3971_v3, %v6320_v27  ;;  %v4004_v0 = vsel %vm1906_vm6, %v3972_v53, %v6321_v51 }
 0x3db   : > { %v6329_v25 = vpop.permute.xlu1 %6328  ;;  %v3941_v43 = vsel %vm318_vm0, %v6615_v62, %v6000_v33 }
 0x3dc   : > { %v4099_v15 = vsel %vm4082_vm12, %v4066_v12, %v6345_v46  ;;  %v4100_v50 = vsel %vm4082_vm12, %v4067_v54, %v6346_v28  ;;  %v6331_v34 = vunpack.i.h.bf16 %v6329_v25  ;;  %v6330_v4 = vunpack.i.l.bf16 %v6329_v25 }
 0x3dd   : > { %v6354_v19 = vpop.permute.xlu0 %6353 }
 0x3de   : > { %v6356_v39 = vunpack.i.h.bf16 %v6354_v19  ;;  %v6355_v13 = vunpack.i.l.bf16 %v6354_v19  ;;  %v4035_v25 = vsel %vm1972_vm8, %v4003_v55, %v6330_v4  ;;  %v4036_v1 = vsel %vm1972_vm8, %v4004_v0, %v6331_v34 }
 0x3df   : > { %v6339_v32 = vpop.permute.xlu1 %6338 }
 0x3e0   : > { %v4132_v49 = vsel %vm4115_vm13, %v4099_v15, %v6355_v13  ;;  %v4133_v52 = vsel %vm4115_vm13, %v4100_v50, %v6356_v39  ;;  %v6341_v5 = vunpack.i.h.bf16 %v6339_v32  ;;  %v6340_v60 = vunpack.i.l.bf16 %v6339_v32 }
 0x3e1   : > { %v6364_v17 = vpop.permute.xlu0 %6363 }
 0x3e2   : > { %v6366_v63 = vunpack.i.h.bf16 %v6364_v17  ;;  %v6365_v21 = vunpack.i.l.bf16 %v6364_v17  ;;  %v4068_v18 = vsel %vm4049_vm11, %v4035_v25, %v6340_v60  ;;  %v4069_v29 = vsel %vm4049_vm11, %v4036_v1, %v6341_v5 }
 0x3e3   : > { %v6349_v35 = vpop.permute.xlu1 %6348  ;;  %v6005_v5 = vunpack.i.l.bf16 %v8433_v61 }
 0x3e4   : > { %v4165_v16 = vsel %vm4148_vm14, %v4132_v49, %v6365_v21  ;;  %v4166_v30 = vsel %vm4148_vm14, %v4133_v52, %v6366_v63  ;;  %v6351_v37 = vunpack.i.h.bf16 %v6349_v35  ;;  %v6350_v24 = vunpack.i.l.bf16 %v6349_v35  ;;  %v6614_v21 = vld [vmem:[#allocation2 + $0x14f] sm:$0xff] }
 0x3e5   : > { %v4189_v31 = vpack.c.bf16 %v4166_v30, %v4165_v16  ;;  %v6374_v59 = vpop.permute.xlu0 %6373  ;;  %v3942_v35 = vsel %vm318_vm0, %v6614_v21, %v6001_v48 }
 0x3e6   : > { %v4101_v20 = vsel %vm4082_vm12, %v4068_v18, %v6350_v24  ;;  %v4102_v11 = vsel %vm4082_vm12, %v4069_v29, %v6351_v37  ;;  %v6376_v6 = vunpack.i.h.bf16 %v6374_v59  ;;  %v6375_v12 = vunpack.i.l.bf16 %v6374_v59 }
 0x3e7   : > { %v6359_v10 = vpop.permute.xlu1 %6358  ;;  %5232 = vmatprep.mubr.msk.bf16.mxu1 %vm4233_vm15, %v4189_v31 }
 0x3e8   : > { %v6361_v9 = vunpack.i.h.bf16 %v6359_v10  ;;  %v6360_v57 = vunpack.i.l.bf16 %v6359_v10  ;;  %v3974_v45 = vsel %vm1840_vm4, %v3942_v35, %v6376_v6  ;;  %v3973_v27 = vsel %vm1840_vm4, %v3941_v43, %v6375_v12 }
 0x3e9   : > { %v6384_v56 = vpop.permute.xlu0 %6383 }
 0x3ea   : > { %v4134_v44 = vsel %vm4115_vm13, %v4101_v20, %v6360_v57  ;;  %v4135_v36 = vsel %vm4115_vm13, %v4102_v11, %v6361_v9  ;;  %v6386_v17 = vunpack.i.h.bf16 %v6384_v56  ;;  %v6385_v15 = vunpack.i.l.bf16 %v6384_v56 }
 0x3eb   : > { %v6369_v42 = vpop.permute.xlu1 %6368 }
 0x3ec   : > { %v6371_v8 = vunpack.i.h.bf16 %v6369_v42  ;;  %v6370_v19 = vunpack.i.l.bf16 %v6369_v42  ;;  %v4005_v4 = vsel %vm1906_vm6, %v3973_v27, %v6385_v15  ;;  %v4006_v31 = vsel %vm1906_vm6, %v3974_v45, %v6386_v17 }
 0x3ed   : > { %v6394_v32 = vpop.permute.xlu0 %6393 }
 0x3ee   : > { %v4167_v28 = vsel %vm4148_vm14, %v4134_v44, %v6370_v19  ;;  %v4168_v46 = vsel %vm4148_vm14, %v4135_v36, %v6371_v8  ;;  %v6396_v50 = vunpack.i.h.bf16 %v6394_v32  ;;  %v6395_v63 = vunpack.i.l.bf16 %v6394_v32  ;;  %v6616_v19 = vld [vmem:[#allocation2 + $0x16f] sm:$0xff]  ;;  %v6617_v36 = vld [vmem:[#allocation2 + $0x167] sm:$0xff] }
 0x3ef   : > { %v4190_v58 = vpack.c.bf16 %v4168_v46, %v4167_v28  ;;  %v8802_v14 = vpop.permute.xlu1 %6378  ;;  %v3944_v44 = vsel %vm318_vm0, %v6616_v19, %v6006_v22  ;;  %v3943_v28 = vsel %vm318_vm0, %v6617_v36, %v6005_v5  ;;  %v6015_v36 = vunpack.i.l.bf16 %v8440_v47 }
 0x3f0   : > { %v4037_v7 = vsel %vm1972_vm8, %v4005_v4, %v6395_v63  ;;  %v4038_v41 = vsel %vm1972_vm8, %v4006_v31, %v6396_v50  ;;  %v6381_v9 = vunpack.i.h.bf16 %v8802_v14  ;;  %v6380_v57 = vunpack.i.l.bf16 %v8802_v14 }
 0x3f1   : > { %5233 = vmatmul.mubr.msk.bf16.gmra.mrb[16].mxu1 %vm4233_vm15, %v4190_v58  ;;  %v6404_v39 = vpop.permute.xlu0 %6403 }
 0x3f2   : > { %v6406_v49 = vunpack.i.h.bf16 %v6404_v39  ;;  %v6405_v52 = vunpack.i.l.bf16 %v6404_v39  ;;  %v3975_v14 = vsel %vm1840_vm4, %v3943_v28, %v6380_v57  ;;  %v3976_v39 = vsel %vm1840_vm4, %v3944_v44, %v6381_v9 }
 0x3f3   : > { %v8805_v13 = vpop.permute.xlu1 %6388  ;;  %v6016_v44 = vunpack.i.h.bf16 %v8440_v47 }
 0x3f4   : > { %v4070_v60 = vsel %vm4049_vm11, %v4037_v7, %v6405_v52  ;;  %v4071_v10 = vsel %vm4049_vm11, %v4038_v41, %v6406_v49  ;;  %v6391_v1 = vunpack.i.h.bf16 %v8805_v13  ;;  %v6390_v56 = vunpack.i.l.bf16 %v8805_v13 }
 0x3f5   : > { %v6414_v23 = vpop.permute.xlu0 %6413 }
 0x3f6   : > { %v6416_v16 = vunpack.i.h.bf16 %v6414_v23  ;;  %v6415_v30 = vunpack.i.l.bf16 %v6414_v23  ;;  %v4007_v33 = vsel %vm1906_vm6, %v3975_v14, %v6390_v56  ;;  %v4008_v23 = vsel %vm1906_vm6, %v3976_v39, %v6391_v1 }
 0x3f7   : > { %v8809_v54 = vpop.permute.xlu1 %6398 }
 0x3f8   : > { %v4103_v53 = vsel %vm4082_vm12, %v4070_v60, %v6415_v30  ;;  %v4104_v37 = vsel %vm4082_vm12, %v4071_v10, %v6416_v16  ;;  %v6401_v42 = vunpack.i.h.bf16 %v8809_v54  ;;  %v6400_v20 = vunpack.i.l.bf16 %v8809_v54 }
 0x3f9   : > { %v6424_v51 = vpop.permute.xlu0 %6423 }
 0x3fa   : > { %v6426_v59 = vunpack.i.h.bf16 %v6424_v51  ;;  %v6425_v2 = vunpack.i.l.bf16 %v6424_v51  ;;  %v4039_v54 = vsel %vm1972_vm8, %v4007_v33, %v6400_v20  ;;  %v4040_v17 = vsel %vm1972_vm8, %v4008_v23, %v6401_v42 }
 0x3fb   : > { %v6409_v34 = vpop.permute.xlu1 %6408 }
 0x3fc   : > { %v4136_v25 = vsel %vm4115_vm13, %v4103_v53, %v6425_v2  ;;  %v4137_v61 = vsel %vm4115_vm13, %v4104_v37, %v6426_v59  ;;  %v6411_v46 = vunpack.i.h.bf16 %v6409_v34  ;;  %v6410_v32 = vunpack.i.l.bf16 %v6409_v34  ;;  %v6618_v37 = vld [vmem:[#allocation2 + $0x18f] sm:$0xff] }
 0x3fd   : > { %v6434_v3 = vpop.permute.xlu0 %6433  ;;  %v6011_v59 = vunpack.i.h.bf16 %v8431_v38  ;;  %v6010_v2 = vunpack.i.l.bf16 %v8431_v38 }
 0x3fe   : > { %v6436_v24 = vunpack.i.h.bf16 %v6434_v3  ;;  %v6435_v55 = vunpack.i.l.bf16 %v6434_v3  ;;  %v4072_v50 = vsel %vm4049_vm11, %v4039_v54, %v6410_v32  ;;  %v4073_v63 = vsel %vm4049_vm11, %v4040_v17, %v6411_v46 }
 0x3ff   : > { %v6419_v0 = vpop.permute.xlu1 %6418 }
 0x400   : > { %v4169_v18 = vsel %vm4148_vm14, %v4136_v25, %v6435_v55  ;;  %v4170_v29 = vsel %vm4148_vm14, %v4137_v61, %v6436_v24  ;;  %v6421_v13 = vunpack.i.h.bf16 %v6419_v0  ;;  %v6420_v48 = vunpack.i.l.bf16 %v6419_v0  ;;  %v6619_v55 = vld [vmem:[#allocation2 + $0x187] sm:$0xff] }
 0x401   : > { %v4191_v11 = vpack.c.bf16 %v4170_v29, %v4169_v18  ;;  %v6444_v8 = vpop.permute.xlu0 %6443  ;;  %v3946_v24 = vsel %vm318_vm0, %v6618_v37, %v6011_v59  ;;  %v3945_v0 = vsel %vm318_vm0, %v6619_v55, %v6010_v2 }
 0x402   : > { %v4105_v35 = vsel %vm4082_vm12, %v4072_v50, %v6420_v48  ;;  %v4106_v62 = vsel %vm4082_vm12, %v4073_v63, %v6421_v13  ;;  %v6446_v41 = vunpack.i.h.bf16 %v6444_v8  ;;  %v6445_v22 = vunpack.i.l.bf16 %v6444_v8 }
 0x403   : > { %v6429_v58 = vpop.permute.xlu1 %6428  ;;  %5236 = vmatprep.mubr.msk.bf16.mxu1 %vm4233_vm15, %v4191_v11 }
 0x404   : > { %v6431_v6 = vunpack.i.h.bf16 %v6429_v58  ;;  %v6430_v12 = vunpack.i.l.bf16 %v6429_v58  ;;  %v3978_v38 = vsel %vm1840_vm4, %v3946_v24, %v6446_v41  ;;  %v3977_v61 = vsel %vm1840_vm4, %v3945_v0, %v6445_v22 }
 0x405   : > { %v6454_v15 = vpop.permute.xlu0 %6453 }
 0x406   : > { %v4138_v52 = vsel %vm4115_vm13, %v4105_v35, %v6430_v12  ;;  %v4139_v51 = vsel %vm4115_vm13, %v4106_v62, %v6431_v6  ;;  %v6456_v60 = vunpack.i.h.bf16 %v6454_v15  ;;  %v6455_v10 = vunpack.i.l.bf16 %v6454_v15  ;;  %v6620_v62 = vld [vmem:[#allocation2 + $0x1af] sm:$0xff] }
 0x407   : > { %v6439_v21 = vpop.permute.xlu1 %6438 }
 0x408   : > { %v6441_v43 = vunpack.i.h.bf16 %v6439_v21  ;;  %v6440_v49 = vunpack.i.l.bf16 %v6439_v21  ;;  %v4009_v29 = vsel %vm1906_vm6, %v3977_v61, %v6455_v10  ;;  %v4010_v42 = vsel %vm1906_vm6, %v3978_v38, %v6456_v60 }
 0x409   : > { %v6464_v16 = vpop.permute.xlu0 %6463 }
 0x40a   : > { %v4171_v45 = vsel %vm4148_vm14, %v4138_v52, %v6440_v49  ;;  %v4172_v27 = vsel %vm4148_vm14, %v4139_v51, %v6441_v43  ;;  %v6466_v3 = vunpack.i.h.bf16 %v6464_v16  ;;  %v6465_v53 = vunpack.i.l.bf16 %v6464_v16  ;;  %v6621_v49 = vld [vmem:[#allocation2 + $0x1a7] sm:$0xff] }
 0x40b   : > { %v4192_v30 = vpack.c.bf16 %v4172_v27, %v4171_v45  ;;  %v8852_v34 = vpop.permute.xlu1 %6448  ;;  %v3948_v43 = vsel %vm318_vm0, %v6620_v62, %v6016_v44  ;;  %v3947_v52 = vsel %vm318_vm0, %v6621_v49, %v6015_v36 }
 0x40c   : > { %v4041_v8 = vsel %vm1972_vm8, %v4009_v29, %v6465_v53  ;;  %v4042_v19 = vsel %vm1972_vm8, %v4010_v42, %v6466_v3  ;;  %v6451_v33 = vunpack.i.h.bf16 %v8852_v34  ;;  %v6450_v23 = vunpack.i.l.bf16 %v8852_v34  ;;  %v9643_v29 = vld [vmem:[#allocation18_spill] sm:$0xff] }
 0x40d   : > { %5237 = vmatmul.mubr.msk.bf16.gmra.mrb[20].mxu1 %vm4233_vm15, %v4192_v30  ;;  %v6474_v4 = vpop.permute.xlu0 %6473  ;;  %v6021_v42 = vunpack.i.h.bf16 %v9643_v29 }
 0x40e   : > { %v6476_v9 = vunpack.i.h.bf16 %v6474_v4  ;;  %v6475_v57 = vunpack.i.l.bf16 %v6474_v4  ;;  %v3979_v16 = vsel %vm1840_vm4, %v3947_v52, %v6450_v23  ;;  %v3980_v30 = vsel %vm1840_vm4, %v3948_v43, %v6451_v33  ;;  %v9644_v43 = vld [vmem:[#allocation19_spill] sm:$0xff] }
 0x40f   : > { %v8855_v31 = vpop.permute.xlu1 %6458  ;;  %v6026_v49 = vunpack.i.h.bf16 %v9644_v43  ;;  %v6025_v52 = vunpack.i.l.bf16 %v9644_v43 }
 0x410   : > { %v4074_v28 = vsel %vm4049_vm11, %v4041_v8, %v6475_v57  ;;  %v4075_v46 = vsel %vm4049_vm11, %v4042_v19, %v6476_v9  ;;  %v6461_v12 = vunpack.i.h.bf16 %v8855_v31  ;;  %v6460_v54 = vunpack.i.l.bf16 %v8855_v31 }
 0x411   : > { %v6484_v7 = vpop.permute.xlu0 %6483 }
 0x412   : > { %v6486_v1 = vunpack.i.h.bf16 %v6484_v7  ;;  %v6485_v56 = vunpack.i.l.bf16 %v6484_v7  ;;  %v4011_v31 = vsel %vm1906_vm6, %v3979_v16, %v6460_v54  ;;  %v4012_v59 = vsel %vm1906_vm6, %v3980_v30, %v6461_v12 }
 0x413   : > { %v8859_v5 = vpop.permute.xlu1 %6468 }
 0x414   : > { %v4107_v58 = vsel %vm4082_vm12, %v4074_v28, %v6485_v56  ;;  %v4108_v14 = vsel %vm4082_vm12, %v4075_v46, %v6486_v1  ;;  %v6471_v50 = vunpack.i.h.bf16 %v8859_v5  ;;  %v6470_v63 = vunpack.i.l.bf16 %v8859_v5 }
 0x415   : > { %v6494_v25 = vpop.permute.xlu0 %6493 }
 0x416   : > { %v6496_v20 = vunpack.i.h.bf16 %v6494_v25  ;;  %v6495_v11 = vunpack.i.l.bf16 %v6494_v25  ;;  %v4043_v41 = vsel %vm1972_vm8, %v4011_v31, %v6470_v63  ;;  %v4044_v22 = vsel %vm1972_vm8, %v4012_v59, %v6471_v50 }
 0x417   : > { %v6479_v18 = vpop.permute.xlu1 %6478 }
 0x418   : > { %v4140_v6 = vsel %vm4115_vm13, %v4107_v58, %v6495_v11  ;;  %v4141_v47 = vsel %vm4115_vm13, %v4108_v14, %v6496_v20  ;;  %v6481_v51 = vunpack.i.h.bf16 %v6479_v18  ;;  %v6480_v45 = vunpack.i.l.bf16 %v6479_v18  ;;  %v6622_v58 = vld [vmem:[#allocation2 + $0x1cf] sm:$0xff] }
 0x419   : > { %v6504_v32 = vpop.permute.xlu0 %6503  ;;  %v6020_v20 = vunpack.i.l.bf16 %v9643_v29  ;;  %v3950_v14 = vsel %vm318_vm0, %v6622_v58, %v6021_v42 }
 0x41a   : > { %v6506_v39 = vunpack.i.h.bf16 %v6504_v32  ;;  %v6505_v13 = vunpack.i.l.bf16 %v6504_v32  ;;  %v4076_v60 = vsel %vm4049_vm11, %v4043_v41, %v6480_v45  ;;  %v4077_v10 = vsel %vm4049_vm11, %v4044_v22, %v6481_v51 }
 0x41b   : > { %v6489_v48 = vpop.permute.xlu1 %6488 }
 0x41c   : > { %v4173_v17 = vsel %vm4148_vm14, %v4140_v6, %v6505_v13  ;;  %v4174_v15 = vsel %vm4148_vm14, %v4141_v47, %v6506_v39  ;;  %v6491_v34 = vunpack.i.h.bf16 %v6489_v48  ;;  %v6490_v4 = vunpack.i.l.bf16 %v6489_v48  ;;  %v6623_v39 = vld [vmem:[#allocation2 + $0x1c7] sm:$0xff] }
 0x41d   : > { %v4193_v21 = vpack.c.bf16 %v4174_v15, %v4173_v17  ;;  %v6514_v35 = vpop.permute.xlu0 %6513  ;;  %v3949_v13 = vsel %vm318_vm0, %v6623_v39, %v6020_v20 }
 0x41e   : > { %v4109_v53 = vsel %vm4082_vm12, %v4076_v60, %v6490_v4  ;;  %v4110_v37 = vsel %vm4082_vm12, %v4077_v10, %v6491_v34  ;;  %v6516_v8 = vunpack.i.h.bf16 %v6514_v35  ;;  %v6515_v19 = vunpack.i.l.bf16 %v6514_v35 }
 0x41f   : > { %v6499_v27 = vpop.permute.xlu1 %6498  ;;  %5240 = vmatprep.mubr.msk.bf16.mxu1 %vm4233_vm15, %v4193_v21 }
 0x420   : > { %v6501_v2 = vunpack.i.h.bf16 %v6499_v27  ;;  %v6500_v7 = vunpack.i.l.bf16 %v6499_v27  ;;  %v3982_v6 = vsel %vm1840_vm4, %v3950_v14, %v6516_v8  ;;  %v3981_v47 = vsel %vm1840_vm4, %v3949_v13, %v6515_v19 }
 0x421   : > { %v6524_v5 = vpop.permute.xlu0 %6523 }
 0x422   : > { %v4142_v0 = vsel %vm4115_vm13, %v4109_v53, %v6500_v7  ;;  %v4143_v9 = vsel %vm4115_vm13, %v4110_v37, %v6501_v2  ;;  %v6526_v36 = vunpack.i.h.bf16 %v6524_v5  ;;  %v6525_v28 = vunpack.i.l.bf16 %v6524_v5 }
 0x423   : > { %v6509_v3 = vpop.permute.xlu1 %6508 }
 0x424   : > { %v6511_v24 = vunpack.i.h.bf16 %v6509_v3  ;;  %v6510_v55 = vunpack.i.l.bf16 %v6509_v3  ;;  %v4013_v15 = vsel %vm1906_vm6, %v3981_v47, %v6525_v28  ;;  %v4014_v50 = vsel %vm1906_vm6, %v3982_v6, %v6526_v36 }
 0x425   : > { %v6534_v38 = vpop.permute.xlu0 %6533 }
 0x426   : > { %v4175_v57 = vsel %vm4148_vm14, %v4142_v0, %v6510_v55  ;;  %v4176_v25 = vsel %vm4148_vm14, %v4143_v9, %v6511_v24  ;;  %v6536_v46 = vunpack.i.h.bf16 %v6534_v38  ;;  %v6535_v32 = vunpack.i.l.bf16 %v6534_v38 }
 0x427   : > { %v4194_v61 = vpack.c.bf16 %v4176_v25, %v4175_v57  ;;  %v6519_v1 = vpop.permute.xlu1 %6518  ;;  %v3952_v24 = vsel %vm318_vm0, %v8618_v40, %v6026_v49  ;;  %v3951_v55 = vsel %vm318_vm0, %v8616_v26, %v6025_v52 }
 0x428   : > { %v4045_v35 = vsel %vm1972_vm8, %v4013_v15, %v6535_v32  ;;  %v4046_v62 = vsel %vm1972_vm8, %v4014_v50, %v6536_v46  ;;  %v6521_v59 = vunpack.i.h.bf16 %v6519_v1  ;;  %v6520_v2 = vunpack.i.l.bf16 %v6519_v1 }
 0x429   : > { %5241 = vmatmul.mubr.msk.bf16.gmra.mrb[24].mxu1 %vm4233_vm15, %v4194_v61  ;;  %v6544_v56 = vpop.permute.xlu0 %6543 }
 0x42a   : > { %v6546_v48 = vunpack.i.h.bf16 %v6544_v56  ;;  %v6545_v33 = vunpack.i.l.bf16 %v6544_v56  ;;  %v3983_v25 = vsel %vm1840_vm4, %v3951_v55, %v6520_v2  ;;  %v3984_v38 = vsel %vm1840_vm4, %v3952_v24, %v6521_v59 }
 0x42b   : > { %v8903_v18 = vpop.permute.xlu1 %6528 }
 0x42c   : > { %v4078_v51 = vsel %vm4049_vm11, %v4045_v35, %v6545_v33  ;;  %v4079_v45 = vsel %vm4049_vm11, %v4046_v62, %v6546_v48  ;;  %v6531_v22 = vunpack.i.h.bf16 %v8903_v18  ;;  %v6530_v5 = vunpack.i.l.bf16 %v8903_v18 }
 0x42d   : > { %v6554_v11 = vpop.permute.xlu0 %6553 }
 0x42e   : > { %v6556_v12 = vunpack.i.h.bf16 %v6554_v11  ;;  %v6555_v54 = vunpack.i.l.bf16 %v6554_v11  ;;  %v4015_v56 = vsel %vm1906_vm6, %v3983_v25, %v6530_v5  ;;  %v4016_v18 = vsel %vm1906_vm6, %v3984_v38, %v6531_v22 }
 0x42f   : > { %v6539_v44 = vpop.permute.xlu1 %6538 }
 0x430   : > { %v4111_v16 = vsel %vm4082_vm12, %v4078_v51, %v6555_v54  ;;  %v4112_v30 = vsel %vm4082_vm12, %v4079_v45, %v6556_v12  ;;  %v6541_v3 = vunpack.i.h.bf16 %v6539_v44  ;;  %v6540_v53 = vunpack.i.l.bf16 %v6539_v44 }
 0x431   : > { %v6564_v23 = vpop.permute.xlu0 %6563 }
 0x432   : > { %v6566_v63 = vunpack.i.h.bf16 %v6564_v23  ;;  %v6565_v21 = vunpack.i.l.bf16 %v6564_v23  ;;  %v4047_v42 = vsel %vm1972_vm8, %v4015_v56, %v6540_v53  ;;  %v4048_v26 = vsel %vm1972_vm8, %v4016_v18, %v6541_v3 }
 0x433   : > { %v6549_v17 = vpop.permute.xlu1 %6548 }
 0x434   : > { %v4144_v7 = vsel %vm4115_vm13, %v4111_v16, %v6565_v21  ;;  %v4145_v41 = vsel %vm4115_vm13, %v4112_v30, %v6566_v63  ;;  %v6551_v0 = vunpack.i.h.bf16 %v6549_v17  ;;  %v6550_v9 = vunpack.i.l.bf16 %v6549_v17 }
 0x435   : > { %v6574_v27 = vpop.permute.xlu0 %6573 }
 0x436   : > { %v6576_v34 = vunpack.i.h.bf16 %v6574_v27  ;;  %v6575_v4 = vunpack.i.l.bf16 %v6574_v27  ;;  %v4080_v20 = vsel %vm4049_vm11, %v4047_v42, %v6550_v9  ;;  %v4081_v11 = vsel %vm4049_vm11, %v4048_v26, %v6551_v0 }
 0x437   : > { %v6559_v31 = vpop.permute.xlu1 %6558 }
 0x438   : > { %v4177_v60 = vsel %vm4148_vm14, %v4144_v7, %v6575_v4  ;;  %v4178_v10 = vsel %vm4148_vm14, %v4145_v41, %v6576_v34  ;;  %v6561_v61 = vunpack.i.h.bf16 %v6559_v31  ;;  %v6560_v1 = vunpack.i.l.bf16 %v6559_v31 }
 0x439   : > { %v4195_v37 = vpack.c.bf16 %v4178_v10, %v4177_v60 }
 0x43a   : > { %v4113_v19 = vsel %vm4082_vm12, %v4080_v20, %v6560_v1  ;;  %v4114_v44 = vsel %vm4082_vm12, %v4081_v11, %v6561_v61 }
 0x43b   : > { %v6569_v57 = vpop.permute.xlu1 %6568  ;;  %5244 = vmatprep.mubr.msk.bf16.mxu1 %vm4233_vm15, %v4195_v37 }
 0x43c   : > { %v6571_v29 = vunpack.i.h.bf16 %v6569_v57  ;;  %v6570_v40 = vunpack.i.l.bf16 %v6569_v57 }
 0x43e   : > { %v4146_v46 = vsel %vm4115_vm13, %v4113_v19, %v6570_v40  ;;  %v4147_v32 = vsel %vm4115_vm13, %v4114_v44, %v6571_v29 }
 0x43f   : > { %v6579_v8 = vpop.permute.xlu1 %6578 }
 0x440   : > { %v6581_v36 = vunpack.i.h.bf16 %v6579_v8  ;;  %v6580_v28 = vunpack.i.l.bf16 %v6579_v8 }
 0x442   : > { %v4179_v58 = vsel %vm4148_vm14, %v4146_v46, %v6580_v28  ;;  %v4180_v14 = vsel %vm4148_vm14, %v4147_v32, %v6581_v36 }
 0x443   : > { %v4196_v39 = vpack.c.bf16 %v4180_v14, %v4179_v58 }
 0x445   : > { %5245 = vmatmul.mubr.msk.bf16.gmra.mrb[28].mxu1 %vm4233_vm15, %v4196_v39 }
 0x460   : > { %v8947_v13 = vpop.f32.mrb[0].mxu1 }
 0x461   : > { %v8949_v48 = vpop.f32.mrb[1].mxu1  ;;  %v4519_v47 = vmul.f32 %v8947_v13, %v8947_v13  ;;  %v4450_v50 = vsel %vm318_vm0, %v8947_v13, 0.0 }
 0x462   : > { %v4517_v33 = vmul.f32 %v8949_v48, %v8949_v48  ;;  %v8953_v23 = vpop.f32.mrb[2].mxu1  ;;  %v4447_v12 = vsel %vm318_vm0, %v8949_v48, 0.0 }
 0x463   : > { %v8955_v6 = vpop.f32.mrb[3].mxu1  ;;  %v4520_v21 = vmul.f32 %v8953_v23, %v8953_v23  ;;  %v4552_v49 = vsel %vm318_vm0, %v4519_v47, 0.0  ;;  %v4452_v52 = vsel %vm318_vm0, %v8953_v23, 0.0 }
 0x464   : > { %v4448_v54 = vsel %vm318_vm0, %v8955_v6, 0.0  ;;  %v4518_v17 = vmul.f32 %v8955_v6, %v8955_v6  ;;  %v4549_v63 = vsel %vm318_vm0, %v4517_v33, 0.0 }
 0x465   : > { %v4449_v15 = vadd.f32 %v4448_v54, %v4447_v12  ;;  %v4554_v27 = vsel %vm318_vm0, %v4520_v21, 0.0 }
 0x466   : > { %v4550_v35 = vsel %vm318_vm0, %v4518_v17, 0.0 }
 0x467   : > { %v4451_v62 = vadd.f32 %v4450_v50, %v4449_v15  ;;  %v4551_v43 = vadd.f32 %v4550_v35, %v4549_v63 }
 0x469   : > { %v4553_v51 = vadd.f32 %v4552_v49, %v4551_v43  ;;  %v4453_v45 = vadd.f32 %v4452_v52, %v4451_v62 }
 0x46b   : > { %v4555_v16 = vadd.f32 %v4554_v27, %v4553_v51 }
 0x478   : > { %v8975_v30 = vpop.f32.mrb[4].mxu1 }
 0x479   : > { %v8977_v34 = vpop.f32.mrb[5].mxu1  ;;  %v4523_v41 = vmul.f32 %v8975_v30, %v8975_v30  ;;  %v4458_v53 = vsel %vm318_vm0, %v8975_v30, 0.0 }
 0x47a   : > { %v4454_v4 = vsel %vm318_vm0, %v8977_v34, 0.0  ;;  %v4521_v31 = vmul.f32 %v8977_v34, %v8977_v34  ;;  %v8983_v59 = vpop.f32.mrb[6].mxu1 }
 0x47b   : > { %v4455_v2 = vadd.f32 %v4454_v4, %v4453_v45  ;;  %v8985_v7 = vpop.f32.mrb[7].mxu1  ;;  %v4524_v37 = vmul.f32 %v8983_v59, %v8983_v59  ;;  %v4560_v9 = vsel %vm318_vm0, %v4523_v41, 0.0  ;;  %v4460_v57 = vsel %vm318_vm0, %v8983_v59, 0.0 }
 0x47c   : > { %v4556_v22 = vsel %vm318_vm0, %v4521_v31, 0.0  ;;  %v4456_v5 = vsel %vm318_vm0, %v8985_v7, 0.0  ;;  %v4522_v60 = vmul.f32 %v8985_v7, %v8985_v7 }
 0x47d   : > { %v4557_v10 = vadd.f32 %v4556_v22, %v4555_v16  ;;  %v4457_v3 = vadd.f32 %v4456_v5, %v4455_v2  ;;  %v4562_v61 = vsel %vm318_vm0, %v4524_v37, 0.0 }
 0x47e   : > { %v4558_v24 = vsel %vm318_vm0, %v4522_v60, 0.0 }
 0x47f   : > { %v4459_v55 = vadd.f32 %v4458_v53, %v4457_v3  ;;  %v4559_v0 = vadd.f32 %v4558_v24, %v4557_v10 }
 0x481   : > { %v4561_v25 = vadd.f32 %v4560_v9, %v4559_v0  ;;  %v4461_v38 = vadd.f32 %v4460_v57, %v4459_v55 }
 0x483   : > { %v4563_v1 = vadd.f32 %v4562_v61, %v4561_v25 }
 0x490   : > { %v9003_v56 = vpop.f32.mrb[8].mxu1 }
 0x491   : > { %v9005_v18 = vpop.f32.mrb[9].mxu1  ;;  %v4527_v11 = vmul.f32 %v9003_v56, %v9003_v56  ;;  %v4466_v46 = vsel %vm318_vm0, %v9003_v56, 0.0 }
 0x492   : > { %v4462_v29 = vsel %vm318_vm0, %v9005_v18, 0.0  ;;  %v4525_v40 = vmul.f32 %v9005_v18, %v9005_v18  ;;  %v9011_v42 = vpop.f32.mrb[10].mxu1 }
 0x493   : > { %v4463_v26 = vadd.f32 %v4462_v29, %v4461_v38  ;;  %v9013_v20 = vpop.f32.mrb[11].mxu1  ;;  %v4528_v32 = vmul.f32 %v9011_v42, %v9011_v42  ;;  %v4568_v33 = vsel %vm318_vm0, %v4527_v11, 0.0  ;;  %v4468_v47 = vsel %vm318_vm0, %v9011_v42, 0.0 }
 0x494   : > { %v4564_v8 = vsel %vm318_vm0, %v4525_v40, 0.0  ;;  %v4464_v19 = vsel %vm318_vm0, %v9013_v20, 0.0  ;;  %v4526_v44 = vmul.f32 %v9013_v20, %v9013_v20 }
 0x495   : > { %v4565_v36 = vadd.f32 %v4564_v8, %v4563_v1  ;;  %v4465_v28 = vadd.f32 %v4464_v19, %v4463_v26  ;;  %v4570_v17 = vsel %vm318_vm0, %v4528_v32, 0.0 }
 0x496   : > { %v4566_v58 = vsel %vm318_vm0, %v4526_v44, 0.0 }
 0x497   : > { %v4467_v14 = vadd.f32 %v4466_v46, %v4465_v28  ;;  %v4567_v39 = vadd.f32 %v4566_v58, %v4565_v36 }
 0x499   : > { %v4569_v12 = vadd.f32 %v4568_v33, %v4567_v39  ;;  %v4469_v54 = vadd.f32 %v4468_v47, %v4467_v14 }
 0x49b   : > { %v4571_v15 = vadd.f32 %v4570_v17, %v4569_v12 }
 0x4a8   : > { %v9031_v50 = vpop.f32.mrb[12].mxu1 }
 0x4a9   : > { %v9033_v63 = vpop.f32.mrb[13].mxu1  ;;  %v4531_v52 = vmul.f32 %v9031_v50, %v9031_v50  ;;  %v4474_v31 = vsel %vm318_vm0, %v9031_v50, 0.0 }
 0x4aa   : > { %v4470_v21 = vsel %vm318_vm0, %v9033_v63, 0.0  ;;  %v4529_v35 = vmul.f32 %v9033_v63, %v9033_v63  ;;  %v9039_v62 = vpop.f32.mrb[14].mxu1 }
 0x4ab   : > { %v4471_v43 = vadd.f32 %v4470_v21, %v4469_v54  ;;  %v9041_v49 = vpop.f32.mrb[15].mxu1  ;;  %v4532_v2 = vmul.f32 %v9039_v62, %v9039_v62  ;;  %v4576_v60 = vsel %vm318_vm0, %v4531_v52, 0.0  ;;  %v4476_v10 = vsel %vm318_vm0, %v9039_v62, 0.0 }
 0x4ac   : > { %v4572_v51 = vsel %vm318_vm0, %v4529_v35, 0.0  ;;  %v4472_v45 = vsel %vm318_vm0, %v9041_v49, 0.0  ;;  %v4530_v27 = vmul.f32 %v9041_v49, %v9041_v49 }
 0x4ad   : > { %v4573_v16 = vadd.f32 %v4572_v51, %v4571_v15  ;;  %v4473_v4 = vadd.f32 %v4472_v45, %v4471_v43  ;;  %v4578_v37 = vsel %vm318_vm0, %v4532_v2, 0.0 }
 0x4ae   : > { %v4574_v41 = vsel %vm318_vm0, %v4530_v27, 0.0 }
 0x4af   : > { %v4475_v22 = vadd.f32 %v4474_v31, %v4473_v4  ;;  %v4575_v5 = vadd.f32 %v4574_v41, %v4573_v16 }
 0x4b1   : > { %v4577_v3 = vadd.f32 %v4576_v60, %v4575_v5  ;;  %v4477_v53 = vadd.f32 %v4476_v10, %v4475_v22 }
 0x4b3   : > { %v4579_v24 = vadd.f32 %v4578_v37, %v4577_v3 }
 0x4c4   : > { %v9059_v55 = vpop.f32.mrb[16].mxu1 }
 0x4c5   : > { %v9061_v0 = vpop.f32.mrb[17].mxu1  ;;  %v4535_v1 = vmul.f32 %v9059_v55, %v9059_v55  ;;  %v4482_v19 = vsel %vm318_vm0, %v9059_v55, 0.0 }
 0x4c6   : > { %v4478_v9 = vsel %vm318_vm0, %v9061_v0, 0.0  ;;  %v4533_v57 = vmul.f32 %v9061_v0, %v9061_v0  ;;  %v9067_v25 = vpop.f32.mrb[18].mxu1 }
 0x4c7   : > { %v4479_v38 = vadd.f32 %v4478_v9, %v4477_v53  ;;  %v9069_v61 = vpop.f32.mrb[19].mxu1  ;;  %v4536_v44 = vmul.f32 %v9067_v25, %v9067_v25  ;;  %v4584_v32 = vsel %vm318_vm0, %v4535_v1, 0.0  ;;  %v4484_v58 = vsel %vm318_vm0, %v9067_v25, 0.0 }
 0x4c8   : > { %v4580_v29 = vsel %vm318_vm0, %v4533_v57, 0.0  ;;  %v4480_v40 = vsel %vm318_vm0, %v9069_v61, 0.0  ;;  %v4534_v26 = vmul.f32 %v9069_v61, %v9069_v61 }
 0x4c9   : > { %v4581_v11 = vadd.f32 %v4580_v29, %v4579_v24  ;;  %v4481_v8 = vadd.f32 %v4480_v40, %v4479_v38  ;;  %v4586_v33 = vsel %vm318_vm0, %v4536_v44, 0.0 }
 0x4ca   : > { %v4582_v36 = vsel %vm318_vm0, %v4534_v26, 0.0 }
 0x4cb   : > { %v4483_v28 = vadd.f32 %v4482_v19, %v4481_v8  ;;  %v4583_v46 = vadd.f32 %v4582_v36, %v4581_v11 }
 0x4cd   : > { %v4585_v14 = vadd.f32 %v4584_v32, %v4583_v46  ;;  %v4485_v39 = vadd.f32 %v4484_v58, %v4483_v28 }
 0x4cf   : > { %v4587_v47 = vadd.f32 %v4586_v33, %v4585_v14 }
 0x4e0   : > { %v9087_v12 = vpop.f32.mrb[20].mxu1 }
 0x4e1   : > { %v9089_v54 = vpop.f32.mrb[21].mxu1  ;;  %v4539_v52 = vmul.f32 %v9087_v12, %v9087_v12  ;;  %v4490_v31 = vsel %vm318_vm0, %v9087_v12, 0.0 }
 0x4e2   : > { %v4486_v17 = vsel %vm318_vm0, %v9089_v54, 0.0  ;;  %v4537_v15 = vmul.f32 %v9089_v54, %v9089_v54  ;;  %v9095_v21 = vpop.f32.mrb[22].mxu1 }
 0x4e3   : > { %v4487_v35 = vadd.f32 %v4486_v17, %v4485_v39  ;;  %v9097_v43 = vpop.f32.mrb[23].mxu1  ;;  %v4540_v2 = vmul.f32 %v9095_v21, %v9095_v21  ;;  %v4592_v60 = vsel %vm318_vm0, %v4539_v52, 0.0  ;;  %v4492_v10 = vsel %vm318_vm0, %v9095_v21, 0.0 }
 0x4e4   : > { %v4588_v51 = vsel %vm318_vm0, %v4537_v15, 0.0  ;;  %v4488_v45 = vsel %vm318_vm0, %v9097_v43, 0.0  ;;  %v4538_v27 = vmul.f32 %v9097_v43, %v9097_v43 }
 0x4e5   : > { %v4589_v16 = vadd.f32 %v4588_v51, %v4587_v47  ;;  %v4489_v4 = vadd.f32 %v4488_v45, %v4487_v35  ;;  %v4594_v37 = vsel %vm318_vm0, %v4540_v2, 0.0 }
 0x4e6   : > { %v4590_v41 = vsel %vm318_vm0, %v4538_v27, 0.0 }
 0x4e7   : > { %v4491_v22 = vadd.f32 %v4490_v31, %v4489_v4  ;;  %v4591_v5 = vadd.f32 %v4590_v41, %v4589_v16 }
 0x4e9   : > { %v4593_v3 = vadd.f32 %v4592_v60, %v4591_v5  ;;  %v4493_v53 = vadd.f32 %v4492_v10, %v4491_v22 }
 0x4eb   : > { %v4595_v24 = vadd.f32 %v4594_v37, %v4593_v3 }
 0x4fc   : > { %v9115_v9 = vpop.f32.mrb[24].mxu1 }
 0x4fd   : > { %v9117_v57 = vpop.f32.mrb[25].mxu1  ;;  %v4543_v11 = vmul.f32 %v9115_v9, %v9115_v9  ;;  %v4498_v46 = vsel %vm318_vm0, %v9115_v9, 0.0 }
 0x4fe   : > { %v4494_v38 = vsel %vm318_vm0, %v9117_v57, 0.0  ;;  %v4541_v1 = vmul.f32 %v9117_v57, %v9117_v57  ;;  %v9123_v29 = vpop.f32.mrb[26].mxu1 }
 0x4ff   : > { %v4495_v40 = vadd.f32 %v4494_v38, %v4493_v53  ;;  %v9125_v26 = vpop.f32.mrb[27].mxu1  ;;  %v4544_v32 = vmul.f32 %v9123_v29, %v9123_v29  ;;  %v4600_v33 = vsel %vm318_vm0, %v4543_v11, 0.0  ;;  %v4500_v47 = vsel %vm318_vm0, %v9123_v29, 0.0 }
 0x500   : > { %v4596_v8 = vsel %vm318_vm0, %v4541_v1, 0.0  ;;  %v4496_v19 = vsel %vm318_vm0, %v9125_v26, 0.0  ;;  %v4542_v44 = vmul.f32 %v9125_v26, %v9125_v26 }
 0x501   : > { %v4597_v36 = vadd.f32 %v4596_v8, %v4595_v24  ;;  %v4497_v28 = vadd.f32 %v4496_v19, %v4495_v40  ;;  %v4602_v35 = vsel %vm318_vm0, %v4544_v32, 0.0 }
 0x502   : > { %v4598_v58 = vsel %vm318_vm0, %v4542_v44, 0.0 }
 0x503   : > { %v4499_v14 = vadd.f32 %v4498_v46, %v4497_v28  ;;  %v4599_v39 = vadd.f32 %v4598_v58, %v4597_v36 }
 0x505   : > { %v4601_v17 = vadd.f32 %v4600_v33, %v4599_v39  ;;  %v4501_v15 = vadd.f32 %v4500_v47, %v4499_v14 }
 0x507   : > { %v4603_v52 = vadd.f32 %v4602_v35, %v4601_v17 }
 0x518   : > { %v9143_v51 = vpop.f32.mrb[28].mxu1 }
 0x519   : > { %v9145_v45 = vpop.f32.mrb[29].mxu1  ;;  %v4547_v41 = vmul.f32 %v9143_v51, %v9143_v51  ;;  %v4506_v53 = vsel %vm318_vm0, %v9143_v51, 0.0 }
 0x51a   : > { %v4502_v27 = vsel %vm318_vm0, %v9145_v45, 0.0  ;;  %v4545_v16 = vmul.f32 %v9145_v45, %v9145_v45  ;;  %v5247_v4 = vpop.f32.mrb[30].mxu1 }
 0x51b   : > { %v4503_v31 = vadd.f32 %v4502_v27, %v4501_v15  ;;  %v4435_v2 = vpop.f32.mrb[31].mxu1  ;;  %v4548_v37 = vmul.f32 %v5247_v4, %v5247_v4  ;;  %v4608_v40 = vsel %vm318_vm0, %v4547_v41, 0.0  ;;  %v4508_v11 = vsel %vm318_vm0, %v5247_v4, 0.0 }
 0x51c   : > { %v4604_v22 = vsel %vm318_vm0, %v4545_v16, 0.0  ;;  %v4504_v5 = vsel %vm318_vm0, %v4435_v2, 0.0  ;;  %v4546_v60 = vmul.f32 %v4435_v2, %v4435_v2 }
 0x51d   : > { %v4605_v10 = vadd.f32 %v4604_v22, %v4603_v52  ;;  %v4505_v3 = vadd.f32 %v4504_v5, %v4503_v31  ;;  %v4610_v44 = vsel %vm318_vm0, %v4548_v37, 0.0 }
 0x51e   : > { %v4606_v24 = vsel %vm318_vm0, %v4546_v60, 0.0  ;;  %v4622_v60 = vld [vmem:[%s9532_s5] sm:$0x1] }
 0x51f   : > { %v4507_v38 = vadd.f32 %v4506_v53, %v4505_v3  ;;  %v4607_v1 = vadd.f32 %v4606_v24, %v4605_v10  ;;  %v4626_v53 = vld [vmem:[%s9533_s6] sm:$0x1]  ;;  %v9645_v24 = vld [vmem:[#allocation9_spill] sm:$0xff] }
 0x521   : > { %v4509_v8 = vadd.f32 %v4508_v11, %v4507_v38  ;;  %v4609_v19 = vadd.f32 %v4608_v40, %v4607_v1 }
 0x523   : > { %v4510_v36 = vrot.slane %v4509_v8, 4  ;;  %v4611_v28 = vadd.f32 %v4610_v44, %v4609_v19 }
 0x525   : > { %v4511_v46 = vadd.f32 %v4510_v36, %v4509_v8  ;;  %v4612_v32 = vrot.slane %v4611_v28, 4 }
 0x527   : > { %v4512_v58 = vrot.slane %v4511_v46, 2  ;;  %v4613_v14 = vadd.f32 %v4612_v32, %v4611_v28 }
 0x529   : > { %v4513_v39 = vadd.f32 %v4512_v58, %v4511_v46  ;;  %v4614_v33 = vrot.slane %v4613_v14, 2 }
 0x52b   : > { %v4514_v47 = vrot.slane %v4513_v39, 1  ;;  %v4615_v17 = vadd.f32 %v4614_v33, %v4613_v14 }
 0x52d   : > { %v4515_v15 = vadd.f32 %v4514_v47, %v4513_v39  ;;  %v4616_v35 = vrot.slane %v4615_v17, 1 }
 0x52f   : > { %v4516_v52 = vmul.f32 0.00390625, %v4515_v15  ;;  %v4617_v27 = vadd.f32 %v4616_v35, %v4615_v17 }
 0x531   : > { %v4618_v16 = vmul.f32 0.00390625, %v4617_v27  ;;  %v4619_v31 = vmul.f32 %v4516_v52, %v4516_v52 }
 0x533   : > { %v4620_v41 = vsub.f32 %v4618_v16, %v4619_v31 }
 0x535   : > { %v4621_v22 = vmax.f32 %v4620_v41, 0.0 }
 0x537   : > { %v4623_v5 = vadd.f32 1e-05, %v4621_v22 }
 0x539   : > { %6592 = vrsqrt.f32 %v4623_v5 }
 0x543   : > { %v6593_v10 = vpop.eup %6592 }
 0x544   : > { %v4625_v3 = vmul.f32 %v6593_v10, %v4622_v60 }
 0x546   : > { %v4627_v37 = vmul.f32 %v4625_v3, %v4516_v52  ;;  %v4633_v38 = vrot.slane %v4625_v3, %v9645_v24 }
 0x548   : > { %v4628_v1 = vsub.f32 %v4626_v53, %v4627_v37  ;;  %v4650_v40 = vmul.f32 %v9039_v62, %v4633_v38  ;;  %v4664_v11 = vmul.f32 %v4633_v38, %v4435_v2  ;;  %v4666_v8 = vmul.f32 %v5247_v4, %v4633_v38 }
 0x549   : > { %v4635_v19 = vmul.f32 %v4633_v38, %v8949_v48  ;;  %v4636_v44 = vmul.f32 %v4633_v38, %v8955_v6  ;;  %v4637_v36 = vmul.f32 %v8947_v13, %v4633_v38  ;;  %v4638_v28 = vmul.f32 %v8953_v23, %v4633_v38 }
 0x54a   : > { %v9174_v46 = vrot.slane %v4628_v1, %v9645_v24  ;;  %v4639_v32 = vmul.f32 %v4633_v38, %v8977_v34  ;;  %v4640_v58 = vmul.f32 %v4633_v38, %v8985_v7  ;;  %v4641_v14 = vmul.f32 %v8975_v30, %v4633_v38 }
 0x54b   : > { %v4642_v62 = vmul.f32 %v8983_v59, %v4633_v38  ;;  %v4643_v48 = vmul.f32 %v4633_v38, %v9005_v18  ;;  %v4644_v6 = vmul.f32 %v4633_v38, %v9013_v20  ;;  %v4645_v13 = vmul.f32 %v9003_v56, %v4633_v38 }
 0x54c   : > { %v4688_v23 = vadd.f32 %v9174_v46, %v4650_v40  ;;  %v4702_v4 = vadd.f32 %v9174_v46, %v4664_v11  ;;  %v4704_v2 = vadd.f32 %v9174_v46, %v4666_v8  ;;  %v4646_v34 = vmul.f32 %v9011_v42, %v4633_v38 }
 0x54d   : > { %v4647_v7 = vmul.f32 %v4633_v38, %v9033_v63  ;;  %v4648_v30 = vmul.f32 %v4633_v38, %v9041_v49  ;;  %v4649_v59 = vmul.f32 %v9031_v50, %v4633_v38  ;;  %v4651_v18 = vmul.f32 %v4633_v38, %v9061_v0 }
 0x54e   : > { %v4720_v39 = vmul.f32 0.01, %v4688_v23  ;;  %v4734_v20 = vmul.f32 0.01, %v4702_v4  ;;  %v4736_v33 = vmul.f32 0.01, %v4704_v2  ;;  %v4652_v56 = vmul.f32 %v4633_v38, %v9069_v61 }
 0x54f   : > { %v4653_v42 = vmul.f32 %v9059_v55, %v4633_v38  ;;  %v4654_v63 = vmul.f32 %v9067_v25, %v4633_v38  ;;  %v4655_v50 = vmul.f32 %v4633_v38, %v9089_v54  ;;  %v4656_v49 = vmul.f32 %v4633_v38, %v9097_v43 }
 0x550   : > { %v4752_v0 = vmax.f32 %v4688_v23, %v4720_v39  ;;  %v4766_v47 = vmax.f32 %v4702_v4, %v4734_v20  ;;  %v4768_v61 = vmax.f32 %v4704_v2, %v4736_v33  ;;  %v4657_v17 = vmul.f32 %v9087_v12, %v4633_v38 }
 0x551   : > { %v4658_v15 = vmul.f32 %v9095_v21, %v4633_v38  ;;  %v4659_v35 = vmul.f32 %v4633_v38, %v9117_v57  ;;  %v4660_v52 = vmul.f32 %v4633_v38, %v9125_v26  ;;  %v4661_v55 = vmul.f32 %v9115_v9, %v4633_v38 }
 0x552   : > { %4798 = vst.msk [vmem:[%s9197_s12 + $0xe8] sm:$0xff] %vm397_vm1, %v4766_v47  ;;  %v4662_v25 = vmul.f32 %v9123_v29, %v4633_v38  ;;  %v4663_v12 = vmul.f32 %v4633_v38, %v9145_v45  ;;  %v4665_v54 = vmul.f32 %v9143_v51, %v4633_v38  ;;  %4784 = vst.msk [vmem:[%s9197_s12 + $0x78] sm:$0xff] %vm397_vm1, %v4752_v0 }
 0x553   : > { %4816 = vst.msk [vmem:[#allocation3 + $0x78] sm:$0xff] %vm318_vm0, %v4752_v0  ;;  %4830 = vst.msk [vmem:[#allocation3 + $0xe8] sm:$0xff] %vm318_vm0, %v4766_v47  ;;  %v4673_v21 = vadd.f32 %v9174_v46, %v4635_v19  ;;  %v4674_v43 = vadd.f32 %v9174_v46, %v4636_v44  ;;  %v4675_v9 = vadd.f32 %v9174_v46, %v4637_v36 }
 0x554   : > { %4832 = vst.msk [vmem:[#allocation3 + $0xf8] sm:$0xff] %vm318_vm0, %v4768_v61  ;;  %v4676_v57 = vadd.f32 %v9174_v46, %v4638_v28  ;;  %v4677_v26 = vadd.f32 %v9174_v46, %v4639_v32  ;;  %v9226_v29 = vadd.f32 %v9174_v46, %v4640_v58  ;;  %v9229_v45 = vadd.f32 %v9174_v46, %v4641_v14 }
 0x555   : > { %4800 = vst.msk [vmem:[%s9197_s12 + $0xf8] sm:$0xff] %vm397_vm1, %v4768_v61  ;;  %v9232_v51 = vadd.f32 %v9174_v46, %v4642_v62  ;;  %v9235_v27 = vadd.f32 %v9174_v46, %v4643_v48  ;;  %v9238_v16 = vadd.f32 %v9174_v46, %v4644_v6  ;;  %v9241_v31 = vadd.f32 %v9174_v46, %v4645_v13 }
 0x556   : > { %v9244_v41 = vadd.f32 %v9174_v46, %v4646_v34  ;;  %v9247_v22 = vadd.f32 %v9174_v46, %v4647_v7  ;;  %v9250_v5 = vadd.f32 %v9174_v46, %v4648_v30  ;;  %v9253_v60 = vadd.f32 %v9174_v46, %v4649_v59 }
 0x557   : > { %v9256_v10 = vadd.f32 %v9174_v46, %v4651_v18  ;;  %v9259_v3 = vadd.f32 %v9174_v46, %v4652_v56  ;;  %v9262_v53 = vadd.f32 %v9174_v46, %v4653_v42  ;;  %v9265_v37 = vadd.f32 %v9174_v46, %v4654_v63 }
 0x558   : > { %v9268_v24 = vadd.f32 %v9174_v46, %v4655_v50  ;;  %v9271_v38 = vadd.f32 %v9174_v46, %v4656_v49  ;;  %v9274_v1 = vadd.f32 %v9174_v46, %v4657_v17  ;;  %v9277_v40 = vadd.f32 %v9174_v46, %v4658_v15 }
 0x559   : > { %v9280_v11 = vadd.f32 %v9174_v46, %v4659_v35  ;;  %v9283_v8 = vadd.f32 %v9174_v46, %v4660_v52  ;;  %v9288_v28 = vadd.f32 %v9174_v46, %v4661_v55  ;;  %v9291_v32 = vadd.f32 %v9174_v46, %v4662_v25 }
 0x55a   : > { %v4848_v19 = vld [vmem:[#allocation3 + $0xe8] sm:$0xff]  ;;  %v9285_v44 = vld [vmem:[#allocation3 + $0x78] sm:$0xff]  ;;  %v9294_v58 = vadd.f32 %v9174_v46, %v4663_v12  ;;  %v9297_v14 = vadd.f32 %v9174_v46, %v4665_v54  ;;  %v4705_v48 = vmul.f32 0.01, %v4673_v21  ;;  %v4706_v6 = vmul.f32 0.01, %v4674_v43 }
 0x55b   : > { %v4865_v36 = vld [vmem:[#allocation3 + $0xf8] sm:$0xff]  ;;  %v4707_v13 = vmul.f32 0.01, %v4675_v9  ;;  %v4708_v23 = vmul.f32 0.01, %v4676_v57 }
 0x55c   : > { %v4881_v62 = vadd.f32 %v4865_v36, %v4848_v19  ;;  %v4709_v4 = vmul.f32 0.01, %v4677_v26  ;;  %v4710_v2 = vmul.f32 0.01, %v9226_v29  ;;  %v4711_v34 = vmul.f32 0.01, %v9229_v45 }
 0x55d   : > { %v4712_v7 = vmul.f32 0.01, %v9232_v51  ;;  %v4713_v30 = vmul.f32 0.01, %v9235_v27  ;;  %v4737_v46 = vmax.f32 %v4673_v21, %v4705_v48  ;;  %v4714_v59 = vmul.f32 0.01, %v9238_v16 }
 0x55e   : > { %4897 = vst.msk [vmem:[#allocation3 + $0x78] sm:$0xff] %vm318_vm0, %v4881_v62  ;;  %v4715_v18 = vmul.f32 0.01, %v9241_v31  ;;  %v4716_v39 = vmul.f32 0.01, %v9244_v41  ;;  %v4738_v20 = vmax.f32 %v4674_v43, %v4706_v6  ;;  %v4739_v63 = vmax.f32 %v4675_v9, %v4707_v13 }
 0x55f   : > { %v4717_v33 = vmul.f32 0.01, %v9247_v22  ;;  %v4718_v56 = vmul.f32 0.01, %v9250_v5  ;;  %v4719_v42 = vmul.f32 0.01, %v9253_v60  ;;  %v4740_v47 = vmax.f32 %v4676_v57, %v4708_v23 }
 0x560   : > { %4769 = vst.msk [vmem:[%s9197_s12] sm:$0xff] %vm397_vm1, %v4737_v46  ;;  %v4721_v50 = vmul.f32 0.01, %v9256_v10  ;;  %v4722_v49 = vmul.f32 0.01, %v9259_v3  ;;  %4770 = vst.msk [vmem:[%s9197_s12 + $0x8] sm:$0xff] %vm397_vm1, %v4738_v20  ;;  %v4741_v35 = vmax.f32 %v4677_v26, %v4709_v4  ;;  %v4742_v12 = vmax.f32 %v9226_v29, %v4710_v2 }
 0x561   : > { %4801 = vst.msk [vmem:[#allocation3] sm:$0xff] %vm318_vm0, %v4737_v46  ;;  %v4723_v0 = vmul.f32 0.01, %v9262_v53  ;;  %4802 = vst.msk [vmem:[#allocation3 + $0x8] sm:$0xff] %vm318_vm0, %v4738_v20  ;;  %v4724_v61 = vmul.f32 0.01, %v9265_v37  ;;  %v4743_v9 = vmax.f32 %v9229_v45, %v4711_v34  ;;  %v4744_v29 = vmax.f32 %v9232_v51, %v4712_v7 }
 0x562   : > { %v4725_v17 = vmul.f32 0.01, %v9268_v24  ;;  %v4726_v15 = vmul.f32 0.01, %v9271_v38  ;;  %4771 = vst.msk [vmem:[%s9197_s12 + $0x10] sm:$0xff] %vm397_vm1, %v4739_v63  ;;  %4772 = vst.msk [vmem:[%s9197_s12 + $0x18] sm:$0xff] %vm397_vm1, %v4740_v47  ;;  %v4745_v19 = vmax.f32 %v9235_v27, %v4713_v30  ;;  %v4746_v45 = vmax.f32 %v9238_v16, %v4714_v59 }
 0x563   : > { %4803 = vst.msk [vmem:[#allocation3 + $0x10] sm:$0xff] %vm318_vm0, %v4739_v63  ;;  %v4727_v52 = vmul.f32 0.01, %v9274_v1  ;;  %v4728_v55 = vmul.f32 0.01, %v9277_v40  ;;  %4804 = vst.msk [vmem:[#allocation3 + $0x18] sm:$0xff] %vm318_vm0, %v4740_v47  ;;  %v4747_v36 = vmax.f32 %v9241_v31, %v4715_v18  ;;  %v4748_v62 = vmax.f32 %v9244_v41, %v4716_v39 }
 0x564   : > { %v4729_v25 = vmul.f32 0.01, %v9280_v11  ;;  %v4730_v54 = vmul.f32 0.01, %v9283_v8  ;;  %v4731_v21 = vmul.f32 0.01, %v9288_v28  ;;  %v4749_v48 = vmax.f32 %v9247_v22, %v4717_v33 }
 0x565   : > { %v4732_v43 = vmul.f32 0.01, %v9291_v32  ;;  %4773 = vst.msk [vmem:[%s9197_s12 + $0x20] sm:$0xff] %vm397_vm1, %v4741_v35  ;;  %v4733_v57 = vmul.f32 0.01, %v9294_v58  ;;  %4774 = vst.msk [vmem:[%s9197_s12 + $0x28] sm:$0xff] %vm397_vm1, %v4742_v12  ;;  %v4750_v51 = vmax.f32 %v9250_v5, %v4718_v56  ;;  %v4751_v27 = vmax.f32 %v9253_v60, %v4719_v42 }
 0x566   : > { %4805 = vst.msk [vmem:[#allocation3 + $0x20] sm:$0xff] %vm318_vm0, %v4741_v35  ;;  %v4735_v26 = vmul.f32 0.01, %v9297_v14  ;;  %4806 = vst.msk [vmem:[#allocation3 + $0x28] sm:$0xff] %vm318_vm0, %v4742_v12  ;;  %v4753_v16 = vmax.f32 %v9256_v10, %v4721_v50  ;;  %v4754_v31 = vmax.f32 %v9259_v3, %v4722_v49  ;;  %v4755_v41 = vmax.f32 %v9262_v53, %v4723_v0 }
 0x567   : > { %4775 = vst.msk [vmem:[%s9197_s12 + $0x30] sm:$0xff] %vm397_vm1, %v4743_v9  ;;  %4776 = vst.msk [vmem:[%s9197_s12 + $0x38] sm:$0xff] %vm397_vm1, %v4744_v29  ;;  %v4756_v22 = vmax.f32 %v9265_v37, %v4724_v61  ;;  %v4757_v5 = vmax.f32 %v9268_v24, %v4725_v17  ;;  %v4758_v60 = vmax.f32 %v9271_v38, %v4726_v15 }
 0x568   : > { %4807 = vst.msk [vmem:[#allocation3 + $0x30] sm:$0xff] %vm318_vm0, %v4743_v9  ;;  %4808 = vst.msk [vmem:[#allocation3 + $0x38] sm:$0xff] %vm318_vm0, %v4744_v29  ;;  %v4833_v10 = vld [vmem:[#allocation3] sm:$0xff]  ;;  %v4834_v3 = vld [vmem:[#allocation3 + $0x8] sm:$0xff]  ;;  %v4759_v53 = vmax.f32 %v9274_v1, %v4727_v52  ;;  %v4760_v37 = vmax.f32 %v9277_v40, %v4728_v55  ;;  %v4761_v24 = vmax.f32 %v9280_v11, %v4729_v25 }
 0x569   : > { %4777 = vst.msk [vmem:[%s9197_s12 + $0x40] sm:$0xff] %vm397_vm1, %v4745_v19  ;;  %4778 = vst.msk [vmem:[%s9197_s12 + $0x48] sm:$0xff] %vm397_vm1, %v4746_v45  ;;  %v4762_v38 = vmax.f32 %v9283_v8, %v4730_v54  ;;  %v4763_v40 = vmax.f32 %v9288_v28, %v4731_v21  ;;  %v4764_v11 = vmax.f32 %v9291_v32, %v4732_v43 }
 0x56a   : > { %4809 = vst.msk [vmem:[#allocation3 + $0x40] sm:$0xff] %vm318_vm0, %v4745_v19  ;;  %4810 = vst.msk [vmem:[#allocation3 + $0x48] sm:$0xff] %vm318_vm0, %v4746_v45  ;;  %v4850_v1 = vld [vmem:[#allocation3 + $0x10] sm:$0xff]  ;;  %v4765_v8 = vmax.f32 %v9294_v58, %v4733_v57  ;;  %v4767_v6 = vmax.f32 %v9297_v14, %v4735_v26  ;;  %v4851_v28 = vld [vmem:[#allocation3 + $0x18] sm:$0xff] }
 0x56b   : > { %4779 = vst.msk [vmem:[%s9197_s12 + $0x50] sm:$0xff] %vm397_vm1, %v4747_v36  ;;  %4780 = vst.msk [vmem:[%s9197_s12 + $0x58] sm:$0xff] %vm397_vm1, %v4748_v62  ;;  %v4866_v58 = vadd.f32 %v4850_v1, %v4833_v10  ;;  %v4867_v14 = vadd.f32 %v4851_v28, %v4834_v3 }
 0x56c   : > { %4781 = vst.msk [vmem:[%s9197_s12 + $0x60] sm:$0xff] %vm397_vm1, %v4749_v48  ;;  %4782 = vst.msk [vmem:[%s9197_s12 + $0x68] sm:$0xff] %vm397_vm1, %v4750_v51 }
 0x56d   : > { %4811 = vst.msk [vmem:[#allocation3 + $0x50] sm:$0xff] %vm318_vm0, %v4747_v36  ;;  %4812 = vst.msk [vmem:[#allocation3 + $0x58] sm:$0xff] %vm318_vm0, %v4748_v62  ;;  %v4835_v32 = vld [vmem:[#allocation3 + $0x20] sm:$0xff]  ;;  %v4836_v13 = vld [vmem:[#allocation3 + $0x28] sm:$0xff] }
 0x56e   : > { %4813 = vst.msk [vmem:[#allocation3 + $0x60] sm:$0xff] %vm318_vm0, %v4749_v48  ;;  %4814 = vst.msk [vmem:[#allocation3 + $0x68] sm:$0xff] %vm318_vm0, %v4750_v51 }
 0x56f   : > { %4783 = vst.msk [vmem:[%s9197_s12 + $0x70] sm:$0xff] %vm397_vm1, %v4751_v27  ;;  %4785 = vst.msk [vmem:[%s9197_s12 + $0x80] sm:$0xff] %vm397_vm1, %v4753_v16  ;;  %v4852_v23 = vld [vmem:[#allocation3 + $0x30] sm:$0xff]  ;;  %v4853_v2 = vld [vmem:[#allocation3 + $0x38] sm:$0xff] }
 0x570   : > { %4786 = vst.msk [vmem:[%s9197_s12 + $0x88] sm:$0xff] %vm397_vm1, %v4754_v31  ;;  %4787 = vst.msk [vmem:[%s9197_s12 + $0x90] sm:$0xff] %vm397_vm1, %v4755_v41  ;;  %v4868_v34 = vadd.f32 %v4852_v23, %v4835_v32  ;;  %v4869_v59 = vadd.f32 %v4853_v2, %v4836_v13 }
 0x571   : > { %4815 = vst.msk [vmem:[#allocation3 + $0x70] sm:$0xff] %vm318_vm0, %v4751_v27  ;;  %4817 = vst.msk [vmem:[#allocation3 + $0x80] sm:$0xff] %vm318_vm0, %v4753_v16  ;;  %v4837_v4 = vld [vmem:[#allocation3 + $0x40] sm:$0xff]  ;;  %v4838_v7 = vld [vmem:[#allocation3 + $0x48] sm:$0xff] }
 0x572   : > { %4818 = vst.msk [vmem:[#allocation3 + $0x88] sm:$0xff] %vm318_vm0, %v4754_v31  ;;  %4819 = vst.msk [vmem:[#allocation3 + $0x90] sm:$0xff] %vm318_vm0, %v4755_v41 }
 0x573   : > { %4788 = vst.msk [vmem:[%s9197_s12 + $0x98] sm:$0xff] %vm397_vm1, %v4756_v22  ;;  %4789 = vst.msk [vmem:[%s9197_s12 + $0xa0] sm:$0xff] %vm397_vm1, %v4757_v5 }
 0x574   : > { %4790 = vst.msk [vmem:[%s9197_s12 + $0xa8] sm:$0xff] %vm397_vm1, %v4758_v60  ;;  %4791 = vst.msk [vmem:[%s9197_s12 + $0xb0] sm:$0xff] %vm397_vm1, %v4759_v53  ;;  %v4854_v46 = vld [vmem:[#allocation3 + $0x50] sm:$0xff]  ;;  %v4855_v63 = vld [vmem:[#allocation3 + $0x58] sm:$0xff] }
 0x575   : > { %4820 = vst.msk [vmem:[#allocation3 + $0x98] sm:$0xff] %vm318_vm0, %v4756_v22  ;;  %4821 = vst.msk [vmem:[#allocation3 + $0xa0] sm:$0xff] %vm318_vm0, %v4757_v5  ;;  %v4839_v30 = vld [vmem:[#allocation3 + $0x60] sm:$0xff]  ;;  %v4840_v18 = vld [vmem:[#allocation3 + $0x68] sm:$0xff]  ;;  %v4870_v33 = vadd.f32 %v4854_v46, %v4837_v4  ;;  %v4871_v61 = vadd.f32 %v4855_v63, %v4838_v7 }
 0x576   : > { %4822 = vst.msk [vmem:[#allocation3 + $0xa8] sm:$0xff] %vm318_vm0, %v4758_v60  ;;  %4823 = vst.msk [vmem:[#allocation3 + $0xb0] sm:$0xff] %vm318_vm0, %v4759_v53  ;;  %v4873_v50 = vadd.f32 %v9285_v44, %v4840_v18 }
 0x577   : > { %4792 = vst.msk [vmem:[%s9197_s12 + $0xb8] sm:$0xff] %vm397_vm1, %v4760_v37  ;;  %4793 = vst.msk [vmem:[%s9197_s12 + $0xc0] sm:$0xff] %vm397_vm1, %v4761_v24 }
 0x578   : > { %4794 = vst.msk [vmem:[%s9197_s12 + $0xc8] sm:$0xff] %vm397_vm1, %v4762_v38  ;;  %4795 = vst.msk [vmem:[%s9197_s12 + $0xd0] sm:$0xff] %vm397_vm1, %v4763_v40  ;;  %v4841_v39 = vld [vmem:[#allocation3 + $0x80] sm:$0xff]  ;;  %v4856_v47 = vld [vmem:[#allocation3 + $0x70] sm:$0xff] }
 0x579   : > { %4824 = vst.msk [vmem:[#allocation3 + $0xb8] sm:$0xff] %vm318_vm0, %v4760_v37  ;;  %4825 = vst.msk [vmem:[#allocation3 + $0xc0] sm:$0xff] %vm318_vm0, %v4761_v24  ;;  %v4842_v20 = vld [vmem:[#allocation3 + $0x88] sm:$0xff]  ;;  %v4858_v15 = vld [vmem:[#allocation3 + $0x90] sm:$0xff]  ;;  %v4872_v52 = vadd.f32 %v4856_v47, %v4839_v30 }
 0x57a   : > { %4826 = vst.msk [vmem:[#allocation3 + $0xc8] sm:$0xff] %vm318_vm0, %v4762_v38  ;;  %4827 = vst.msk [vmem:[#allocation3 + $0xd0] sm:$0xff] %vm318_vm0, %v4763_v40  ;;  %v4874_v44 = vadd.f32 %v4858_v15, %v4841_v39 }
 0x57b   : > { %4796 = vst.msk [vmem:[%s9197_s12 + $0xd8] sm:$0xff] %vm397_vm1, %v4764_v11  ;;  %4797 = vst.msk [vmem:[%s9197_s12 + $0xe0] sm:$0xff] %vm397_vm1, %v4765_v8 }
 0x57c   : > { %4799 = vst.msk [vmem:[%s9197_s12 + $0xf0] sm:$0xff] %vm397_vm1, %v4767_v6  ;;  %v4843_v56 = vld [vmem:[#allocation3 + $0xa0] sm:$0xff]  ;;  %v4859_v35 = vld [vmem:[#allocation3 + $0x98] sm:$0xff]  ;;  %vm4953_vm1 = vcmask 60416   ;;  %s6628_s12 = sshll.u32 %s6701_s26, 4  ;;  %s6629_s12 = int_to_ptr.vmem [resolvable:$false] %s6628_s12 }
 0x57d   : > { %4828 = vst.msk [vmem:[#allocation3 + $0xd8] sm:$0xff] %vm318_vm0, %v4764_v11  ;;  %4829 = vst.msk [vmem:[#allocation3 + $0xe0] sm:$0xff] %vm318_vm0, %v4765_v8  ;;  %v4844_v42 = vld [vmem:[#allocation3 + $0xa8] sm:$0xff]  ;;  %v4860_v55 = vld [vmem:[#allocation3 + $0xb0] sm:$0xff]  ;;  %v4875_v54 = vadd.f32 %v4859_v35, %v4842_v20  ;;  %s6630_s18 = scalar_lea.vmem %s6629_s12, 1024  ;;  %p6631_p0 = scmp.lt.s32.totalorder %s9475_s25, %s6629_s12 }
 0x57e   : > { %4831 = vst.msk [vmem:[#allocation3 + $0xf0] sm:$0xff] %vm318_vm0, %v4767_v6  ;;  %4882 = vst.msk [vmem:[#allocation3] sm:$0xff] %vm318_vm0, %v4866_v58  ;;  %v4876_v9 = vadd.f32 %v4860_v55, %v4843_v56  ;;  %p6632_p1 = scmp.lt.s32.totalorder %s6630_s18, %s6624_s23 }
 0x57f   : > { %4883 = vst.msk [vmem:[#allocation3 + $0x8] sm:$0xff] %vm318_vm0, %v4867_v14  ;;  %4884 = vst.msk [vmem:[#allocation3 + $0x10] sm:$0xff] %vm318_vm0, %v4868_v34 }
 0x580   : > { %4885 = vst.msk [vmem:[#allocation3 + $0x18] sm:$0xff] %vm318_vm0, %v4869_v59  ;;  %v4845_v49 = vld [vmem:[#allocation3 + $0xc0] sm:$0xff]  ;;  %4886 = vst.msk [vmem:[#allocation3 + $0x20] sm:$0xff] %vm318_vm0, %v4870_v33  ;;  %v4861_v25 = vld [vmem:[#allocation3 + $0xb8] sm:$0xff]  ;;  %p6633_p2 = por %p6632_p1, %p6631_p0 }
 0x581   : > { %v4846_v0 = vld [vmem:[#allocation3 + $0xc8] sm:$0xff]  ;;  %4889 = vst.msk [vmem:[#allocation3 + $0x38] sm:$0xff] %vm318_vm0, %v4873_v50  ;;  %v4862_v12 = vld [vmem:[#allocation3 + $0xd0] sm:$0xff]  ;;  %4887 = vst.msk [vmem:[#allocation3 + $0x28] sm:$0xff] %vm318_vm0, %v4871_v61  ;;  %v4877_v57 = vadd.f32 %v4861_v25, %v4844_v42 }
 0x582   : > { %v4878_v26 = vadd.f32 %v4862_v12, %v4845_v49  ;;  %4888 = vst.msk [vmem:[#allocation3 + $0x30] sm:$0xff] %vm318_vm0, %v4872_v52  ;;  %4890 = vst.msk [vmem:[#allocation3 + $0x40] sm:$0xff] %vm318_vm0, %v4874_v44  ;;  %p6634_p3 = pnand %p6633_p2, %p6627_p13 }
 0x583   : > { %4891 = vst.msk [vmem:[#allocation3 + $0x48] sm:$0xff] %vm318_vm0, %v4875_v54  ;;  %4892 = vst.msk [vmem:[#allocation3 + $0x50] sm:$0xff] %vm318_vm0, %v4876_v9 }
 0x584   : > { %v4847_v17 = vld [vmem:[#allocation3 + $0xe0] sm:$0xff]  ;;  %v4863_v21 = vld [vmem:[#allocation3 + $0xd8] sm:$0xff]  ;;  %4893 = vst.msk [vmem:[#allocation3 + $0x58] sm:$0xff] %vm318_vm0, %v4877_v57  ;;  %4894 = vst.msk [vmem:[#allocation3 + $0x60] sm:$0xff] %vm318_vm0, %v4878_v26 }
 0x585   : > { %v4864_v43 = vld [vmem:[#allocation3 + $0xf0] sm:$0xff]  ;;  %v4879_v19 = vadd.f32 %v4863_v21, %v4846_v0 }
 0x586   : > { %v4898_v29 = vld [vmem:[#allocation3] ss:$2 sm:$0xff]  ;;  %v4880_v45 = vadd.f32 %v4864_v43, %v4847_v17  ;;  %v4914_v36 = vld [vmem:[#allocation3 + $0x1] ss:$2 sm:$0xff] }
 0x587   : > { %v4929_v62 = vadd.f32 %v4914_v36, %v4898_v29  ;;  %4895 = vst.msk [vmem:[#allocation3 + $0x68] sm:$0xff] %vm318_vm0, %v4879_v19  ;;  %v4900_v48 = vld [vmem:[#allocation3 + $0x10] ss:$2 sm:$0xff]  ;;  %v4916_v51 = vld [vmem:[#allocation3 + $0x11] ss:$2 sm:$0xff] }
 0x588   : > { %4896 = vst.msk [vmem:[#allocation3 + $0x70] sm:$0xff] %vm318_vm0, %v4880_v45  ;;  %v4930_v27 = vadd.f32 %v4916_v51, %v4900_v48  ;;  %v4902_v31 = vld [vmem:[#allocation3 + $0x20] ss:$2 sm:$0xff]  ;;  %v4918_v41 = vld [vmem:[#allocation3 + $0x21] ss:$2 sm:$0xff] }
 0x589   : > { %v4937_v16 = vmul.f32 0.25, %v4929_v62  ;;  %v4904_v60 = vld [vmem:[#allocation3 + $0x30] ss:$2 sm:$0xff]  ;;  %v4920_v10 = vld [vmem:[#allocation3 + $0x31] ss:$2 sm:$0xff]  ;;  %v4931_v3 = vadd.f32 %v4918_v41, %v4902_v31 }
 0x58a   : > { %v4938_v22 = vmul.f32 0.25, %v4930_v27  ;;  %v4906_v53 = vld [vmem:[#allocation3 + $0x40] ss:$2 sm:$0xff]  ;;  %v4922_v37 = vld [vmem:[#allocation3 + $0x41] ss:$2 sm:$0xff]  ;;  %v4932_v24 = vadd.f32 %v4920_v10, %v4904_v60 }
 0x58b   : > { %v4945_v5 = vpack.c.bf16 %v4937_v16, %v4937_v16  ;;  %v4908_v1 = vld [vmem:[#allocation3 + $0x50] ss:$2 sm:$0xff]  ;;  %v4924_v40 = vld [vmem:[#allocation3 + $0x51] ss:$2 sm:$0xff]  ;;  %v4933_v11 = vadd.f32 %v4922_v37, %v4906_v53  ;;  %v4939_v8 = vmul.f32 0.25, %v4931_v3 }
 0x58c   : > { %v4946_v38 = vpack.c.bf16 %v4938_v22, %v4938_v22  ;;  %v4934_v58 = vadd.f32 %v4924_v40, %v4908_v1  ;;  %v4940_v23 = vmul.f32 0.25, %v4932_v24 }
 0x58d   : > { %4954 = vst.msk [vmem:[%s9454_s19] sm:$0xf] %vm4953_vm1, %v4945_v5  ;;  %v4941_v4 = vmul.f32 0.25, %v4933_v11  ;;  %v4947_v2 = vpack.c.bf16 %v4939_v8, %v4939_v8 }
 0x58e   : > { %v4910_v6 = vld [vmem:[#allocation3 + $0x60] ss:$2 sm:$0xff]  ;;  %v4926_v32 = vld [vmem:[#allocation3 + $0x61] ss:$2 sm:$0xff]  ;;  %4955 = vst.msk [vmem:[%s9454_s19 + $0x4] sm:$0xf] %vm4953_vm1, %v4946_v38  ;;  %v4948_v46 = vpack.c.bf16 %v4940_v23, %v4940_v23 }
 0x58f   : > { %v4912_v28 = vld [vmem:[#allocation3 + $0x70] ss:$2 sm:$0xff]  ;;  %v4928_v14 = vld [vmem:[#allocation3 + $0x71] ss:$2 sm:$0xff]  ;;  %v4935_v13 = vadd.f32 %v4926_v32, %v4910_v6  ;;  %v4942_v7 = vmul.f32 0.25, %v4934_v58  ;;  %v4949_v59 = vpack.c.bf16 %v4941_v4, %v4941_v4 }
 0x590   : > { %v4936_v34 = vadd.f32 %v4928_v14, %v4912_v28  ;;  %4956 = vst.msk [vmem:[%s9454_s19 + $0x8] sm:$0xf] %vm4953_vm1, %v4947_v2  ;;  %4957 = vst.msk [vmem:[%s9454_s19 + $0xc] sm:$0xf] %vm4953_vm1, %v4948_v46 }
 0x591   : > { %v4943_v30 = vmul.f32 0.25, %v4935_v13  ;;  %v4950_v39 = vpack.c.bf16 %v4942_v7, %v4942_v7  ;;  %4958 = vst.msk [vmem:[%s9454_s19 + $0x10] sm:$0xf] %vm4953_vm1, %v4949_v59 }
 0x592   : > { %v4944_v18 = vmul.f32 0.25, %v4936_v34 }
 0x593   : > { %v4951_v20 = vpack.c.bf16 %v4943_v30, %v4943_v30  ;;  %4959 = vst.msk [vmem:[%s9454_s19 + $0x14] sm:$0xf] %vm4953_vm1, %v4950_v39 }
 0x594   : > { %v4952_v33 = vpack.c.bf16 %v4944_v18, %v4944_v18 }
 0x595   : > { %4960 = vst.msk [vmem:[%s9454_s19 + $0x18] sm:$0xf] %vm4953_vm1, %v4951_v20 }
 0x596   : > { %4961 = vst.msk [vmem:[%s9454_s19 + $0x1c] sm:$0xf] %vm4953_vm1, %v4952_v33 }
 0x597   : > { %6637 = shalt.err (!%p6634_p3)
}
 0x598   : > { %s6638_s17 = scalar_lea.hbm %s9473_s13, 512  ;;  %s6642_s24 = scalar_lea.hbm %s9535_s8, 1024 }
 0x599   : > { %p6639_p4 = scmp.ne.s32.totalorder %s9473_s13, %s6638_s17  ;;  %p6643_p9 = scmp.lt.u32.totalorder %s9473_s13, %s9535_s8 }
 0x59a   : > { %p6644_p10 = scmp.lt.u32.totalorder %s6642_s24, %s6638_s17  ;;  %p6646_p12 = scmp.lt.u32.totalorder %s6638_s17, %s9473_s13 }
 0x59b   : > { %p6640_p7 = pnand %p6639_p4, %p6785_p5 }
 0x59c   : > { %p6645_p11 = por %p6644_p10, %p6643_p9 }
 0x59d   : > { %p6641_p8 = pneg %p6640_p7 }
 0x59e   : > { %p6647_p13 = por %p6646_p12, %p6645_p11 }
 0x5a0   : > { %p6648_p0 = pnand %p6647_p13, %p6641_p8 }
 0x5a2   : > { %6651 = shalt.err (!%p6648_p0)
}
 0x5a3   : > { %5250 = dma.vmem_to_hbm [thread:$0]  (%p6785_p5), %s9475_s25, 512, %s9473_s13, %s9483_s9, %s6700_s21, %s6700_s21, %s6689_s22  }
 0x5a4 PF: > { %p5256_p1 = scmp.ge.s32.totalorder %s6686_s30, 2  ;;  %s5007_s23 = sand.u32 1, %s6674_s27  }
 0x5a5   : > { %s5008_s12 = scalar_lea.sflag [#allocation5], %s5007_s23 }
 0x5a6   : > { %p5253_p2 = pnand %p5256_p1, %p6789_p6 }
 0x5a8   : > { %6669 = dma.done.wait (!%p5253_p2), %s5008_s12, 512  }
 0x5a9   : > { %6671 = vsyncadd (!%p5253_p2), %s5008_s12, 4294966784  ;;  %p19_p3 = scmp.ge.s32.totalorder %s6772_s11, 4   ;;  %s9646_s27 = smov %s6678_s28 }
 0x5aa   : > { %s9647_s28 = smov %s6682_s29  ;;  %s9648_s29 = smov %s6783_s14 }
 0x5ab   : > { %s9649_s30 = smov %s6772_s11  ;;  %21 = sbr.rel (!%p19_p3) target bundleno = 3 (0x3), region = 114 }
 0x5b2   :  { %5013 = vsyncpa [#allocation5], 1 }
 0x5b3   :  { %5015 = vsyncpa [#allocation5 + $0x1], 1 }

</bundles_post_ra>
